<compile_context>
chip_gen: v6e
topology: v6e:2x2x1
jax: 0.10.0
libtpu: 0.0.40
codegen_flags: <defaults>
</compile_context>

<pallas_src>
import functools
import numpy as np
import jax
import jax.numpy as jnp
from jax.experimental import pallas as pl
from jax.experimental.pallas import tpu as pltpu


# ---------------------------------------------------------------------------
# Fused Pallas kernel: conv3x3 + RMSNorm + (scale,shift) + SiLU
#                      -> conv3x3 + RMSNorm + SiLU -> + residual (1x1 / identity)
# ---------------------------------------------------------------------------
def _resnet_block_kernel(*refs, th, width, cin, cout, has_res):
    """Refs (has_res=True):
       x_ref  : (H+4, W+2, Cin)  zero-padded NHWC image, resident per batch elem
       w1_ref : (9*Cin, C)   conv1 weight (HWIO flattened, (dy,dx,ci) order)
       b1_ref, g1_ref : (1, C)
       sc_ref : (1, 2*C)     hoisted time-MLP output (scale | shift) for this b
       w2_ref : (9*C, C), b2_ref, g2_ref : (1, C)
       wr_ref : (Cin, C), br_ref : (1, C)      (only if has_res)
       o_ref  : (th, W, C)   output row-tile
       h1_ref : (th+2, W+2, C) f32 VMEM scratch holding block1's output + halo
    """
    if has_res:
        (x_ref, w1_ref, b1_ref, g1_ref, sc_ref,
         w2_ref, b2_ref, g2_ref, wr_ref, br_ref, o_ref, h1_ref) = refs
    else:
        (x_ref, w1_ref, b1_ref, g1_ref, sc_ref,
         w2_ref, b2_ref, g2_ref, o_ref, h1_ref) = refs
        wr_ref = br_ref = None

    t = pl.program_id(1)
    row0 = pl.multiple_of(t * th, th)      # first output image row of this tile
    th2 = th + 2                           # h1 rows needed (output rows +/- 1)
    n1 = th2 * width
    n2 = th * width
    rms_scale = float(cout) ** 0.5
    bf16 = jnp.bfloat16

    # ---------------- block1: conv3x3 as 9 accumulating MXU matmuls ---------
    acc1 = None
    for dy in range(3):
        for dx in range(3):
            k = dy * 3 + dx
            xs = x_ref[pl.ds(row0 + dy, th2), pl.ds(dx, width), :]     # (th2,W,Cin)
            d = jnp.dot(xs.reshape(n1, cin).astype(bf16),
                        w1_ref[k * cin:(k + 1) * cin, :].astype(bf16),
                        preferred_element_type=jnp.float32)
            acc1 = d if acc1 is None else acc1 + d
    y1 = acc1 + b1_ref[...]                                            # (n1, C)

    # RMSNorm (F.normalize over channels * g * sqrt(C)), rsqrt on the EUP.
    y1 = y1 * jax.lax.rsqrt(jnp.maximum(jnp.sum(y1 * y1, -1, keepdims=True), 1e-24))
    y1 = y1 * (g1_ref[...] * rms_scale)

    sc = sc_ref[...]                                                   # (1, 2C)
    y1 = y1 * (sc[:, :cout] + 1.0) + sc[:, cout:]
    y1 = jax.nn.silu(y1)
    # TODO(synk): nn.Dropout(p=0.0) is an identity at inference; omitted.

    # Stage block1's output in VMEM only (never written to HBM).
    # Zero W-halo columns (block2's zero padding along W).
    h1_ref[:, 0:1, :] = jnp.zeros((th2, 1, cout), h1_ref.dtype)
    h1_ref[:, width + 1:width + 2, :] = jnp.zeros((th2, 1, cout), h1_ref.dtype)
    h1_ref[:, 1:width + 1, :] = y1.reshape(th2, width, cout)

    # Rows outside the image (top/bottom H-halo at the image border) must be
    # ZERO for block2's zero-padded conv, not block1(zero-padded x).
    @pl.when(t == 0)
    def _():
        h1_ref[0:1, :, :] = jnp.zeros((1, width + 2, cout), h1_ref.dtype)

    @pl.when(t == pl.num_programs(1) - 1)
    def _():
        h1_ref[th + 1:th + 2, :, :] = jnp.zeros((1, width + 2, cout), h1_ref.dtype)

    # ---------------- block2: conv3x3 + RMSNorm + SiLU -----------------------
    acc2 = None
    for dy in range(3):
        for dx in range(3):
            k = dy * 3 + dx
            hs = h1_ref[dy:dy + th, dx:dx + width, :]                  # (th, W, C)
            d = jnp.dot(hs.reshape(n2, cout).astype(bf16),
                        w2_ref[k * cout:(k + 1) * cout, :].astype(bf16),
                        preferred_element_type=jnp.float32)
            acc2 = d if acc2 is None else acc2 + d
    y2 = acc2 + b2_ref[...]
    y2 = y2 * jax.lax.rsqrt(jnp.maximum(jnp.sum(y2 * y2, -1, keepdims=True), 1e-24))
    y2 = y2 * (g2_ref[...] * rms_scale)
    y2 = jax.nn.silu(y2)

    # ---------------- residual ------------------------------------------------
    xr = x_ref[pl.ds(row0 + 2, th), pl.ds(1, width), :]                # (th, W, Cin)
    if has_res:
        res = jnp.dot(xr.reshape(n2, cin).astype(bf16),
                      wr_ref[...].astype(bf16),
                      preferred_element_type=jnp.float32) + br_ref[...]
    else:  # nn.Identity: skip the 1x1 matmul entirely
        res = xr.reshape(n2, cout)

    o_ref[...] = (y2 + res).reshape(th, width, cout).astype(o_ref.dtype)


# ---------------------------------------------------------------------------
# Wrapper (NCHW in/out, layout prep + hoisted time-MLP only)
# ---------------------------------------------------------------------------
def resnet_block_forward(x_nchw, time_emb, params, tile_h=None):
    b, cin, h, w = x_nchw.shape
    cout = params["b1"].shape[-1]
    if tile_h is None:
        tile_h = 8 if h % 8 == 0 else h
    assert h % tile_h == 0, "tile_h must divide H"
    n_tiles = h // tile_h
    has_res = params["w_res"] is not None

    x_nhwc = jnp.transpose(x_nchw, (0, 2, 3, 1)).astype(jnp.float32)
    # Pad H by 2 / W by 1 once so every halo'd row-window is a uniform slice.
    x_pad = jnp.pad(x_nhwc, ((0, 0), (2, 2), (1, 1), (0, 0)))

    # Hoisted time MLP: one (B,T)x(T,2C) XLA matmul instead of per-tile M=1 work.
    emb = jax.nn.silu(time_emb.astype(jnp.float32)) @ params["w_mlp"] + params["b_mlp"]
    sc = emb.reshape(b, 1, 2 * cout)

    inputs = [x_pad, params["w1"], params["b1"], params["g1"], sc,
              params["w2"], params["b2"], params["g2"]]
    in_specs = [
        # Padded image stays resident in VMEM across this batch element's H-tiles.
        pl.BlockSpec((None, h + 4, w + 2, cin), lambda bi, ti: (bi, 0, 0, 0)),
        pl.BlockSpec(params["w1"].shape, lambda bi, ti: (0, 0)),
        pl.BlockSpec(params["b1"].shape, lambda bi, ti: (0, 0)),
        pl.BlockSpec(params["g1"].shape, lambda bi, ti: (0, 0)),
        pl.BlockSpec((None, 1, 2 * cout), lambda bi, ti: (bi, 0, 0)),
        pl.BlockSpec(params["w2"].shape, lambda bi, ti: (0, 0)),
        pl.BlockSpec(params["b2"].shape, lambda bi, ti: (0, 0)),
        pl.BlockSpec(params["g2"].shape, lambda bi, ti: (0, 0)),
    ]
    if has_res:
        inputs += [params["w_res"], params["b_res"]]
        in_specs += [pl.BlockSpec(params["w_res"].shape, lambda bi, ti: (0, 0)),
                     pl.BlockSpec(params["b_res"].shape, lambda bi, ti: (0, 0))]

    kernel = functools.partial(_resnet_block_kernel, th=tile_h, width=w,
                               cin=cin, cout=cout, has_res=has_res)

    out_nhwc = pl.pallas_call(
        kernel,
        out_shape=jax.ShapeDtypeStruct((b, h, w, cout), jnp.float32),
        grid=(b, n_tiles),
        in_specs=in_specs,
        out_specs=pl.BlockSpec((None, tile_h, w, cout),
                               lambda bi, ti: (bi, ti, 0, 0)),
        scratch_shapes=[pltpu.VMEM((tile_h + 2, w + 2, cout), jnp.float32)],
        compiler_params=pltpu.CompilerParams(
            dimension_semantics=("parallel", "parallel")),
    )(*inputs)

    return jnp.transpose(out_nhwc, (0, 3, 1, 2))


# ---------------------------------------------------------------------------
# Deterministic parameter init (shapes follow ResnetBlock.__init__)
# ---------------------------------------------------------------------------
def init_params(key, dim, dim_out, time_emb_dim):
    ks = jax.random.split(key, 10)
    nrm = lambda k, shape, s=0.1: jax.random.normal(k, shape, jnp.float32) * s
    w1 = nrm(ks[0], (3, 3, dim, dim_out)).reshape(9 * dim, dim_out)      # conv1 (HWIO flat)
    b1 = nrm(ks[1], (1, dim_out))
    g1 = 1.0 + nrm(ks[2], (1, dim_out))                                  # RMSNorm g
    w2 = nrm(ks[3], (3, 3, dim_out, dim_out)).reshape(9 * dim_out, dim_out)
    b2 = nrm(ks[4], (1, dim_out))
    g2 = 1.0 + nrm(ks[5], (1, dim_out))
    w_mlp = nrm(ks[6], (time_emb_dim, 2 * dim_out))                      # Linear(T, 2*C)
    b_mlp = nrm(ks[7], (1, 2 * dim_out))
    if dim != dim_out:
        w_res = nrm(ks[8], (dim, dim_out))                               # 1x1 conv
        b_res = nrm(ks[9], (1, dim_out))
    else:
        w_res = None                                                     # nn.Identity
        b_res = None
    return dict(w1=w1, b1=b1, g1=g1, w2=w2, b2=b2, g2=g2,
                w_mlp=w_mlp, b_mlp=b_mlp, w_res=w_res, b_res=b_res)


# ---------------------------------------------------------------------------
# Plain-JAX reference (independent lax.conv, mirrors the kernel's bf16
# matmul-operand rounding so tolerances stay tight)
# ---------------------------------------------------------------------------
def reference_forward(x_nchw, temb, p, dim_out):
    bfq = lambda a: a.astype(jnp.bfloat16).astype(jnp.float32)   # bf16 operand rounding
    x = jnp.transpose(x_nchw, (0, 2, 3, 1)).astype(jnp.float32)

    emb = jax.nn.silu(temb) @ p["w_mlp"] + p["b_mlp"]            # (B, 2C)
    scale, shift = emb[:, :dim_out], emb[:, dim_out:]

    def conv3(inp, w_flat, bias):
        wk = bfq(w_flat).reshape(3, 3, inp.shape[-1], -1)
        out = jax.lax.conv_general_dilated(
            bfq(inp), wk, (1, 1), "SAME",
            dimension_numbers=("NHWC", "HWIO", "NHWC"))
        return out + bias

    def rmsnorm(v, g):
        ss = jnp.sum(v * v, axis=-1, keepdims=True)
        return v * jax.lax.rsqrt(jnp.maximum(ss, 1e-24)) * g * (v.shape[-1] ** 0.5)

    hh = conv3(x, p["w1"], p["b1"])
    hh = rmsnorm(hh, p["g1"])
    hh = hh * (scale[:, None, None, :] + 1.0) + shift[:, None, None, :]
    hh = jax.nn.silu(hh)
    hh = conv3(hh, p["w2"], p["b2"])
    hh = rmsnorm(hh, p["g2"])
    hh = jax.nn.silu(hh)
    if p["w_res"] is not None:
        res = jnp.einsum("bhwc,cd->bhwd", bfq(x), bfq(p["w_res"])) + p["b_res"]
    else:
        res = x
    return jnp.transpose(hh + res, (0, 3, 1, 2))


if __name__ == "__main__":
    dim, dim_out, time_emb_dim = 4, 8, 32
    B, H, W = 2, 16, 16

    key = jax.random.PRNGKey(0)
    kx, kt, kp = jax.random.split(key, 3)
    x = jax.random.normal(kx, (B, dim, H, W), jnp.float32)        # NCHW, like PyTorch
    temb = jax.random.normal(kt, (B, time_emb_dim), jnp.float32)
    params = init_params(kp, dim, dim_out, time_emb_dim)

    out = resnet_block_forward(x, temb, params, tile_h=8)
    out = jax.block_until_ready(out)

    ref = reference_forward(x, temb, params, dim_out)
    assert out.shape == (B, dim_out, H, W)
    # Tolerance reflects bf16 matmul operands (f32 accumulation) in the kernel.
    np.testing.assert_allclose(np.asarray(out), np.asarray(ref), atol=1e-2, rtol=1e-2)

    print("KERNEL_OK")
</pallas_src>

<mosaic_0001>
module attributes {stable_mosaic.version = 11 : i64} {
  func.func @_resnet_block_kernel(%arg0: i32, %arg1: i32, %arg2: memref<1x20x18x4xf32, #tpu.memory_space<vmem>>, %arg3: memref<36x8xf32, #tpu.memory_space<vmem>>, %arg4: memref<1x8xf32, #tpu.memory_space<vmem>>, %arg5: memref<1x8xf32, #tpu.memory_space<vmem>>, %arg6: memref<1x1x16xf32, #tpu.memory_space<vmem>>, %arg7: memref<72x8xf32, #tpu.memory_space<vmem>>, %arg8: memref<1x8xf32, #tpu.memory_space<vmem>>, %arg9: memref<1x8xf32, #tpu.memory_space<vmem>>, %arg10: memref<4x8xf32, #tpu.memory_space<vmem>>, %arg11: memref<1x8xf32, #tpu.memory_space<vmem>>, %arg12: memref<1x8x16x8xf32, #tpu.memory_space<vmem>>, %arg13: memref<10x18x8xf32, #tpu.memory_space<vmem>>) attributes {dimension_semantics = [#tpu.dimension_semantics<parallel>, #tpu.dimension_semantics<parallel>], iteration_bounds = array<i64: 2, 2>, scalar_prefetch = 0 : i64, scratch_operands = 1 : i64, tpu.core_type = #tpu.core_type<tc>, window_params = [{transform_indices = @transform_0, window_bounds = array<i64: 1, 20, 18, 4>}, {pipeline_mode = #tpu.pipeline_mode<synchronous>, transform_indices = @transform_1, window_bounds = array<i64: 36, 8>}, {pipeline_mode = #tpu.pipeline_mode<synchronous>, transform_indices = @transform_2, window_bounds = array<i64: 1, 8>}, {pipeline_mode = #tpu.pipeline_mode<synchronous>, transform_indices = @transform_3, window_bounds = array<i64: 1, 8>}, {transform_indices = @transform_4, window_bounds = array<i64: 1, 1, 16>}, {pipeline_mode = #tpu.pipeline_mode<synchronous>, transform_indices = @transform_5, window_bounds = array<i64: 72, 8>}, {pipeline_mode = #tpu.pipeline_mode<synchronous>, transform_indices = @transform_6, window_bounds = array<i64: 1, 8>}, {pipeline_mode = #tpu.pipeline_mode<synchronous>, transform_indices = @transform_7, window_bounds = array<i64: 1, 8>}, {pipeline_mode = #tpu.pipeline_mode<synchronous>, transform_indices = @transform_8, window_bounds = array<i64: 4, 8>}, {pipeline_mode = #tpu.pipeline_mode<synchronous>, transform_indices = @transform_9, window_bounds = array<i64: 1, 8>}, {transform_indices = @transform_10, window_bounds = array<i64: 1, 8, 16, 8>}]} {
    %c8_i32 = arith.constant 8 : i32
    %0 = arith.muli %arg1, %c8_i32 : i32
    %1 = tpu.assume_multiple %0, 8 : i32
    %c0_i32 = arith.constant 0 : i32
    %2 = arith.addi %1, %c0_i32 : i32
    %c0 = arith.constant 0 : index
    %3 = arith.index_cast %2 : i32 to index
    %c0_0 = arith.constant 0 : index
    %c0_1 = arith.constant 0 : index
    %4 = vector.load %arg2[%c0, %3, %c0_0, %c0_1] : memref<1x20x18x4xf32, #tpu.memory_space<vmem>>, vector<1x10x16x4xf32>
    %5 = vector.shape_cast %4 : vector<1x10x16x4xf32> to vector<10x16x4xf32>
    %6 = vector.shape_cast %5 : vector<10x16x4xf32> to vector<160x4xf32>
    %7 = arith.truncf %6 : vector<160x4xf32> to vector<160x4xbf16>
    %c0_2 = arith.constant 0 : index
    %c0_3 = arith.constant 0 : index
    %8 = vector.load %arg3[%c0_2, %c0_3] : memref<36x8xf32, #tpu.memory_space<vmem>>, vector<4x8xf32>
    %9 = arith.truncf %8 : vector<4x8xf32> to vector<4x8xbf16>
    %cst = arith.constant dense<0.000000e+00> : vector<160x8xf32>
    %10 = tpu.matmul %7, %9, %cst {dimension_numbers = #tpu.dot_dimension_numbers<[1], [0], [0], [1], [0, 0, 1, 1], [], []>} : vector<160x4xbf16>, vector<4x8xbf16>, vector<160x8xf32> -> vector<160x8xf32>
    %c0_i32_4 = arith.constant 0 : i32
    %11 = arith.addi %1, %c0_i32_4 : i32
    %c0_5 = arith.constant 0 : index
    %12 = arith.index_cast %11 : i32 to index
    %c1 = arith.constant 1 : index
    %c0_6 = arith.constant 0 : index
    %13 = vector.load %arg2[%c0_5, %12, %c1, %c0_6] : memref<1x20x18x4xf32, #tpu.memory_space<vmem>>, vector<1x10x16x4xf32>
    %14 = vector.shape_cast %13 : vector<1x10x16x4xf32> to vector<10x16x4xf32>
    %15 = vector.shape_cast %14 : vector<10x16x4xf32> to vector<160x4xf32>
    %16 = arith.truncf %15 : vector<160x4xf32> to vector<160x4xbf16>
    %c4 = arith.constant 4 : index
    %c0_7 = arith.constant 0 : index
    %17 = vector.load %arg3[%c4, %c0_7] : memref<36x8xf32, #tpu.memory_space<vmem>>, vector<4x8xf32>
    %18 = arith.truncf %17 : vector<4x8xf32> to vector<4x8xbf16>
    %cst_8 = arith.constant dense<0.000000e+00> : vector<160x8xf32>
    %19 = tpu.matmul %16, %18, %cst_8 {dimension_numbers = #tpu.dot_dimension_numbers<[1], [0], [0], [1], [0, 0, 1, 1], [], []>} : vector<160x4xbf16>, vector<4x8xbf16>, vector<160x8xf32> -> vector<160x8xf32>
    %20 = arith.addf %10, %19 : vector<160x8xf32>
    %c0_i32_9 = arith.constant 0 : i32
    %21 = arith.addi %1, %c0_i32_9 : i32
    %c0_10 = arith.constant 0 : index
    %22 = arith.index_cast %21 : i32 to index
    %c2 = arith.constant 2 : index
    %c0_11 = arith.constant 0 : index
    %23 = vector.load %arg2[%c0_10, %22, %c2, %c0_11] : memref<1x20x18x4xf32, #tpu.memory_space<vmem>>, vector<1x10x16x4xf32>
    %24 = vector.shape_cast %23 : vector<1x10x16x4xf32> to vector<10x16x4xf32>
    %25 = vector.shape_cast %24 : vector<10x16x4xf32> to vector<160x4xf32>
    %26 = arith.truncf %25 : vector<160x4xf32> to vector<160x4xbf16>
    %c8 = arith.constant 8 : index
    %c0_12 = arith.constant 0 : index
    %27 = vector.load %arg3[%c8, %c0_12] : memref<36x8xf32, #tpu.memory_space<vmem>>, vector<4x8xf32>
    %28 = arith.truncf %27 : vector<4x8xf32> to vector<4x8xbf16>
    %cst_13 = arith.constant dense<0.000000e+00> : vector<160x8xf32>
    %29 = tpu.matmul %26, %28, %cst_13 {dimension_numbers = #tpu.dot_dimension_numbers<[1], [0], [0], [1], [0, 0, 1, 1], [], []>} : vector<160x4xbf16>, vector<4x8xbf16>, vector<160x8xf32> -> vector<160x8xf32>
    %30 = arith.addf %20, %29 : vector<160x8xf32>
    %c1_i32 = arith.constant 1 : i32
    %31 = arith.addi %1, %c1_i32 : i32
    %c0_14 = arith.constant 0 : index
    %32 = arith.index_cast %31 : i32 to index
    %c0_15 = arith.constant 0 : index
    %c0_16 = arith.constant 0 : index
    %33 = vector.load %arg2[%c0_14, %32, %c0_15, %c0_16] : memref<1x20x18x4xf32, #tpu.memory_space<vmem>>, vector<1x10x16x4xf32>
    %34 = vector.shape_cast %33 : vector<1x10x16x4xf32> to vector<10x16x4xf32>
    %35 = vector.shape_cast %34 : vector<10x16x4xf32> to vector<160x4xf32>
    %36 = arith.truncf %35 : vector<160x4xf32> to vector<160x4xbf16>
    %c12 = arith.constant 12 : index
    %c0_17 = arith.constant 0 : index
    %37 = vector.load %arg3[%c12, %c0_17] : memref<36x8xf32, #tpu.memory_space<vmem>>, vector<4x8xf32>
    %38 = arith.truncf %37 : vector<4x8xf32> to vector<4x8xbf16>
    %cst_18 = arith.constant dense<0.000000e+00> : vector<160x8xf32>
    %39 = tpu.matmul %36, %38, %cst_18 {dimension_numbers = #tpu.dot_dimension_numbers<[1], [0], [0], [1], [0, 0, 1, 1], [], []>} : vector<160x4xbf16>, vector<4x8xbf16>, vector<160x8xf32> -> vector<160x8xf32>
    %40 = arith.addf %30, %39 : vector<160x8xf32>
    %c1_i32_19 = arith.constant 1 : i32
    %41 = arith.addi %1, %c1_i32_19 : i32
    %c0_20 = arith.constant 0 : index
    %42 = arith.index_cast %41 : i32 to index
    %c1_21 = arith.constant 1 : index
    %c0_22 = arith.constant 0 : index
    %43 = vector.load %arg2[%c0_20, %42, %c1_21, %c0_22] : memref<1x20x18x4xf32, #tpu.memory_space<vmem>>, vector<1x10x16x4xf32>
    %44 = vector.shape_cast %43 : vector<1x10x16x4xf32> to vector<10x16x4xf32>
    %45 = vector.shape_cast %44 : vector<10x16x4xf32> to vector<160x4xf32>
    %46 = arith.truncf %45 : vector<160x4xf32> to vector<160x4xbf16>
    %c16 = arith.constant 16 : index
    %c0_23 = arith.constant 0 : index
    %47 = vector.load %arg3[%c16, %c0_23] : memref<36x8xf32, #tpu.memory_space<vmem>>, vector<4x8xf32>
    %48 = arith.truncf %47 : vector<4x8xf32> to vector<4x8xbf16>
    %cst_24 = arith.constant dense<0.000000e+00> : vector<160x8xf32>
    %49 = tpu.matmul %46, %48, %cst_24 {dimension_numbers = #tpu.dot_dimension_numbers<[1], [0], [0], [1], [0, 0, 1, 1], [], []>} : vector<160x4xbf16>, vector<4x8xbf16>, vector<160x8xf32> -> vector<160x8xf32>
    %50 = arith.addf %40, %49 : vector<160x8xf32>
    %c1_i32_25 = arith.constant 1 : i32
    %51 = arith.addi %1, %c1_i32_25 : i32
    %c0_26 = arith.constant 0 : index
    %52 = arith.index_cast %51 : i32 to index
    %c2_27 = arith.constant 2 : index
    %c0_28 = arith.constant 0 : index
    %53 = vector.load %arg2[%c0_26, %52, %c2_27, %c0_28] : memref<1x20x18x4xf32, #tpu.memory_space<vmem>>, vector<1x10x16x4xf32>
    %54 = vector.shape_cast %53 : vector<1x10x16x4xf32> to vector<10x16x4xf32>
    %55 = vector.shape_cast %54 : vector<10x16x4xf32> to vector<160x4xf32>
    %56 = arith.truncf %55 : vector<160x4xf32> to vector<160x4xbf16>
    %c20 = arith.constant 20 : index
    %c0_29 = arith.constant 0 : index
    %57 = vector.load %arg3[%c20, %c0_29] : memref<36x8xf32, #tpu.memory_space<vmem>>, vector<4x8xf32>
    %58 = arith.truncf %57 : vector<4x8xf32> to vector<4x8xbf16>
    %cst_30 = arith.constant dense<0.000000e+00> : vector<160x8xf32>
    %59 = tpu.matmul %56, %58, %cst_30 {dimension_numbers = #tpu.dot_dimension_numbers<[1], [0], [0], [1], [0, 0, 1, 1], [], []>} : vector<160x4xbf16>, vector<4x8xbf16>, vector<160x8xf32> -> vector<160x8xf32>
    %60 = arith.addf %50, %59 : vector<160x8xf32>
    %c2_i32 = arith.constant 2 : i32
    %61 = arith.addi %1, %c2_i32 : i32
    %c0_31 = arith.constant 0 : index
    %62 = arith.index_cast %61 : i32 to index
    %c0_32 = arith.constant 0 : index
    %c0_33 = arith.constant 0 : index
    %63 = vector.load %arg2[%c0_31, %62, %c0_32, %c0_33] : memref<1x20x18x4xf32, #tpu.memory_space<vmem>>, vector<1x10x16x4xf32>
    %64 = vector.shape_cast %63 : vector<1x10x16x4xf32> to vector<10x16x4xf32>
    %65 = vector.shape_cast %64 : vector<10x16x4xf32> to vector<160x4xf32>
    %66 = arith.truncf %65 : vector<160x4xf32> to vector<160x4xbf16>
    %c24 = arith.constant 24 : index
    %c0_34 = arith.constant 0 : index
    %67 = vector.load %arg3[%c24, %c0_34] : memref<36x8xf32, #tpu.memory_space<vmem>>, vector<4x8xf32>
    %68 = arith.truncf %67 : vector<4x8xf32> to vector<4x8xbf16>
    %cst_35 = arith.constant dense<0.000000e+00> : vector<160x8xf32>
    %69 = tpu.matmul %66, %68, %cst_35 {dimension_numbers = #tpu.dot_dimension_numbers<[1], [0], [0], [1], [0, 0, 1, 1], [], []>} : vector<160x4xbf16>, vector<4x8xbf16>, vector<160x8xf32> -> vector<160x8xf32>
    %70 = arith.addf %60, %69 : vector<160x8xf32>
    %c2_i32_36 = arith.constant 2 : i32
    %71 = arith.addi %1, %c2_i32_36 : i32
    %c0_37 = arith.constant 0 : index
    %72 = arith.index_cast %71 : i32 to index
    %c1_38 = arith.constant 1 : index
    %c0_39 = arith.constant 0 : index
    %73 = vector.load %arg2[%c0_37, %72, %c1_38, %c0_39] : memref<1x20x18x4xf32, #tpu.memory_space<vmem>>, vector<1x10x16x4xf32>
    %74 = vector.shape_cast %73 : vector<1x10x16x4xf32> to vector<10x16x4xf32>
    %75 = vector.shape_cast %74 : vector<10x16x4xf32> to vector<160x4xf32>
    %76 = arith.truncf %75 : vector<160x4xf32> to vector<160x4xbf16>
    %c28 = arith.constant 28 : index
    %c0_40 = arith.constant 0 : index
    %77 = vector.load %arg3[%c28, %c0_40] : memref<36x8xf32, #tpu.memory_space<vmem>>, vector<4x8xf32>
    %78 = arith.truncf %77 : vector<4x8xf32> to vector<4x8xbf16>
    %cst_41 = arith.constant dense<0.000000e+00> : vector<160x8xf32>
    %79 = tpu.matmul %76, %78, %cst_41 {dimension_numbers = #tpu.dot_dimension_numbers<[1], [0], [0], [1], [0, 0, 1, 1], [], []>} : vector<160x4xbf16>, vector<4x8xbf16>, vector<160x8xf32> -> vector<160x8xf32>
    %80 = arith.addf %70, %79 : vector<160x8xf32>
    %c2_i32_42 = arith.constant 2 : i32
    %81 = arith.addi %1, %c2_i32_42 : i32
    %c0_43 = arith.constant 0 : index
    %82 = arith.index_cast %81 : i32 to index
    %c2_44 = arith.constant 2 : index
    %c0_45 = arith.constant 0 : index
    %83 = vector.load %arg2[%c0_43, %82, %c2_44, %c0_45] : memref<1x20x18x4xf32, #tpu.memory_space<vmem>>, vector<1x10x16x4xf32>
    %84 = vector.shape_cast %83 : vector<1x10x16x4xf32> to vector<10x16x4xf32>
    %85 = vector.shape_cast %84 : vector<10x16x4xf32> to vector<160x4xf32>
    %86 = arith.truncf %85 : vector<160x4xf32> to vector<160x4xbf16>
    %c32 = arith.constant 32 : index
    %c0_46 = arith.constant 0 : index
    %87 = vector.load %arg3[%c32, %c0_46] : memref<36x8xf32, #tpu.memory_space<vmem>>, vector<4x8xf32>
    %88 = arith.truncf %87 : vector<4x8xf32> to vector<4x8xbf16>
    %cst_47 = arith.constant dense<0.000000e+00> : vector<160x8xf32>
    %89 = tpu.matmul %86, %88, %cst_47 {dimension_numbers = #tpu.dot_dimension_numbers<[1], [0], [0], [1], [0, 0, 1, 1], [], []>} : vector<160x4xbf16>, vector<4x8xbf16>, vector<160x8xf32> -> vector<160x8xf32>
    %90 = arith.addf %80, %89 : vector<160x8xf32>
    %c0_48 = arith.constant 0 : index
    %c0_49 = arith.constant 0 : index
    %91 = vector.load %arg4[%c0_48, %c0_49] : memref<1x8xf32, #tpu.memory_space<vmem>>, vector<1x8xf32>
    %92 = vector.broadcast %91 : vector<1x8xf32> to vector<160x8xf32>
    %93 = arith.addf %90, %92 : vector<160x8xf32>
    %94 = arith.mulf %93, %93 : vector<160x8xf32>
    %cst_50 = arith.constant dense<0.000000e+00> : vector<160xf32>
    %95 = vector.multi_reduction <add>, %94, %cst_50 [1] : vector<160x8xf32> to vector<160xf32>
    %96 = vector.shape_cast %95 : vector<160xf32> to vector<160x1xf32>
    %cst_51 = arith.constant 1.000000e-24 : f32
    %97 = vector.broadcast %cst_51 : f32 to vector<160x1xf32>
    %98 = arith.maximumf %96, %97 : vector<160x1xf32>
    %99 = math.rsqrt %98 : vector<160x1xf32>
    %100 = vector.broadcast %99 : vector<160x1xf32> to vector<160x8xf32>
    %101 = arith.mulf %93, %100 : vector<160x8xf32>
    %c0_52 = arith.constant 0 : index
    %c0_53 = arith.constant 0 : index
    %102 = vector.load %arg5[%c0_52, %c0_53] : memref<1x8xf32, #tpu.memory_space<vmem>>, vector<1x8xf32>
    %cst_54 = arith.constant 2.82842708 : f32
    %103 = vector.broadcast %cst_54 : f32 to vector<1x8xf32>
    %104 = arith.mulf %102, %103 : vector<1x8xf32>
    %105 = vector.broadcast %104 : vector<1x8xf32> to vector<160x8xf32>
    %106 = arith.mulf %101, %105 : vector<160x8xf32>
    %c0_55 = arith.constant 0 : index
    %c0_56 = arith.constant 0 : index
    %c0_57 = arith.constant 0 : index
    %107 = vector.load %arg6[%c0_55, %c0_56, %c0_57] : memref<1x1x16xf32, #tpu.memory_space<vmem>>, vector<1x1x16xf32>
    %108 = vector.shape_cast %107 : vector<1x1x16xf32> to vector<1x16xf32>
    %109 = vector.extract_strided_slice %108 {offsets = [0, 0], sizes = [1, 8], strides = [1, 1]} : vector<1x16xf32> to vector<1x8xf32>
    %cst_58 = arith.constant 1.000000e+00 : f32
    %110 = vector.broadcast %cst_58 : f32 to vector<1x8xf32>
    %111 = arith.addf %109, %110 : vector<1x8xf32>
    %112 = vector.broadcast %111 : vector<1x8xf32> to vector<160x8xf32>
    %113 = arith.mulf %106, %112 : vector<160x8xf32>
    %114 = vector.extract_strided_slice %108 {offsets = [0, 8], sizes = [1, 8], strides = [1, 1]} : vector<1x16xf32> to vector<1x8xf32>
    %115 = vector.broadcast %114 : vector<1x8xf32> to vector<160x8xf32>
    %116 = arith.addf %113, %115 : vector<160x8xf32>
    %117 = arith.negf %116 : vector<160x8xf32>
    %118 = math.exp %117 : vector<160x8xf32>
    %cst_59 = arith.constant 1.000000e+00 : f32
    %119 = vector.broadcast %cst_59 : f32 to vector<160x8xf32>
    %120 = arith.addf %119, %118 : vector<160x8xf32>
    %121 = arith.divf %119, %120 : vector<160x8xf32>
    %122 = arith.mulf %116, %121 : vector<160x8xf32>
    %cst_60 = arith.constant 0.000000e+00 : f32
    %123 = vector.broadcast %cst_60 : f32 to vector<10x1x8xf32>
    %c0_61 = arith.constant 0 : index
    %c0_62 = arith.constant 0 : index
    %c0_63 = arith.constant 0 : index
    %124 = vector.load %arg13[%c0_61, %c0_62, %c0_63] : memref<10x18x8xf32, #tpu.memory_space<vmem>>, vector<10x1x8xf32>
    tpu.vector_store %arg13[%c0_61, %c0_62, %c0_63], %123 {strides = array<i32>} : memref<10x18x8xf32, #tpu.memory_space<vmem>>, vector<10x1x8xf32>,
    %cst_64 = arith.constant 0.000000e+00 : f32
    %125 = vector.broadcast %cst_64 : f32 to vector<10x1x8xf32>
    %c0_65 = arith.constant 0 : index
    %c17 = arith.constant 17 : index
    %c0_66 = arith.constant 0 : index
    %126 = vector.load %arg13[%c0_65, %c17, %c0_66] : memref<10x18x8xf32, #tpu.memory_space<vmem>>, vector<10x1x8xf32>
    tpu.vector_store %arg13[%c0_65, %c17, %c0_66], %125 {strides = array<i32>} : memref<10x18x8xf32, #tpu.memory_space<vmem>>, vector<10x1x8xf32>,
    %127 = vector.shape_cast %122 : vector<160x8xf32> to vector<10x16x8xf32>
    %c0_67 = arith.constant 0 : index
    %c1_68 = arith.constant 1 : index
    %c0_69 = arith.constant 0 : index
    %128 = vector.load %arg13[%c0_67, %c1_68, %c0_69] : memref<10x18x8xf32, #tpu.memory_space<vmem>>, vector<10x16x8xf32>
    tpu.vector_store %arg13[%c0_67, %c1_68, %c0_69], %127 {strides = array<i32>} : memref<10x18x8xf32, #tpu.memory_space<vmem>>, vector<10x16x8xf32>,
    %c0_i32_70 = arith.constant 0 : i32
    %129 = arith.cmpi eq, %arg1, %c0_i32_70 : i32
    %130 = arith.extui %129 : i1 to i32
    %c0_i32_71 = arith.constant 0 : i32
    %131 = arith.cmpi ne, %130, %c0_i32_71 : i32
    scf.if %131 {
      %cst_145 = arith.constant 0.000000e+00 : f32
      %236 = vector.broadcast %cst_145 : f32 to vector<1x18x8xf32>
      %c0_146 = arith.constant 0 : index
      %c0_147 = arith.constant 0 : index
      %c0_148 = arith.constant 0 : index
      %237 = vector.load %arg13[%c0_146, %c0_147, %c0_148] : memref<10x18x8xf32, #tpu.memory_space<vmem>>, vector<1x18x8xf32>
      tpu.vector_store %arg13[%c0_146, %c0_147, %c0_148], %236 {strides = array<i32>} : memref<10x18x8xf32, #tpu.memory_space<vmem>>, vector<1x18x8xf32>,
    } else {
    }
    %c1_i32_72 = arith.constant 1 : i32
    %132 = arith.cmpi eq, %arg1, %c1_i32_72 : i32
    %133 = arith.extui %132 : i1 to i32
    %c0_i32_73 = arith.constant 0 : i32
    %134 = arith.cmpi ne, %133, %c0_i32_73 : i32
    scf.if %134 {
      %cst_145 = arith.constant 0.000000e+00 : f32
      %236 = vector.broadcast %cst_145 : f32 to vector<1x18x8xf32>
      %c9 = arith.constant 9 : index
      %c0_146 = arith.constant 0 : index
      %c0_147 = arith.constant 0 : index
      %237 = vector.load %arg13[%c9, %c0_146, %c0_147] : memref<10x18x8xf32, #tpu.memory_space<vmem>>, vector<1x18x8xf32>
      tpu.vector_store %arg13[%c9, %c0_146, %c0_147], %236 {strides = array<i32>} : memref<10x18x8xf32, #tpu.memory_space<vmem>>, vector<1x18x8xf32>,
    } else {
    }
    %c0_74 = arith.constant 0 : index
    %c0_75 = arith.constant 0 : index
    %c0_76 = arith.constant 0 : index
    %135 = vector.load %arg13[%c0_74, %c0_75, %c0_76] : memref<10x18x8xf32, #tpu.memory_space<vmem>>, vector<8x16x8xf32>
    %136 = vector.shape_cast %135 : vector<8x16x8xf32> to vector<128x8xf32>
    %137 = arith.truncf %136 : vector<128x8xf32> to vector<128x8xbf16>
    %c0_77 = arith.constant 0 : index
    %c0_78 = arith.constant 0 : index
    %138 = vector.load %arg7[%c0_77, %c0_78] : memref<72x8xf32, #tpu.memory_space<vmem>>, vector<8x8xf32>
    %139 = arith.truncf %138 : vector<8x8xf32> to vector<8x8xbf16>
    %cst_79 = arith.constant dense<0.000000e+00> : vector<128x8xf32>
    %140 = tpu.matmul %137, %139, %cst_79 {dimension_numbers = #tpu.dot_dimension_numbers<[1], [0], [0], [1], [0, 0, 1, 1], [], []>} : vector<128x8xbf16>, vector<8x8xbf16>, vector<128x8xf32> -> vector<128x8xf32>
    %c0_80 = arith.constant 0 : index
    %c1_81 = arith.constant 1 : index
    %c0_82 = arith.constant 0 : index
    %141 = vector.load %arg13[%c0_80, %c1_81, %c0_82] : memref<10x18x8xf32, #tpu.memory_space<vmem>>, vector<8x16x8xf32>
    %142 = vector.shape_cast %141 : vector<8x16x8xf32> to vector<128x8xf32>
    %143 = arith.truncf %142 : vector<128x8xf32> to vector<128x8xbf16>
    %c8_83 = arith.constant 8 : index
    %c0_84 = arith.constant 0 : index
    %144 = vector.load %arg7[%c8_83, %c0_84] : memref<72x8xf32, #tpu.memory_space<vmem>>, vector<8x8xf32>
    %145 = arith.truncf %144 : vector<8x8xf32> to vector<8x8xbf16>
    %cst_85 = arith.constant dense<0.000000e+00> : vector<128x8xf32>
    %146 = tpu.matmul %143, %145, %cst_85 {dimension_numbers = #tpu.dot_dimension_numbers<[1], [0], [0], [1], [0, 0, 1, 1], [], []>} : vector<128x8xbf16>, vector<8x8xbf16>, vector<128x8xf32> -> vector<128x8xf32>
    %147 = arith.addf %140, %146 : vector<128x8xf32>
    %c0_86 = arith.constant 0 : index
    %c2_87 = arith.constant 2 : index
    %c0_88 = arith.constant 0 : index
    %148 = vector.load %arg13[%c0_86, %c2_87, %c0_88] : memref<10x18x8xf32, #tpu.memory_space<vmem>>, vector<8x16x8xf32>
    %149 = vector.shape_cast %148 : vector<8x16x8xf32> to vector<128x8xf32>
    %150 = arith.truncf %149 : vector<128x8xf32> to vector<128x8xbf16>
    %c16_89 = arith.constant 16 : index
    %c0_90 = arith.constant 0 : index
    %151 = vector.load %arg7[%c16_89, %c0_90] : memref<72x8xf32, #tpu.memory_space<vmem>>, vector<8x8xf32>
    %152 = arith.truncf %151 : vector<8x8xf32> to vector<8x8xbf16>
    %cst_91 = arith.constant dense<0.000000e+00> : vector<128x8xf32>
    %153 = tpu.matmul %150, %152, %cst_91 {dimension_numbers = #tpu.dot_dimension_numbers<[1], [0], [0], [1], [0, 0, 1, 1], [], []>} : vector<128x8xbf16>, vector<8x8xbf16>, vector<128x8xf32> -> vector<128x8xf32>
    %154 = arith.addf %147, %153 : vector<128x8xf32>
    %c1_92 = arith.constant 1 : index
    %c0_93 = arith.constant 0 : index
    %c0_94 = arith.constant 0 : index
    %155 = vector.load %arg13[%c1_92, %c0_93, %c0_94] : memref<10x18x8xf32, #tpu.memory_space<vmem>>, vector<8x16x8xf32>
    %156 = vector.shape_cast %155 : vector<8x16x8xf32> to vector<128x8xf32>
    %157 = arith.truncf %156 : vector<128x8xf32> to vector<128x8xbf16>
    %c24_95 = arith.constant 24 : index
    %c0_96 = arith.constant 0 : index
    %158 = vector.load %arg7[%c24_95, %c0_96] : memref<72x8xf32, #tpu.memory_space<vmem>>, vector<8x8xf32>
    %159 = arith.truncf %158 : vector<8x8xf32> to vector<8x8xbf16>
    %cst_97 = arith.constant dense<0.000000e+00> : vector<128x8xf32>
    %160 = tpu.matmul %157, %159, %cst_97 {dimension_numbers = #tpu.dot_dimension_numbers<[1], [0], [0], [1], [0, 0, 1, 1], [], []>} : vector<128x8xbf16>, vector<8x8xbf16>, vector<128x8xf32> -> vector<128x8xf32>
    %161 = arith.addf %154, %160 : vector<128x8xf32>
    %c1_98 = arith.constant 1 : index
    %c1_99 = arith.constant 1 : index
    %c0_100 = arith.constant 0 : index
    %162 = vector.load %arg13[%c1_98, %c1_99, %c0_100] : memref<10x18x8xf32, #tpu.memory_space<vmem>>, vector<8x16x8xf32>
    %163 = vector.shape_cast %162 : vector<8x16x8xf32> to vector<128x8xf32>
    %164 = arith.truncf %163 : vector<128x8xf32> to vector<128x8xbf16>
    %c32_101 = arith.constant 32 : index
    %c0_102 = arith.constant 0 : index
    %165 = vector.load %arg7[%c32_101, %c0_102] : memref<72x8xf32, #tpu.memory_space<vmem>>, vector<8x8xf32>
    %166 = arith.truncf %165 : vector<8x8xf32> to vector<8x8xbf16>
    %cst_103 = arith.constant dense<0.000000e+00> : vector<128x8xf32>
    %167 = tpu.matmul %164, %166, %cst_103 {dimension_numbers = #tpu.dot_dimension_numbers<[1], [0], [0], [1], [0, 0, 1, 1], [], []>} : vector<128x8xbf16>, vector<8x8xbf16>, vector<128x8xf32> -> vector<128x8xf32>
    %168 = arith.addf %161, %167 : vector<128x8xf32>
    %c1_104 = arith.constant 1 : index
    %c2_105 = arith.constant 2 : index
    %c0_106 = arith.constant 0 : index
    %169 = vector.load %arg13[%c1_104, %c2_105, %c0_106] : memref<10x18x8xf32, #tpu.memory_space<vmem>>, vector<8x16x8xf32>
    %170 = vector.shape_cast %169 : vector<8x16x8xf32> to vector<128x8xf32>
    %171 = arith.truncf %170 : vector<128x8xf32> to vector<128x8xbf16>
    %c40 = arith.constant 40 : index
    %c0_107 = arith.constant 0 : index
    %172 = vector.load %arg7[%c40, %c0_107] : memref<72x8xf32, #tpu.memory_space<vmem>>, vector<8x8xf32>
    %173 = arith.truncf %172 : vector<8x8xf32> to vector<8x8xbf16>
    %cst_108 = arith.constant dense<0.000000e+00> : vector<128x8xf32>
    %174 = tpu.matmul %171, %173, %cst_108 {dimension_numbers = #tpu.dot_dimension_numbers<[1], [0], [0], [1], [0, 0, 1, 1], [], []>} : vector<128x8xbf16>, vector<8x8xbf16>, vector<128x8xf32> -> vector<128x8xf32>
    %175 = arith.addf %168, %174 : vector<128x8xf32>
    %c2_109 = arith.constant 2 : index
    %c0_110 = arith.constant 0 : index
    %c0_111 = arith.constant 0 : index
    %176 = vector.load %arg13[%c2_109, %c0_110, %c0_111] : memref<10x18x8xf32, #tpu.memory_space<vmem>>, vector<8x16x8xf32>
    %177 = vector.shape_cast %176 : vector<8x16x8xf32> to vector<128x8xf32>
    %178 = arith.truncf %177 : vector<128x8xf32> to vector<128x8xbf16>
    %c48 = arith.constant 48 : index
    %c0_112 = arith.constant 0 : index
    %179 = vector.load %arg7[%c48, %c0_112] : memref<72x8xf32, #tpu.memory_space<vmem>>, vector<8x8xf32>
    %180 = arith.truncf %179 : vector<8x8xf32> to vector<8x8xbf16>
    %cst_113 = arith.constant dense<0.000000e+00> : vector<128x8xf32>
    %181 = tpu.matmul %178, %180, %cst_113 {dimension_numbers = #tpu.dot_dimension_numbers<[1], [0], [0], [1], [0, 0, 1, 1], [], []>} : vector<128x8xbf16>, vector<8x8xbf16>, vector<128x8xf32> -> vector<128x8xf32>
    %182 = arith.addf %175, %181 : vector<128x8xf32>
    %c2_114 = arith.constant 2 : index
    %c1_115 = arith.constant 1 : index
    %c0_116 = arith.constant 0 : index
    %183 = vector.load %arg13[%c2_114, %c1_115, %c0_116] : memref<10x18x8xf32, #tpu.memory_space<vmem>>, vector<8x16x8xf32>
    %184 = vector.shape_cast %183 : vector<8x16x8xf32> to vector<128x8xf32>
    %185 = arith.truncf %184 : vector<128x8xf32> to vector<128x8xbf16>
    %c56 = arith.constant 56 : index
    %c0_117 = arith.constant 0 : index
    %186 = vector.load %arg7[%c56, %c0_117] : memref<72x8xf32, #tpu.memory_space<vmem>>, vector<8x8xf32>
    %187 = arith.truncf %186 : vector<8x8xf32> to vector<8x8xbf16>
    %cst_118 = arith.constant dense<0.000000e+00> : vector<128x8xf32>
    %188 = tpu.matmul %185, %187, %cst_118 {dimension_numbers = #tpu.dot_dimension_numbers<[1], [0], [0], [1], [0, 0, 1, 1], [], []>} : vector<128x8xbf16>, vector<8x8xbf16>, vector<128x8xf32> -> vector<128x8xf32>
    %189 = arith.addf %182, %188 : vector<128x8xf32>
    %c2_119 = arith.constant 2 : index
    %c2_120 = arith.constant 2 : index
    %c0_121 = arith.constant 0 : index
    %190 = vector.load %arg13[%c2_119, %c2_120, %c0_121] : memref<10x18x8xf32, #tpu.memory_space<vmem>>, vector<8x16x8xf32>
    %191 = vector.shape_cast %190 : vector<8x16x8xf32> to vector<128x8xf32>
    %192 = arith.truncf %191 : vector<128x8xf32> to vector<128x8xbf16>
    %c64 = arith.constant 64 : index
    %c0_122 = arith.constant 0 : index
    %193 = vector.load %arg7[%c64, %c0_122] : memref<72x8xf32, #tpu.memory_space<vmem>>, vector<8x8xf32>
    %194 = arith.truncf %193 : vector<8x8xf32> to vector<8x8xbf16>
    %cst_123 = arith.constant dense<0.000000e+00> : vector<128x8xf32>
    %195 = tpu.matmul %192, %194, %cst_123 {dimension_numbers = #tpu.dot_dimension_numbers<[1], [0], [0], [1], [0, 0, 1, 1], [], []>} : vector<128x8xbf16>, vector<8x8xbf16>, vector<128x8xf32> -> vector<128x8xf32>
    %196 = arith.addf %189, %195 : vector<128x8xf32>
    %c0_124 = arith.constant 0 : index
    %c0_125 = arith.constant 0 : index
    %197 = vector.load %arg8[%c0_124, %c0_125] : memref<1x8xf32, #tpu.memory_space<vmem>>, vector<1x8xf32>
    %198 = vector.broadcast %197 : vector<1x8xf32> to vector<128x8xf32>
    %199 = arith.addf %196, %198 : vector<128x8xf32>
    %200 = arith.mulf %199, %199 : vector<128x8xf32>
    %cst_126 = arith.constant dense<0.000000e+00> : vector<128xf32>
    %201 = vector.multi_reduction <add>, %200, %cst_126 [1] : vector<128x8xf32> to vector<128xf32>
    %202 = vector.shape_cast %201 : vector<128xf32> to vector<128x1xf32>
    %cst_127 = arith.constant 1.000000e-24 : f32
    %203 = vector.broadcast %cst_127 : f32 to vector<128x1xf32>
    %204 = arith.maximumf %202, %203 : vector<128x1xf32>
    %205 = math.rsqrt %204 : vector<128x1xf32>
    %206 = vector.broadcast %205 : vector<128x1xf32> to vector<128x8xf32>
    %207 = arith.mulf %199, %206 : vector<128x8xf32>
    %c0_128 = arith.constant 0 : index
    %c0_129 = arith.constant 0 : index
    %208 = vector.load %arg9[%c0_128, %c0_129] : memref<1x8xf32, #tpu.memory_space<vmem>>, vector<1x8xf32>
    %cst_130 = arith.constant 2.82842708 : f32
    %209 = vector.broadcast %cst_130 : f32 to vector<1x8xf32>
    %210 = arith.mulf %208, %209 : vector<1x8xf32>
    %211 = vector.broadcast %210 : vector<1x8xf32> to vector<128x8xf32>
    %212 = arith.mulf %207, %211 : vector<128x8xf32>
    %213 = arith.negf %212 : vector<128x8xf32>
    %214 = math.exp %213 : vector<128x8xf32>
    %cst_131 = arith.constant 1.000000e+00 : f32
    %215 = vector.broadcast %cst_131 : f32 to vector<128x8xf32>
    %216 = arith.addf %215, %214 : vector<128x8xf32>
    %217 = arith.divf %215, %216 : vector<128x8xf32>
    %218 = arith.mulf %212, %217 : vector<128x8xf32>
    %c2_i32_132 = arith.constant 2 : i32
    %219 = arith.addi %1, %c2_i32_132 : i32
    %c0_133 = arith.constant 0 : index
    %220 = arith.index_cast %219 : i32 to index
    %c1_134 = arith.constant 1 : index
    %c0_135 = arith.constant 0 : index
    %221 = vector.load %arg2[%c0_133, %220, %c1_134, %c0_135] : memref<1x20x18x4xf32, #tpu.memory_space<vmem>>, vector<1x8x16x4xf32>
    %222 = vector.shape_cast %221 : vector<1x8x16x4xf32> to vector<8x16x4xf32>
    %223 = vector.shape_cast %222 : vector<8x16x4xf32> to vector<128x4xf32>
    %224 = arith.truncf %223 : vector<128x4xf32> to vector<128x4xbf16>
    %c0_136 = arith.constant 0 : index
    %c0_137 = arith.constant 0 : index
    %225 = vector.load %arg10[%c0_136, %c0_137] : memref<4x8xf32, #tpu.memory_space<vmem>>, vector<4x8xf32>
    %226 = arith.truncf %225 : vector<4x8xf32> to vector<4x8xbf16>
    %cst_138 = arith.constant dense<0.000000e+00> : vector<128x8xf32>
    %227 = tpu.matmul %224, %226, %cst_138 {dimension_numbers = #tpu.dot_dimension_numbers<[1], [0], [0], [1], [0, 0, 1, 1], [], []>} : vector<128x4xbf16>, vector<4x8xbf16>, vector<128x8xf32> -> vector<128x8xf32>
    %c0_139 = arith.constant 0 : index
    %c0_140 = arith.constant 0 : index
    %228 = vector.load %arg11[%c0_139, %c0_140] : memref<1x8xf32, #tpu.memory_space<vmem>>, vector<1x8xf32>
    %229 = vector.broadcast %228 : vector<1x8xf32> to vector<128x8xf32>
    %230 = arith.addf %227, %229 : vector<128x8xf32>
    %231 = arith.addf %218, %230 : vector<128x8xf32>
    %232 = vector.shape_cast %231 : vector<128x8xf32> to vector<8x16x8xf32>
    %c0_141 = arith.constant 0 : index
    %c0_142 = arith.constant 0 : index
    %c0_143 = arith.constant 0 : index
    %c0_144 = arith.constant 0 : index
    %233 = vector.load %arg12[%c0_141, %c0_142, %c0_143, %c0_144] : memref<1x8x16x8xf32, #tpu.memory_space<vmem>>, vector<1x8x16x8xf32>
    %234 = vector.shape_cast %233 : vector<1x8x16x8xf32> to vector<8x16x8xf32>
    %235 = vector.shape_cast %232 : vector<8x16x8xf32> to vector<1x8x16x8xf32>
    tpu.vector_store %arg12[%c0_141, %c0_142, %c0_143, %c0_144], %235 {strides = array<i32>} : memref<1x8x16x8xf32, #tpu.memory_space<vmem>>, vector<1x8x16x8xf32>,
    return
  }
  func.func @transform_0(%arg0: i32, %arg1: i32) -> (i32, i32, i32, i32) {
    %c0_i32 = arith.constant 0 : i32
    %c0_i32_0 = arith.constant 0 : i32
    %c0_i32_1 = arith.constant 0 : i32
    %c0_i32_2 = arith.constant 0 : i32
    return %arg0, %c0_i32, %c0_i32_0, %c0_i32_1 : i32, i32, i32, i32
  }
  func.func @transform_1(%arg0: i32, %arg1: i32) -> (i32, i32) {
    %c0_i32 = arith.constant 0 : i32
    %c0_i32_0 = arith.constant 0 : i32
    %c0_i32_1 = arith.constant 0 : i32
    return %c0_i32, %c0_i32_0 : i32, i32
  }
  func.func @transform_2(%arg0: i32, %arg1: i32) -> (i32, i32) {
    %c0_i32 = arith.constant 0 : i32
    %c0_i32_0 = arith.constant 0 : i32
    %c0_i32_1 = arith.constant 0 : i32
    return %c0_i32, %c0_i32_0 : i32, i32
  }
  func.func @transform_3(%arg0: i32, %arg1: i32) -> (i32, i32) {
    %c0_i32 = arith.constant 0 : i32
    %c0_i32_0 = arith.constant 0 : i32
    %c0_i32_1 = arith.constant 0 : i32
    return %c0_i32, %c0_i32_0 : i32, i32
  }
  func.func @transform_4(%arg0: i32, %arg1: i32) -> (i32, i32, i32) {
    %c0_i32 = arith.constant 0 : i32
    %c0_i32_0 = arith.constant 0 : i32
    %c0_i32_1 = arith.constant 0 : i32
    return %arg0, %c0_i32, %c0_i32_0 : i32, i32, i32
  }
  func.func @transform_5(%arg0: i32, %arg1: i32) -> (i32, i32) {
    %c0_i32 = arith.constant 0 : i32
    %c0_i32_0 = arith.constant 0 : i32
    %c0_i32_1 = arith.constant 0 : i32
    return %c0_i32, %c0_i32_0 : i32, i32
  }
  func.func @transform_6(%arg0: i32, %arg1: i32) -> (i32, i32) {
    %c0_i32 = arith.constant 0 : i32
    %c0_i32_0 = arith.constant 0 : i32
    %c0_i32_1 = arith.constant 0 : i32
    return %c0_i32, %c0_i32_0 : i32, i32
  }
  func.func @transform_7(%arg0: i32, %arg1: i32) -> (i32, i32) {
    %c0_i32 = arith.constant 0 : i32
    %c0_i32_0 = arith.constant 0 : i32
    %c0_i32_1 = arith.constant 0 : i32
    return %c0_i32, %c0_i32_0 : i32, i32
  }
  func.func @transform_8(%arg0: i32, %arg1: i32) -> (i32, i32) {
    %c0_i32 = arith.constant 0 : i32
    %c0_i32_0 = arith.constant 0 : i32
    %c0_i32_1 = arith.constant 0 : i32
    return %c0_i32, %c0_i32_0 : i32, i32
  }
  func.func @transform_9(%arg0: i32, %arg1: i32) -> (i32, i32) {
    %c0_i32 = arith.constant 0 : i32
    %c0_i32_0 = arith.constant 0 : i32
    %c0_i32_1 = arith.constant 0 : i32
    return %c0_i32, %c0_i32_0 : i32, i32
  }
  func.func @transform_10(%arg0: i32, %arg1: i32) -> (i32, i32, i32, i32) {
    %c0_i32 = arith.constant 0 : i32
    %c0_i32_0 = arith.constant 0 : i32
    %c0_i32_1 = arith.constant 0 : i32
    return %arg0, %arg1, %c0_i32, %c0_i32_0 : i32, i32, i32, i32
  }
}

</mosaic_0001>

<bundles_post_ra>
// kernel: tpu_custom_call.1
= control target key start
LH: loop header
LB: loop body
LE: loop exit
PB: predicated region body
PF: predicated region fallthrough
CT: control target
= control target key end

     0   :  { %s5951_s13 = smov 0   ;;  %s5953_s14 = smov 0   ;;  %s7755_s0 = inlined_call_operand.vmem [shape: f32[2,20,18,4], index: 0, kind: input, shape index: {}]   ;;  %s7756_s1 = inlined_call_operand.vmem [shape: f32[36,8], index: 1, kind: input, shape index: {}]   ;;  %s7757_s2 = inlined_call_operand.vmem [shape: f32[1,8], index: 2, kind: input, shape index: {}]   ;;  %s7758_s3 = inlined_call_operand.vmem [shape: f32[1,8], index: 3, kind: input, shape index: {}]   ;;  %s7759_s4 = inlined_call_operand.vmem [shape: f32[2,1,16], index: 4, kind: input, shape index: {}]   ;;  %s7760_s5 = inlined_call_operand.vmem [shape: f32[72,8], index: 5, kind: input, shape index: {}]   ;;  %s7761_s6 = inlined_call_operand.vmem [shape: f32[1,8], index: 6, kind: input, shape index: {}]   ;;  %s7762_s7 = inlined_call_operand.vmem [shape: f32[1,8], index: 7, kind: input, shape index: {}]   ;;  %s7763_s8 = inlined_call_operand.vmem [shape: f32[4,8], index: 8, kind: input, shape index: {}]   ;;  %s7764_s9 = inlined_call_operand.vmem [shape: f32[1,8], index: 9, kind: input, shape index: {}]   ;;  %s7765_s10 = inlined_call_operand.vmem [shape: f32[2,16,16,8], index: 10, kind: output, shape index: {}]  }
   0x1   :  { %s5955_s15 = smov 0   ;;  %s5957_s16 = smov 0  }
   0x2   :  { %s5959_s17 = smov 0  }
   0x3 LB: > { %s29_s18 = sadd.s32 1, %s5882_s15  ;;  %s32_s19 = sadd.s32 1, %s5886_s16  ;;  %s5890_s17 = sphi %s5959_s17, %s20_s17   ;;  %s5886_s16 = sphi %s5957_s16, %s7864_s16   ;;  %s5882_s15 = sphi %s5955_s15, %s7863_s15   ;;  %s5878_s14 = sphi %s5953_s14, %s7862_s14   ;;  %s5874_s13 = sphi %s5951_s13, %s7861_s13  }
   0x4   : > { %p30_p0 = scmp.ge.s32.totalorder %s29_s18, 2  ;;  %p4641_p1 = scmp.ge.s32.totalorder %s5890_s17, 1 }
   0x5   : > { %p334_p2 = scmp.lt.s32.totalorder %s5890_s17, 5 }
   0x6   : > { %s7866_s18 = smov (%p30_p0, %s29_s18), 0  ;;  %s7868_s19 = smov (!%p30_p0, %s32_s19), %s5886_s16 }
   0x7   : > { %p335_p3 = pnand %p4641_p1, %p334_p2  ;;  %p34_p4 = scmp.ge.s32.totalorder %s7868_s19, 2 }
   0x9   : > { %s7870_s19 = smov (%p34_p4, %s7868_s19), 0  ;;  %338 = sbr.rel (%p335_p3) target bundleno = 1215 (0x4bf), region = 60 }
   0xe   : > { %v465_v0 = vld [vmem:[%s7756_s1 + $0x4] sm:$0xf]  ;;  %vm498_vm0 = vcmask 1041408   ;;  %p380_p5 = scmp.lt.s32.totalorder %s5878_s14, 1  ;;  %s4643_s22 = sshll.u32 %s5874_s13, 3  ;;  %vm467_vm1 = vcmask 31744  }
   0xf   : > { %v466_v1 = vpack.c.bf16 %v465_v0, %v465_v0  ;;  %p391_p6 = scmp.lt.s32.totalorder %s4643_s22, 15  ;;  %s4648_s23 = smul.u32 192, %s5874_s13  ;;  %v433_v2 = vld [vmem:[%s7756_s1] sm:$0xf]  ;;  %v992_v4 = vld [vmem:[%s7756_s1 + $0xc] sm:$0xf] }
  0x10   : > { %s7872_s14 = smov (!%p380_p5, %s5878_s14), 1  ;;  %v434_v3 = vpack.c.bf16 %v433_v2, %v433_v2  ;;  %v993_v6 = vpack.c.bf16 %v992_v4, %v992_v4  ;;  %v791_v8 = vld [vmem:[%s7756_s1 + $0x8] sm:$0xf]  ;;  %v1388_v21 = vld [vmem:[%s7756_s1 + $0x14] sm:$0xf]  ;;  %vm2200_vm2 = vcmask 64512  }
  0x11   : > { %5571 = vmatprep.subr.msk.bf16.mxu0 %vm498_vm0, %v466_v1  ;;  %v500_v5 = vsel %vm498_vm0, %v466_v1, 0  ;;  %s7874_s22 = smov (!%p391_p6, %s4643_s22), 15  ;;  %s5591_s28 = smul.u32 480, %s7872_s14  ;;  %v6029_v20 = vpack.c.bf16 %v791_v8, %v791_v8  ;;  %v6050_v31 = vpack.c.bf16 %v1388_v21, %v1388_v21  ;;  %vm2545_vm3 = vcmask 57344  }
  0x12   : > { %5192 = vmatpush3.bf16.msra.mxu0 %v500_v5  ;;  %s4645_s29 = sshll.u32 %s7872_s14, 5  ;;  %v646_v7 = vsel %vm498_vm0, %v434_v3, 0  ;;  %5573 = vmatprep.subr.msk.bf16.mxu1 %vm498_vm0, %v434_v3  ;;  %s4644_s30 = sshll.u32 %s7874_s22, 1  ;;  %v1025_v30 = vsel %vm498_vm0, %v993_v6, 0 }
  0x13   : > { %5572 = vmatprep.subr.msk.bf16.mxu0 %vm498_vm0, %v434_v3  ;;  %5570 = vmatpush3.bf16.msra.mxu1 %v646_v7  ;;  %s384_s20 = scalar_lea.vmem %s7755_s0, %s5591_s28  ;;  %s395_s21 = sadd.s32 %s4645_s29, %s4644_s30 }
  0x14   : > { %5575 = vmatprep.subr.msk.bf16.mxu1 %vm498_vm0, %v993_v6  ;;  %s4646_s24 = sshll.u32 %s395_s21, 3  ;;  %s6007_s25 = scalar_lea.vmem %s384_s20, %s4648_s23 }
  0x15   : > { %s6015_s29 = scalar_lea.vmem %s7765_s10, %s4646_s24  ;;  %v435_v9 = vld [vmem:[%s6007_s25 + $0x1] sm:$0xff]  ;;  %v436_v10 = vld [vmem:[%s6007_s25 + $0x9] sm:$0xff]  ;;  %v437_v11 = vld [vmem:[%s6007_s25 + $0x19] sm:$0xff]  ;;  %s387_s30 = scalar_lea.vmem %s7759_s4, %s7872_s14 }
  0x16   : > { %v455_v12 = vpack.c.bf16 %v436_v10, %v435_v9  ;;  %v438_v13 = vld [vmem:[%s6007_s25 + $0x21] sm:$0xff]  ;;  %v439_v14 = vld [vmem:[%s6007_s25 + $0x31] sm:$0xff]  ;;  %v440_v15 = vld [vmem:[%s6007_s25 + $0x39] sm:$0xff]  ;;  %v1421_v10 = vsel %vm498_vm0, %v6050_v31, 0  ;;  %s5892_s12 = smov 120   ;;  %p4884_p7 = scmp.ne.s32.totalorder %s5874_s13, 0 }
  0x17   : > { %v6023_v16 = vpack.c.bf16 %v438_v13, %v437_v11  ;;  %v6025_v17 = vpack.c.bf16 %v440_v15, %v439_v14  ;;  %v407_v18 = vld [vmem:[%s6007_s25 + $0x30] sm:$0xff]  ;;  %v408_v19 = vld [vmem:[%s6007_s25 + $0x38] sm:$0xff]  ;;  %v409_v23 = vld [vmem:[%s6007_s25 + $0x48] sm:$0xff] }
  0x18   : > { %5193 = vmatprep.mubr.msk.bf16.mxu0 %vm467_vm1, %v455_v12  ;;  %v6035_v22 = vpack.c.bf16 %v408_v19, %v407_v18  ;;  %v410_v24 = vld [vmem:[%s6007_s25 + $0x50] sm:$0xff]  ;;  %v411_v26 = vld [vmem:[%s6007_s25 + $0x60] sm:$0xff]  ;;  %v412_v29 = vld [vmem:[%s6007_s25 + $0x68] sm:$0xff]  ;;  %v824_v18 = vsel %vm498_vm0, %v6029_v20, 0 }
  0x19   : > { %5194 = vmatmul.mubr.msk.bf16.vlgmr.msra.gmra.mxu0 %vm467_vm1, %v6023_v16  ;;  %v6041_v25 = vpack.c.bf16 %v410_v24, %v409_v23  ;;  %v441_v27 = vld [vmem:[%s6007_s25 + $0x49] sm:$0xff]  ;;  %v442_v28 = vld [vmem:[%s6007_s25 + $0x51] sm:$0xff]  ;;  %v443_v32 = vld [vmem:[%s6007_s25 + $0x61] sm:$0xff]  ;;  %v6056_v34 = vpack.c.bf16 %v412_v29, %v411_v26 }
  0x1a   : > { %5214 = vmatpush3.bf16.msra.mxu0 %v646_v7  ;;  %5197 = vmatprep.mubr.msk.bf16.mxu0 %vm467_vm1, %v6025_v17  ;;  %v444_v33 = vld [vmem:[%s6007_s25 + $0x69] sm:$0xff]  ;;  %v6062_v35 = vpack.c.bf16 %v442_v28, %v441_v27  ;;  %v413_v36 = vld [vmem:[%s6007_s25 + $0x78] sm:$0xff]  ;;  %v414_v37 = vld [vmem:[%s6007_s25 + $0x80] sm:$0xff] }
  0x1b   : > { %5219 = vmatprep.mubr.msk.bf16.mxu1 %vm467_vm1, %v6035_v22  ;;  %5574 = vmatprep.subr.msk.bf16.mxu0 %vm498_vm0, %v6029_v20  ;;  %v6068_v38 = vpack.c.bf16 %v444_v33, %v443_v32  ;;  %v415_v39 = vld [vmem:[%s6007_s25 + $0x90] sm:$0xff]  ;;  %v416_v40 = vld [vmem:[%s6007_s25 + $0x98] sm:$0xff]  ;;  %v6074_v41 = vpack.c.bf16 %v414_v37, %v413_v36  ;;  %v446_v44 = vld [vmem:[%s6007_s25 + $0x81] sm:$0xff] }
  0x1c   : > { %5220 = vmatmul.mubr.msk.bf16.vlgmr.msra.gmra.mxu1 %vm467_vm1, %v6041_v25  ;;  %v6078_v42 = vpack.c.bf16 %v416_v40, %v415_v39  ;;  %v445_v43 = vld [vmem:[%s6007_s25 + $0x79] sm:$0xff]  ;;  %v447_v45 = vld [vmem:[%s6007_s25 + $0x91] sm:$0xff]  ;;  %v417_v48 = vld [vmem:[%s6007_s25 + $0xa8] sm:$0xff] }
  0x1d   : > { %5223 = vmatprep.mubr.msk.bf16.mxu1 %vm467_vm1, %v6056_v34  ;;  %5258 = vmatpush3.bf16.msra.mxu1 %v1025_v30  ;;  %v448_v46 = vld [vmem:[%s6007_s25 + $0x99] sm:$0xff]  ;;  %v6088_v47 = vpack.c.bf16 %v446_v44, %v445_v43  ;;  %v418_v49 = vld [vmem:[%s6007_s25 + $0xb0] sm:$0xff]  ;;  %v420_v52 = vld [vmem:[%s6007_s25 + $0xc8] sm:$0xff] }
  0x1e   : > { %5577 = vmatprep.subr.msk.bf16.mxu1 %vm498_vm0, %v6050_v31  ;;  %v6094_v50 = vpack.c.bf16 %v448_v46, %v447_v45  ;;  %v419_v51 = vld [vmem:[%s6007_s25 + $0xc0] sm:$0xff]  ;;  %v6098_v53 = vpack.c.bf16 %v418_v49, %v417_v48  ;;  %v449_v55 = vld [vmem:[%s6007_s25 + $0xa9] sm:$0xff]  ;;  %v450_v56 = vld [vmem:[%s6007_s25 + $0xb1] sm:$0xff] }
  0x1f   : > { %v6102_v54 = vpack.c.bf16 %v420_v52, %v419_v51  ;;  %v451_v57 = vld [vmem:[%s6007_s25 + $0xc1] sm:$0xff]  ;;  %v452_v58 = vld [vmem:[%s6007_s25 + $0xc9] sm:$0xff]  ;;  %v6112_v59 = vpack.c.bf16 %v450_v56, %v449_v55  ;;  %v421_v60 = vld [vmem:[%s6007_s25 + $0xd8] sm:$0xff] }
  0x20   : > { %v422_v61 = vld [vmem:[%s6007_s25 + $0xe0] sm:$0xff]  ;;  %v6118_v62 = vpack.c.bf16 %v452_v58, %v451_v57  ;;  %v405_v0 = vld [vmem:[%s6007_s25 + $0x18] sm:$0xff]  ;;  %v404_v5 = vld [vmem:[%s6007_s25 + $0x8] sm:$0xff] }
  0x21   : > { %5198 = vmatmul.mubr.msk.bf16.gmra.mxu0 %vm467_vm1, %v6062_v35  ;;  %v6120_v63 = vpack.c.bf16 %v422_v61, %v421_v60  ;;  %v406_v1 = vld [vmem:[%s6007_s25 + $0x20] sm:$0xff]  ;;  %v1787_v9 = vld [vmem:[%s7756_s1 + $0x1c] sm:$0xf]  ;;  %v762_v13 = vld [vmem:[%s6007_s25 + $0xa] sm:$0xff] }
  0x22   : > { %5201 = vmatprep.mubr.msk.bf16.mxu0 %vm467_vm1, %v6068_v38  ;;  %v453_v2 = vld [vmem:[%s6007_s25 + $0xd9] sm:$0xff]  ;;  %v454_v3 = vld [vmem:[%s6007_s25 + $0xe1] sm:$0xff]  ;;  %v424_v6 = vpack.c.bf16 %v406_v1, %v405_v0  ;;  %v6145_v11 = vpack.c.bf16 %v1787_v9, %v1787_v9  ;;  %v1190_v14 = vld [vmem:[%s7756_s1 + $0x10] sm:$0xf] }
  0x23   : > { %v403_v4 = vld [vmem:[%s6007_s25] sm:$0xff]  ;;  %v6134_v7 = vpack.c.bf16 %v454_v3, %v453_v2  ;;  %v1191_v19 = vpack.c.bf16 %v1190_v14, %v1190_v14  ;;  %v765_v24 = vld [vmem:[%s6007_s25 + $0x32] sm:$0xff]  ;;  %v767_v31 = vld [vmem:[%s6007_s25 + $0x4a] sm:$0xff] }
  0x24   : > { %5224 = vmatmul.mubr.msk.bf16.gmra.mxu1 %vm467_vm1, %v6074_v41  ;;  %v423_v8 = vpack.c.bf16 %v404_v5, %v403_v4  ;;  %v761_v12 = vld [vmem:[%s6007_s25 + $0x2] sm:$0xff]  ;;  %v763_v21 = vld [vmem:[%s6007_s25 + $0x1a] sm:$0xff]  ;;  %v768_v32 = vld [vmem:[%s6007_s25 + $0x52] sm:$0xff]  ;;  %v1820_v2 = vsel %vm498_vm0, %v6145_v11, 0 }
  0x25   : > { %5227 = vmatprep.mubr.msk.bf16.mxu1 %vm467_vm1, %v6078_v42  ;;  %v781_v15 = vpack.c.bf16 %v762_v13, %v761_v12  ;;  %v764_v23 = vld [vmem:[%s6007_s25 + $0x22] sm:$0xff]  ;;  %v766_v26 = vld [vmem:[%s6007_s25 + $0x3a] sm:$0xff]  ;;  %v1223_v29 = vsel %vm498_vm0, %v1191_v19, 0  ;;  %v770_v36 = vld [vmem:[%s6007_s25 + $0x6a] sm:$0xff]  ;;  %v6187_v37 = vpack.c.bf16 %v768_v32, %v767_v31 }
  0x26   : > { %v1589_v20 = vld [vmem:[%s7756_s1 + $0x18] sm:$0xf]  ;;  %v782_v27 = vpack.c.bf16 %v764_v23, %v763_v21  ;;  %v6174_v28 = vpack.c.bf16 %v766_v26, %v765_v24  ;;  %v769_v33 = vld [vmem:[%s6007_s25 + $0x62] sm:$0xff]  ;;  %v4699_v48 = vld [vmem:[%s6007_s25 + $0xf0] sm:$0xff] }
  0x27   : > { %v1590_v30 = vpack.c.bf16 %v1589_v20, %v1589_v20  ;;  %v6191_v39 = vpack.c.bf16 %v770_v36, %v769_v33  ;;  %v771_v40 = vld [vmem:[%s6007_s25 + $0x7a] sm:$0xff]  ;;  %v772_v43 = vld [vmem:[%s6007_s25 + $0x82] sm:$0xff]  ;;  %v773_v44 = vld [vmem:[%s6007_s25 + $0x92] sm:$0xff] }
  0x28   : > { %v774_v45 = vld [vmem:[%s6007_s25 + $0x9a] sm:$0xff]  ;;  %v6203_v46 = vpack.c.bf16 %v772_v43, %v771_v40  ;;  %v775_v55 = vld [vmem:[%s6007_s25 + $0xaa] sm:$0xff]  ;;  %v776_v56 = vld [vmem:[%s6007_s25 + $0xb2] sm:$0xff] }
  0x29   : > { %5202 = vmatmul.mubr.msk.bf16.gmra.mxu0 %vm467_vm1, %v6088_v47  ;;  %v4700_v49 = vld [vmem:[%s6007_s25 + $0xf8] sm:$0xff]  ;;  %v6209_v51 = vpack.c.bf16 %v774_v45, %v773_v44  ;;  %v777_v57 = vld [vmem:[%s6007_s25 + $0xc2] sm:$0xff]  ;;  %v778_v58 = vld [vmem:[%s6007_s25 + $0xca] sm:$0xff]  ;;  %v6223_v60 = vpack.c.bf16 %v776_v56, %v775_v55  ;;  %v1622_v5 = vsel %vm498_vm0, %v1590_v30, 0 }
  0x2a   : > { %5205 = vmatprep.mubr.msk.bf16.mxu0 %vm467_vm1, %v6094_v50  ;;  %v6211_v52 = vpack.c.bf16 %v4700_v49, %v4699_v48  ;;  %v6226_v61 = vpack.c.bf16 %v778_v58, %v777_v57  ;;  %v779_v0 = vld [vmem:[%s6007_s25 + $0xda] sm:$0xff]  ;;  %v780_v1 = vld [vmem:[%s6007_s25 + $0xe2] sm:$0xff] }
  0x2b   : > { %v6238_v3 = vpack.c.bf16 %v780_v1, %v779_v0  ;;  %v1985_v4 = vld [vmem:[%s7756_s1 + $0x20] sm:$0xf] }
  0x2c   : > { %5228 = vmatmul.mubr.msk.bf16.gmra.mxu1 %vm467_vm1, %v6098_v53 }
  0x2d   : > { %5231 = vmatprep.mubr.msk.bf16.mxu1 %vm467_vm1, %v6102_v54 }
  0x31   : > { %5206 = vmatmul.mubr.msk.bf16.gmra.mxu0 %vm467_vm1, %v6112_v59 }
  0x32   : > { %5209 = vmatprep.mubr.msk.bf16.mxu0 %vm467_vm1, %v6118_v62 }
  0x34   : > { %5232 = vmatmul.mubr.msk.bf16.gmra.mxu1 %vm467_vm1, %v6120_v63 }
  0x35   : > { %5259 = vmatprep.mubr.msk.bf16.mxu1 %vm467_vm1, %v424_v6 }
  0x39   : > { %5210 = vmatmul.mubr.msk.bf16.gmra.mxu0 %vm467_vm1, %v6134_v7 }
  0x3a   : > { %5215 = vmatprep.mubr.msk.bf16.mxu0 %vm467_vm1, %v423_v8  ;;  %v4760_v8 = vld [vmem:[%s6007_s25 + $0xfa] sm:$0xff] }
  0x3c   : > { %5260 = vmatmul.mubr.msk.bf16.vlgmr.msra.gmra.mxu1 %vm467_vm1, %v6035_v22 }
  0x3d   : > { %5263 = vmatprep.mubr.msk.bf16.mxu1 %vm467_vm1, %v6041_v25  ;;  %5302 = vmatpush3.bf16.msra.mxu1 %v1421_v10  ;;  %v4729_v10 = vld [vmem:[%s6007_s25 + $0xf1] sm:$0xff] }
  0x3e   : > { %5579 = vmatprep.subr.msk.bf16.mxu1 %vm498_vm0, %v6145_v11  ;;  %v4730_v11 = vld [vmem:[%s6007_s25 + $0xf9] sm:$0xff] }
  0x3f   : > { %v1189_v12 = vpack.c.bf16 %v4730_v11, %v4729_v10 }
  0x41   : > { %5216 = vmatmul.mubr.msk.bf16.vlgmr.msra.gmra.mxu0 %vm467_vm1, %v424_v6  ;;  %v1986_v6 = vpack.c.bf16 %v1985_v4, %v1985_v4 }
  0x42   : > { %5236 = vmatpush3.bf16.msra.mxu0 %v824_v18  ;;  %5237 = vmatprep.mubr.msk.bf16.mxu0 %vm467_vm1, %v781_v15 }
  0x43   : > { %5576 = vmatprep.subr.msk.bf16.mxu0 %vm498_vm0, %v1191_v19 }
  0x44   : > { %5264 = vmatmul.mubr.msk.bf16.gmra.mxu1 %vm467_vm1, %v6056_v34 }
  0x45   : > { %5267 = vmatprep.mubr.msk.bf16.mxu1 %vm467_vm1, %v6074_v41 }
  0x49   : > { %5238 = vmatmul.mubr.msk.bf16.vlgmr.msra.gmra.mxu0 %vm467_vm1, %v782_v27 }
  0x4a   : > { %5280 = vmatpush3.bf16.msra.mxu0 %v1223_v29  ;;  %5241 = vmatprep.mubr.msk.bf16.mxu0 %vm467_vm1, %v6174_v28 }
  0x4b   : > { %5578 = vmatprep.subr.msk.bf16.mxu0 %vm498_vm0, %v1590_v30 }
  0x4c   : > { %5268 = vmatmul.mubr.msk.bf16.gmra.mxu1 %vm467_vm1, %v6078_v42 }
  0x4d   : > { %5271 = vmatprep.mubr.msk.bf16.mxu1 %vm467_vm1, %v6098_v53 }
  0x51   : > { %5242 = vmatmul.mubr.msk.bf16.gmra.mxu0 %vm467_vm1, %v6187_v37 }
  0x52   : > { %5245 = vmatprep.mubr.msk.bf16.mxu0 %vm467_vm1, %v6191_v39 }
  0x54   : > { %5272 = vmatmul.mubr.msk.bf16.gmra.mxu1 %vm467_vm1, %v6102_v54 }
  0x55   : > { %5275 = vmatprep.mubr.msk.bf16.mxu1 %vm467_vm1, %v6120_v63 }
  0x59   : > { %5246 = vmatmul.mubr.msk.bf16.gmra.mxu0 %vm467_vm1, %v6203_v46 }
  0x5a   : > { %5249 = vmatprep.mubr.msk.bf16.mxu0 %vm467_vm1, %v6209_v51 }
  0x5c   : > { %5276 = vmatmul.mubr.msk.bf16.gmra.mxu1 %vm467_vm1, %v6211_v52 }
  0x5d   : > { %5303 = vmatprep.mubr.msk.bf16.mxu1 %vm467_vm1, %v782_v27 }
  0x61   : > { %5250 = vmatmul.mubr.msk.bf16.gmra.mxu0 %vm467_vm1, %v6223_v60 }
  0x62   : > { %5253 = vmatprep.mubr.msk.bf16.mxu0 %vm467_vm1, %v6226_v61 }
  0x64   : > { %5304 = vmatmul.mubr.msk.bf16.vlgmr.msra.gmra.mxu1 %vm467_vm1, %v6174_v28 }
  0x65   : > { %5307 = vmatprep.mubr.msk.bf16.mxu1 %vm467_vm1, %v6187_v37  ;;  %5346 = vmatpush3.bf16.msra.mxu1 %v1820_v2 }
  0x69   : > { %5254 = vmatmul.mubr.msk.bf16.gmra.mxu0 %vm467_vm1, %v6238_v3 }
  0x6a   : > { %5281 = vmatprep.mubr.msk.bf16.mxu0 %vm467_vm1, %v6023_v16  ;;  %v4759_v16 = vld [vmem:[%s6007_s25 + $0xf2] sm:$0xff] }
  0x6b   : > { %v1387_v9 = vpack.c.bf16 %v4760_v8, %v4759_v16 }
  0x6c   : > { %5308 = vmatmul.mubr.msk.bf16.gmra.mxu1 %vm467_vm1, %v6191_v39 }
  0x6d   : > { %5311 = vmatprep.mubr.msk.bf16.mxu1 %vm467_vm1, %v6203_v46 }
  0x71   : > { %5282 = vmatmul.mubr.msk.bf16.vlgmr.msra.gmra.mxu0 %vm467_vm1, %v6025_v17 }
  0x72   : > { %5324 = vmatpush3.bf16.msra.mxu0 %v1622_v5  ;;  %5285 = vmatprep.mubr.msk.bf16.mxu0 %vm467_vm1, %v6062_v35 }
  0x73   : > { %5580 = vmatprep.subr.msk.bf16.mxu0 %vm498_vm0, %v1986_v6 }
  0x74   : > { %5312 = vmatmul.mubr.msk.bf16.gmra.mxu1 %vm467_vm1, %v6209_v51 }
  0x75   : > { %5315 = vmatprep.mubr.msk.bf16.mxu1 %vm467_vm1, %v6223_v60 }
  0x79   : > { %5286 = vmatmul.mubr.msk.bf16.gmra.mxu0 %vm467_vm1, %v6068_v38 }
  0x7a   : > { %5289 = vmatprep.mubr.msk.bf16.mxu0 %vm467_vm1, %v6088_v47 }
  0x7c   : > { %5316 = vmatmul.mubr.msk.bf16.gmra.mxu1 %vm467_vm1, %v6226_v61 }
  0x7d   : > { %5319 = vmatprep.mubr.msk.bf16.mxu1 %vm467_vm1, %v6238_v3 }
  0x81   : > { %5290 = vmatmul.mubr.msk.bf16.gmra.mxu0 %vm467_vm1, %v6094_v50 }
  0x82   : > { %5293 = vmatprep.mubr.msk.bf16.mxu0 %vm467_vm1, %v6112_v59 }
  0x84   : > { %5320 = vmatmul.mubr.msk.bf16.gmra.mxu1 %vm467_vm1, %v1387_v9 }
  0x85   : > { %5347 = vmatprep.mubr.msk.bf16.mxu1 %vm467_vm1, %v6025_v17  ;;  %v2018_v17 = vsel %vm498_vm0, %v1986_v6, 0 }
  0x89   : > { %5294 = vmatmul.mubr.msk.bf16.gmra.mxu0 %vm467_vm1, %v6118_v62 }
  0x8a   : > { %5297 = vmatprep.mubr.msk.bf16.mxu0 %vm467_vm1, %v6134_v7 }
  0x8c   : > { %5348 = vmatmul.mubr.msk.bf16.vlgmr.msra.gmra.mxu1 %vm467_vm1, %v6062_v35  ;;  %v4791_v35 = vld [vmem:[%s6007_s25 + $0x108] sm:$0xff] }
  0x8d   : > { %5351 = vmatprep.mubr.msk.bf16.mxu1 %vm467_vm1, %v6068_v38  ;;  %v4792_v38 = vld [vmem:[%s6007_s25 + $0x110] sm:$0xff] }
  0x91   : > { %5298 = vmatmul.mubr.msk.bf16.gmra.mxu0 %vm467_vm1, %v1189_v12 }
  0x92   : > { %5325 = vmatprep.mubr.msk.bf16.mxu0 %vm467_vm1, %v6035_v22  ;;  %v4821_v22 = vld [vmem:[%s6007_s25 + $0x109] sm:$0xff] }
  0x94   : > { %5352 = vmatmul.mubr.msk.bf16.gmra.mxu1 %vm467_vm1, %v6088_v47  ;;  %v4851_v47 = vld [vmem:[%s6007_s25 + $0x10a] sm:$0xff] }
  0x95   : > { %5355 = vmatprep.mubr.msk.bf16.mxu1 %vm467_vm1, %v6094_v50  ;;  %v4852_v50 = vld [vmem:[%s6007_s25 + $0x112] sm:$0xff] }
  0x99   : > { %5326 = vmatmul.mubr.msk.bf16.vlgmr.msra.gmra.mxu0 %vm467_vm1, %v6041_v25  ;;  %v4822_v25 = vld [vmem:[%s6007_s25 + $0x111] sm:$0xff] }
  0x9a   : > { %5368 = vmatpush3.bf16.msra.mxu0 %v2018_v17  ;;  %5329 = vmatprep.mubr.msk.bf16.mxu0 %vm467_vm1, %v6056_v34  ;;  %v1786_v34 = vpack.c.bf16 %v4822_v25, %v4821_v22 }
  0x9c   : > { %5356 = vmatmul.mubr.msk.bf16.gmra.mxu1 %vm467_vm1, %v6112_v59 }
  0x9d   : > { %5359 = vmatprep.mubr.msk.bf16.mxu1 %vm467_vm1, %v6118_v62  ;;  %v1984_v62 = vpack.c.bf16 %v4852_v50, %v4851_v47 }
  0xa1   : > { %5330 = vmatmul.mubr.msk.bf16.gmra.mxu0 %vm467_vm1, %v6074_v41  ;;  %v1588_v41 = vpack.c.bf16 %v4792_v38, %v4791_v35 }
  0xa2   : > { %5333 = vmatprep.mubr.msk.bf16.mxu0 %vm467_vm1, %v6078_v42 }
  0xa4   : > { %5360 = vmatmul.mubr.msk.bf16.gmra.mxu1 %vm467_vm1, %v6134_v7 }
  0xa5   : > { %5363 = vmatprep.mubr.msk.bf16.mxu1 %vm467_vm1, %v1189_v12 }
  0xa9   : > { %5334 = vmatmul.mubr.msk.bf16.gmra.mxu0 %vm467_vm1, %v6098_v53 }
  0xaa   : > { %5337 = vmatprep.mubr.msk.bf16.mxu0 %vm467_vm1, %v6102_v54 }
  0xac   : > { %5364 = vmatmul.mubr.msk.bf16.gmra.mxu1 %vm467_vm1, %v1786_v34 }
  0xb1   : > { %5338 = vmatmul.mubr.msk.bf16.gmra.mxu0 %vm467_vm1, %v6120_v63 }
  0xb2   : > { %5341 = vmatprep.mubr.msk.bf16.mxu0 %vm467_vm1, %v6211_v52 }
  0xb9   : > { %5342 = vmatmul.mubr.msk.bf16.gmra.mxu0 %vm467_vm1, %v1588_v41 }
  0xba   : > { %5369 = vmatprep.mubr.msk.bf16.mxu0 %vm467_vm1, %v6174_v28 }
  0xc1   : > { %5370 = vmatmul.mubr.msk.bf16.vlgmr.msra.gmra.mxu0 %vm467_vm1, %v6187_v37 }
  0xc2   : > { %5373 = vmatprep.mubr.msk.bf16.mxu0 %vm467_vm1, %v6191_v39 }
  0xc9   : > { %5374 = vmatmul.mubr.msk.bf16.gmra.mxu0 %vm467_vm1, %v6203_v46 }
  0xca   : > { %5377 = vmatprep.mubr.msk.bf16.mxu0 %vm467_vm1, %v6209_v51 }
  0xd1   : > { %5378 = vmatmul.mubr.msk.bf16.gmra.mxu0 %vm467_vm1, %v6223_v60 }
  0xd2   : > { %5381 = vmatprep.mubr.msk.bf16.mxu0 %vm467_vm1, %v6226_v61 }
  0xd9   : > { %v5195_v42 = vpop.f32.mrf.mxu0  ;;  %5382 = vmatmul.mubr.msk.bf16.gmra.mxu0 %vm467_vm1, %v6238_v3 }
  0xda   : > { %5385 = vmatprep.mubr.msk.bf16.mxu0 %vm467_vm1, %v1387_v9 }
  0xdb   : > { %v536_v53 = vpop.f32.mrf.mxu0 }
  0xdc   : > { %v5221_v54 = vpop.f32.mrf.mxu1 }
  0xdd   : > { %v5196_v59 = vpop.f32.mrf.mxu0 }
  0xde   : > { %v698_v63 = vpop.f32.mrf.mxu1 }
  0xdf   : > { %v539_v7 = vpop.f32.mrf.mxu0 }
  0xe0   : > { %v5222_v13 = vpop.f32.mrf.mxu1 }
  0xe1   : > { %v5199_v14 = vpop.f32.mrf.mxu0  ;;  %5386 = vmatmul.mubr.msk.bf16.gmra.mxu0 %vm467_vm1, %v1984_v62 }
  0xe2   : > { %v6347_v15 = vadd.f32 %v5221_v54, %v5199_v14  ;;  %v701_v18 = vpop.f32.mrf.mxu1 }
  0xe3   : > { %v552_v19 = vpop.f32.mrf.mxu0 }
  0xe4   : > { %v6349_v21 = vadd.f32 %v698_v63, %v552_v19  ;;  %v5225_v23 = vpop.f32.mrf.mxu1 }
  0xe5   : > { %v5200_v24 = vpop.f32.mrf.mxu0 }
  0xe6   : > { %v6351_v26 = vadd.f32 %v5222_v13, %v5200_v24  ;;  %v714_v20 = vpop.f32.mrf.mxu1 }
  0xe7   : > { %v555_v27 = vpop.f32.mrf.mxu0 }
  0xe8   : > { %v6353_v28 = vadd.f32 %v701_v18, %v555_v27  ;;  %v5226_v29 = vpop.f32.mrf.mxu1 }
  0xe9   : > { %v5203_v30 = vpop.f32.mrf.mxu0 }
  0xea   : > { %v6355_v31 = vadd.f32 %v5225_v23, %v5203_v30  ;;  %v717_v32 = vpop.f32.mrf.mxu1 }
  0xeb   : > { %v568_v33 = vpop.f32.mrf.mxu0 }
  0xec   : > { %v6357_v36 = vadd.f32 %v714_v20, %v568_v33  ;;  %v5229_v37 = vpop.f32.mrf.mxu1 }
  0xed   : > { %v5204_v39 = vpop.f32.mrf.mxu0 }
  0xee   : > { %v6359_v40 = vadd.f32 %v5226_v29, %v5204_v39  ;;  %v730_v43 = vpop.f32.mrf.mxu1 }
  0xef   : > { %v571_v44 = vpop.f32.mrf.mxu0 }
  0xf0   : > { %v6361_v45 = vadd.f32 %v717_v32, %v571_v44  ;;  %v5230_v46 = vpop.f32.mrf.mxu1 }
  0xf1   : > { %v5207_v48 = vpop.f32.mrf.mxu0 }
  0xf2   : > { %v6363_v49 = vadd.f32 %v5229_v37, %v5207_v48  ;;  %v733_v51 = vpop.f32.mrf.mxu1 }
  0xf3   : > { %v584_v52 = vpop.f32.mrf.mxu0 }
  0xf4   : > { %v6365_v55 = vadd.f32 %v730_v43, %v584_v52  ;;  %v5233_v56 = vpop.f32.mrf.mxu1 }
  0xf5   : > { %v5208_v57 = vpop.f32.mrf.mxu0 }
  0xf6   : > { %v6367_v58 = vadd.f32 %v5230_v46, %v5208_v57  ;;  %v746_v60 = vpop.f32.mrf.mxu1 }
  0xf7   : > { %v587_v61 = vpop.f32.mrf.mxu0 }
  0xf8   : > { %v6369_v0 = vadd.f32 %v733_v51, %v587_v61  ;;  %v5234_v1 = vpop.f32.mrf.mxu1 }
  0xf9   : > { %v5211_v2 = vpop.f32.mrf.mxu0 }
  0xfa   : > { %v6371_v3 = vadd.f32 %v5233_v56, %v5211_v2  ;;  %v749_v4 = vpop.f32.mrf.mxu1 }
  0xfb   : > { %v600_v5 = vpop.f32.mrf.mxu0 }
  0xfc   : > { %v6373_v6 = vadd.f32 %v746_v60, %v600_v5  ;;  %v5261_v16 = vpop.f32.mrf.mxu1 }
  0xfd   : > { %v5212_v8 = vpop.f32.mrf.mxu0 }
  0xfe   : > { %v6375_v9 = vadd.f32 %v5234_v1, %v5212_v8  ;;  %v1061_v10 = vpop.f32.mrf.mxu1 }
  0xff   : > { %v603_v11 = vpop.f32.mrf.mxu0 }
 0x100   : > { %v6377_v12 = vadd.f32 %v749_v4, %v603_v11  ;;  %v5262_v17 = vpop.f32.mrf.mxu1 }
 0x101   : > { %v5217_v22 = vpop.f32.mrf.mxu0 }
 0x102   : > { %v691_v25 = vadd.f32 %v5217_v22, %v5195_v42  ;;  %v1064_v34 = vpop.f32.mrf.mxu1 }
 0x103   : > { %v682_v35 = vpop.f32.mrf.mxu0 }
 0x104   : > { %v683_v38 = vadd.f32 %v682_v35, %v536_v53  ;;  %v5265_v41 = vpop.f32.mrf.mxu1 }
 0x105   : > { %v5218_v47 = vpop.f32.mrf.mxu0 }
 0x106   : > { %v694_v50 = vadd.f32 %v5218_v47, %v5196_v59  ;;  %v1077_v54 = vpop.f32.mrf.mxu1 }
 0x107   : > { %v685_v62 = vpop.f32.mrf.mxu0 }
 0x108   : > { %v686_v63 = vadd.f32 %v685_v62, %v539_v7  ;;  %v5266_v13 = vpop.f32.mrf.mxu1 }
 0x109   : > { %v5239_v14 = vpop.f32.mrf.mxu0 }
 0x10a   : > { %v941_v18 = vadd.f32 %v5239_v14, %v691_v25  ;;  %v1080_v19 = vpop.f32.mrf.mxu1 }
 0x10b   : > { %v860_v23 = vpop.f32.mrf.mxu0 }
 0x10c   : > { %v939_v24 = vadd.f32 %v860_v23, %v683_v38  ;;  %v6379_v20 = vadd.f32 %v5261_v16, %v941_v18  ;;  %v5269_v27 = vpop.f32.mrf.mxu1 }
 0x10d   : > { %v5240_v29 = vpop.f32.mrf.mxu0 }
 0x10e   : > { %v942_v42 = vadd.f32 %v5240_v29, %v694_v50  ;;  %v6381_v30 = vadd.f32 %v1061_v10, %v939_v24  ;;  %v1093_v53 = vpop.f32.mrf.mxu1 }
 0x10f   : > { %v863_v32 = vpop.f32.mrf.mxu0 }
 0x110   : > { %v940_v33 = vadd.f32 %v863_v32, %v686_v63  ;;  %v6383_v59 = vadd.f32 %v5262_v17, %v942_v42  ;;  %v5270_v37 = vpop.f32.mrf.mxu1 }
 0x111   : > { %v5243_v7 = vpop.f32.mrf.mxu0 }
 0x112   : > { %v945_v39 = vadd.f32 %v5243_v7, %v6347_v15  ;;  %v6386_v43 = vadd.f32 %v1064_v34, %v940_v33  ;;  %v1096_v44 = vpop.f32.mrf.mxu1 }
 0x113   : > { %v876_v46 = vpop.f32.mrf.mxu0 }
 0x114   : > { %v943_v48 = vadd.f32 %v876_v46, %v6349_v21  ;;  %v6389_v51 = vadd.f32 %v5265_v41, %v945_v39  ;;  %v5273_v52 = vpop.f32.mrf.mxu1 }
 0x115   : > { %v5244_v56 = vpop.f32.mrf.mxu0 }
 0x116   : > { %v946_v57 = vadd.f32 %v5244_v56, %v6351_v26  ;;  %v6392_v60 = vadd.f32 %v1077_v54, %v943_v48  ;;  %v1109_v61 = vpop.f32.mrf.mxu1 }
 0x117   : > { %v879_v1 = vpop.f32.mrf.mxu0 }
 0x118   : > { %v944_v2 = vadd.f32 %v879_v1, %v6353_v28  ;;  %v6395_v4 = vadd.f32 %v5266_v13, %v946_v57  ;;  %v5274_v15 = vpop.f32.mrf.mxu1 }
 0x119   : > { %v5247_v5 = vpop.f32.mrf.mxu0 }
 0x11a   : > { %v949_v16 = vadd.f32 %v5247_v5, %v6355_v31  ;;  %v6398_v8 = vadd.f32 %v1080_v19, %v944_v2  ;;  %v1112_v21 = vpop.f32.mrf.mxu1 }
 0x11b   : > { %v892_v10 = vpop.f32.mrf.mxu0 }
 0x11c   : > { %v947_v11 = vadd.f32 %v892_v10, %v6357_v36  ;;  %v6401_v17 = vadd.f32 %v5269_v27, %v949_v16  ;;  %v5277_v26 = vpop.f32.mrf.mxu1 }
 0x11d   : > { %v5248_v22 = vpop.f32.mrf.mxu0 }
 0x11e   : > { %v950_v25 = vadd.f32 %v5248_v22, %v6359_v40  ;;  %v6404_v34 = vadd.f32 %v1093_v53, %v947_v11  ;;  %v1125_v28 = vpop.f32.mrf.mxu1 }
 0x11f   : > { %v895_v35 = vpop.f32.mrf.mxu0 }
 0x120   : > { %v948_v38 = vadd.f32 %v895_v35, %v6361_v45  ;;  %v6407_v41 = vadd.f32 %v5270_v37, %v950_v25  ;;  %v5278_v31 = vpop.f32.mrf.mxu1 }
 0x121   : > { %v5251_v47 = vpop.f32.mrf.mxu0 }
 0x122   : > { %v953_v50 = vadd.f32 %v5251_v47, %v6363_v49  ;;  %v6410_v54 = vadd.f32 %v1096_v44, %v948_v38  ;;  %v1128_v36 = vpop.f32.mrf.mxu1 }
 0x123   : > { %v908_v62 = vpop.f32.mrf.mxu0 }
 0x124   : > { %v951_v63 = vadd.f32 %v908_v62, %v6365_v55  ;;  %v6413_v13 = vadd.f32 %v5273_v52, %v953_v50  ;;  %v6415_v40 = vpop.f32.mrf.mxu1 }
 0x125   : > { %v5252_v14 = vpop.f32.mrf.mxu0 }
 0x126   : > { %v954_v18 = vadd.f32 %v5252_v14, %v6367_v58  ;;  %v6418_v45 = vadd.f32 %v1109_v61, %v951_v63  ;;  %v6420_v19 = vpop.f32.mrf.mxu1 }
 0x127   : > { %v911_v23 = vpop.f32.mrf.mxu0 }
 0x128   : > { %v952_v49 = vadd.f32 %v911_v23, %v6369_v0  ;;  %v6423_v24 = vadd.f32 %v5274_v15, %v954_v18  ;;  %v6425_v27 = vpop.f32.mrf.mxu1  ;;  %v6457_v15 = vld [vmem:[%s387_s30] sm:$0x1] }
 0x129   : > { %v5255_v29 = vpop.f32.mrf.mxu0  ;;  %7770 = vst [vmem:[#allocation3_spill] sm:$0xff] %v6457_v15 }
 0x12a   : > { %v957_v55 = vadd.f32 %v5255_v29, %v6371_v3  ;;  %v6428_v42 = vadd.f32 %v1112_v21, %v952_v49  ;;  %v6430_v53 = vpop.f32.mrf.mxu1 }
 0x12b   : > { %v924_v32 = vpop.f32.mrf.mxu0 }
 0x12c   : > { %v955_v58 = vadd.f32 %v924_v32, %v6373_v6  ;;  %v6433_v33 = vadd.f32 %v5277_v26, %v957_v55  ;;  %v6435_v37 = vpop.f32.mrf.mxu1 }
 0x12d   : > { %v5256_v0 = vpop.f32.mrf.mxu0 }
 0x12e   : > { %v958_v7 = vadd.f32 %v5256_v0, %v6375_v9  ;;  %v1156_v39 = vadd.f32 %v1125_v28, %v955_v58  ;;  %v6438_v44 = vpop.f32.mrf.mxu1  ;;  %v2324_v9 = vlaneseq }
 0x12f   : > { %v927_v46 = vpop.f32.mrf.mxu0 }
 0x130   : > { %v956_v3 = vadd.f32 %v927_v46, %v6377_v12  ;;  %v1159_v48 = vadd.f32 %v5278_v31, %v958_v7  ;;  %v6441_v52 = vpop.f32.mrf.mxu1  ;;  %v2325_v16 = vshrl.u32 %v2324_v9, 7 }
 0x131   : > { %v5283_v56 = vpop.f32.mrf.mxu0 }
 0x132   : > { %v1157_v57 = vadd.f32 %v1128_v36, %v956_v3  ;;  %v6444_v6 = vadd.f32 %v5283_v56, %v6379_v20  ;;  %v6446_v61 = vpop.f32.mrf.mxu1  ;;  %v2350_v20 = vadd.f32 1.0, %v6457_v15  ;;  %v6465_v26 = vsub.s32 0, %v2325_v16 }
 0x133   : > { %v1259_v1 = vpop.f32.mrf.mxu0 }
 0x134   : > { %v6453_v2 = vadd.f32 %v1259_v1, %v6381_v30  ;;  %v6455_v12 = vpop.f32.mrf.mxu1  ;;  %7771 = vst [vmem:[#allocation4_spill] sm:$0xff] %v6465_v26  ;;  %v6473_v28 = vrot.slane %v2350_v20, %v6465_v26 }
 0x135   : > { %v5284_v5 = vpop.f32.mrf.mxu0 }
 0x136   : > { %v6461_v21 = vadd.f32 %v5284_v5, %v6383_v59  ;;  %v6463_v10 = vpop.f32.mrf.mxu1  ;;  %7772 = vst [vmem:[#allocation5_spill] sm:$0xff] %v6473_v28 }
 0x137   : > { %v1262_v11 = vpop.f32.mrf.mxu0 }
 0x138   : > { %v6468_v22 = vadd.f32 %v1262_v11, %v6386_v43  ;;  %v6470_v30 = vpop.f32.mrf.mxu1 }
 0x139   : > { %v5287_v25 = vpop.f32.mrf.mxu0 }
 0x13a   : > { %v6476_v35 = vadd.f32 %v5287_v25, %v6389_v51  ;;  %v6478_v38 = vpop.f32.mrf.mxu1 }
 0x13b   : > { %v1275_v59 = vpop.f32.mrf.mxu0 }
 0x13c   : > { %v6481_v31 = vadd.f32 %v1275_v59, %v6392_v60  ;;  %v6483_v47 = vpop.f32.mrf.mxu1 }
 0x13d   : > { %v5288_v50 = vpop.f32.mrf.mxu0 }
 0x13e   : > { %v6486_v43 = vadd.f32 %v5288_v50, %v6395_v4  ;;  %v6488_v36 = vpop.f32.mrf.mxu1 }
 0x13f   : > { %v1278_v62 = vpop.f32.mrf.mxu0 }
 0x140   : > { %v6491_v63 = vadd.f32 %v1278_v62, %v6398_v8  ;;  %v6493_v51 = vpop.f32.mrf.mxu1 }
 0x141   : > { %v5291_v14 = vpop.f32.mrf.mxu0 }
 0x142   : > { %v6496_v18 = vadd.f32 %v5291_v14, %v6401_v17  ;;  %v6498_v60 = vpop.f32.mrf.mxu1 }
 0x143   : > { %7773 = vst [vmem:[#allocation6_spill] sm:$0xff] %v6498_v60  ;;  %v1291_v23 = vpop.f32.mrf.mxu0 }
 0x144   : > { %v6501_v49 = vadd.f32 %v1291_v23, %v6404_v34  ;;  %v6506_v55 = vpop.f32.mrf.mxu1 }
 0x145   : > { %v5292_v4 = vpop.f32.mrf.mxu0  ;;  %7774 = vst [vmem:[#allocation7_spill] sm:$0xff] %v6506_v55 }
 0x146   : > { %v6504_v29 = vadd.f32 %v5292_v4, %v6407_v41  ;;  %v6514_v0 = vpop.f32.mrf.mxu1 }
 0x147   : > { %v1294_v8 = vpop.f32.mrf.mxu0  ;;  %7775 = vst [vmem:[#allocation8_spill] sm:$0xff] %v6514_v0 }
 0x148   : > { %v6509_v32 = vadd.f32 %v1294_v8, %v6410_v54  ;;  %v6522_v3 = vpop.f32.mrf.mxu1 }
 0x149   : > { %v5295_v58 = vpop.f32.mrf.mxu0  ;;  %7776 = vst [vmem:[#allocation9_spill] sm:$0xff] %v6522_v3  ;;  %v1538_v3 = vadd.f32 %v6415_v40, %v6444_v6  ;;  %v1537_v40 = vadd.f32 %v6430_v53, %v6468_v22 }
 0x14a   : > { %v6512_v17 = vadd.f32 %v5295_v58, %v6413_v13  ;;  %v6530_v9 = vpop.f32.mrf.mxu1 }
 0x14b   : > { %v1307_v7 = vpop.f32.mrf.mxu0  ;;  %7779 = vst [vmem:[#allocation12_spill] sm:$0xff] %v6530_v9 }
 0x14c   : > { %v6517_v34 = vadd.f32 %v1307_v7, %v6418_v45 }
 0x14d   : > { %v5296_v46 = vpop.f32.mrf.mxu0 }
 0x14e   : > { %v6520_v41 = vadd.f32 %v5296_v46, %v6423_v24  ;;  %v5349_v24 = vpop.f32.mrf.mxu1 }
 0x14f   : > { %v1310_v56 = vpop.f32.mrf.mxu0 }
 0x150   : > { %v6525_v54 = vadd.f32 %v1310_v56, %v6428_v42  ;;  %v1856_v50 = vpop.f32.mrf.mxu1 }
 0x151   : > { %v5299_v1 = vpop.f32.mrf.mxu0 }
 0x152   : > { %7777 = vst [vmem:[#allocation10_spill] sm:$0xff] %v6525_v54  ;;  %v6528_v13 = vadd.f32 %v5299_v1, %v6433_v33  ;;  %v5350_v14 = vpop.f32.mrf.mxu1 }
 0x153   : > { %v1323_v5 = vpop.f32.mrf.mxu0 }
 0x154   : > { %7778 = vst [vmem:[#allocation11_spill] sm:$0xff] %v6528_v13  ;;  %v6532_v16 = vadd.f32 %v1323_v5, %v1156_v39  ;;  %v1859_v4 = vpop.f32.mrf.mxu1 }
 0x155   : > { %v5300_v45 = vpop.f32.mrf.mxu0 }
 0x156   : > { %7780 = vst [vmem:[#allocation13_spill] sm:$0xff] %v6532_v16  ;;  %v6534_v20 = vadd.f32 %v5300_v45, %v1159_v48  ;;  %v5353_v7 = vpop.f32.mrf.mxu1  ;;  %v1536_v16 = vadd.f32 %v6420_v19, %v6453_v2  ;;  %v6585_v2 = vld [vmem:[%s7757_s2] ss:$0 sm:$0xff] }
 0x157   : > { %v1326_v11 = vpop.f32.mrf.mxu0 }
 0x158   : > { %7781 = vst [vmem:[#allocation14_spill] sm:$0xff] %v6534_v20  ;;  %v6536_v25 = vadd.f32 %v1326_v11, %v1157_v57  ;;  %v1872_v48 = vpop.f32.mrf.mxu1 }
 0x159   : > { %v5327_v59 = vpop.f32.mrf.mxu0 }
 0x15a   : > { %7782 = vst [vmem:[#allocation15_spill] sm:$0xff] %v6536_v25  ;;  %v6544_v57 = vpop.f32.mrf.mxu1  ;;  %v1739_v55 = vadd.f32 %v5327_v59, %v1538_v3  ;;  %v1540_v59 = vadd.f32 %v6438_v44, %v6481_v31 }
 0x15b   : > { %v1658_v42 = vpop.f32.mrf.mxu0 }
 0x15c   : > { %v6550_v11 = vpop.f32.mrf.mxu1  ;;  %v1737_v60 = vadd.f32 %v1658_v42, %v1536_v16  ;;  %v1937_v6 = vadd.f32 %v5349_v24, %v1739_v55 }
 0x15d   : > { %v5328_v62 = vpop.f32.mrf.mxu0 }
 0x15e   : > { %v6556_v26 = vpop.f32.mrf.mxu1 }
 0x15f   : > { %v1661_v23 = vpop.f32.mrf.mxu0 }
 0x160   : > { %v6564_v20 = vpop.f32.mrf.mxu1 }
 0x161   : > { %v5331_v33 = vpop.f32.mrf.mxu0 }
 0x163   : > { %v1674_v8 = vpop.f32.mrf.mxu0 }
 0x164   : > { %v1741_v24 = vadd.f32 %v1674_v8, %v1540_v59  ;;  %v1546_v8 = vadd.f32 %v6455_v12, %v6496_v18 }
 0x165   : > { %v5332_v58 = vpop.f32.mrf.mxu0 }
 0x167   : > { %v1677_v39 = vpop.f32.mrf.mxu0 }
 0x169   : > { %v6538_v46 = vpop.f32.mrf.mxu0 }
 0x16a   : > { %v1747_v18 = vadd.f32 %v6538_v46, %v1546_v8 }
 0x16b   : > { %v6540_v56 = vpop.f32.mrf.mxu0 }
 0x16d   : > { %v6542_v1 = vpop.f32.mrf.mxu0 }
 0x16f   : > { %v6546_v5 = vpop.f32.mrf.mxu0 }
 0x171   : > { %v6548_v45 = vpop.f32.mrf.mxu0 }
 0x173   : > { %v6552_v28 = vpop.f32.mrf.mxu0 }
 0x175   : > { %v6554_v15 = vpop.f32.mrf.mxu0 }
 0x176   : > { %7783 = vst [vmem:[#allocation16_spill] sm:$0xff] %v6554_v15  ;;  %v1539_v15 = vadd.f32 %v6425_v27, %v6461_v21  ;;  %v1935_v27 = vadd.f32 %v1856_v50, %v1737_v60  ;;  %v1738_v21 = vadd.f32 %v1661_v23, %v1537_v40  ;;  %v1939_v40 = vadd.f32 %v1872_v48, %v1741_v24 }
 0x177   : > { %v6558_v9 = vpop.f32.mrf.mxu0 }
 0x178   : > { %7784 = vst [vmem:[#allocation17_spill] sm:$0xff] %v6558_v9  ;;  %v6574_v9 = vpop.f32.mrf.mxu1  ;;  %v1740_v54 = vadd.f32 %v5328_v62, %v1539_v15  ;;  %v1936_v60 = vadd.f32 %v1859_v4, %v1738_v21  ;;  %v1544_v21 = vadd.f32 %v6463_v10, %v6501_v49 }
 0x179   : > { %v6560_v25 = vpop.f32.mrf.mxu0 }
 0x17a   : > { %7785 = vst [vmem:[#allocation18_spill] sm:$0xff] %v6560_v25  ;;  %v6587_v3 = vpop.f32.mrf.mxu1  ;;  %v1938_v15 = vadd.f32 %v5350_v14, %v1740_v54  ;;  %v1745_v49 = vadd.f32 %v6540_v56, %v1544_v21  ;;  %v1945_v56 = vadd.f32 %v6556_v26, %v1747_v18  ;;  %v7788_v21 = vld [vmem:[#allocation6_spill] sm:$0xff] }
 0x17b   : > { %v6566_v0 = vpop.f32.mrf.mxu0 }
 0x17c   : > { %7786 = vst [vmem:[#allocation19_spill] sm:$0xff] %v6566_v0  ;;  %v1542_v0 = vadd.f32 %v6435_v37, %v6476_v35  ;;  %v1543_v35 = vadd.f32 %v6441_v52, %v6486_v43  ;;  %v6596_v50 = vpop.f32.mrf.mxu1 }
 0x17d   : > { %v6570_v13 = vpop.f32.mrf.mxu0 }
 0x17e   : > { %v1743_v53 = vadd.f32 %v5331_v33, %v1542_v0  ;;  %v1541_v0 = vadd.f32 %v6446_v61, %v6491_v63  ;;  %v1744_v14 = vadd.f32 %v5332_v58, %v1543_v35  ;;  %v6613_v61 = vpop.f32.mrf.mxu1 }
 0x17f   : > { %v6576_v25 = vpop.f32.mrf.mxu0 }
 0x180   : > { %v1941_v54 = vadd.f32 %v5353_v7, %v1743_v53  ;;  %v1942_v12 = vadd.f32 %v6544_v57, %v1744_v14  ;;  %v5362_v57 = vpop.f32.mrf.mxu1 }
 0x181   : > { %v5371_v19 = vpop.f32.mrf.mxu0 }
 0x182   : > { %v2135_v16 = vadd.f32 %v5371_v19, %v1937_v6  ;;  %v1742_v6 = vadd.f32 %v1677_v39, %v1541_v0 }
 0x183   : > { %v2054_v22 = vpop.f32.mrf.mxu0 }
 0x184   : > { %v6592_v55 = vadd.f32 %v6585_v2, %v2135_v16  ;;  %v2133_v37 = vadd.f32 %v2054_v22, %v1935_v27  ;;  %v1547_v22 = vadd.f32 %v6470_v30, %v6504_v29  ;;  %v1940_v10 = vadd.f32 %v6550_v11, %v1742_v6 }
 0x185   : > { %v5372_v42 = vpop.f32.mrf.mxu0 }
 0x186   : > { %v6599_v62 = vadd.f32 %v6585_v2, %v2133_v37  ;;  %v2136_v44 = vadd.f32 %v5372_v42, %v1938_v15  ;;  %v2182_v31 = vmul.f32 %v6592_v55, %v6592_v55  ;;  %v1545_v42 = vadd.f32 %v6478_v38, %v6509_v32  ;;  %v1907_v32 = vpop.f32.mrf.mxu1 }
 0x187   : > { %v2057_v23 = vpop.f32.mrf.mxu0  ;;  %v1748_v30 = vadd.f32 %v6542_v1, %v1547_v22 }
 0x188   : > { %v6606_v52 = vadd.f32 %v6585_v2, %v2136_v44  ;;  %v2134_v43 = vadd.f32 %v2057_v23, %v1936_v60  ;;  %v2207_v33 = vsel %vm2200_vm2, %v2182_v31, 0.0  ;;  %v2180_v4 = vmul.f32 %v6599_v62, %v6599_v62 }
 0x189   : > { %2208 = vadd.xlane.f32.xlu1 %v2207_v33  ;;  %v5375_v19 = vpop.f32.mrf.mxu0  ;;  %v1550_v44 = vadd.f32 %v6483_v47, %v6512_v17  ;;  %v1943_v31 = vadd.f32 %v6564_v20, %v1745_v49  ;;  %v1746_v0 = vadd.f32 %v6546_v5, %v1545_v42  ;;  %v1548_v47 = vadd.f32 %v6488_v36, %v6517_v34  ;;  %v7792_v49 = vld [vmem:[#allocation17_spill] sm:$0xff] }
 0x18a   : > { %v6616_v63 = vadd.f32 %v6585_v2, %v2134_v43  ;;  %v2139_v58 = vadd.f32 %v5375_v19, %v1941_v54  ;;  %v2201_v7 = vsel %vm2200_vm2, %v2180_v4, 0.0  ;;  %v2183_v27 = vmul.f32 %v6606_v52, %v6606_v52 }
 0x18b   : > { %v2070_v39 = vpop.f32.mrf.mxu0  ;;  %2202 = vadd.xlane.f32.xlu0 %v2201_v7  ;;  %v1946_v17 = vadd.f32 %v6574_v9, %v1748_v30  ;;  %v1751_v20 = vadd.f32 %v6548_v45, %v1550_v44  ;;  %v1944_v36 = vadd.f32 %v6587_v3, %v1746_v0  ;;  %v1749_v34 = vadd.f32 %v6552_v28, %v1548_v47  ;;  %v5365_v45 = vpop.f32.mrf.mxu1  ;;  %v7796_v47 = vld [vmem:[#allocation14_spill] sm:$0xff] }
 0x18c   : > { %v6626_v48 = vadd.f32 %v6585_v2, %v2139_v58  ;;  %v2137_v16 = vadd.f32 %v2070_v39, %v1939_v40  ;;  %v2210_v59 = vsel %vm2200_vm2, %v2183_v27, 0.0  ;;  %v2181_v53 = vmul.f32 %v6616_v63, %v6616_v63  ;;  %v7787_v27 = vld [vmem:[#allocation10_spill] sm:$0xff] }
 0x18d   : > { %2211 = vadd.xlane.f32.xlu1 %v2210_v59  ;;  %v5376_v46 = vpop.f32.mrf.mxu0  ;;  %v1551_v40 = vadd.f32 %v6493_v51, %v6520_v41  ;;  %v7789_v51 = vld [vmem:[#allocation16_spill] sm:$0xff]  ;;  %v1949_v28 = vadd.f32 %v6596_v50, %v1751_v20  ;;  %v7790_v59 = vld [vmem:[#allocation11_spill] sm:$0xff] }
 0x18e   : > { %v6636_v15 = vadd.f32 %v6585_v2, %v2137_v16  ;;  %v2140_v37 = vadd.f32 %v5376_v46, %v1942_v12  ;;  %v2204_v35 = vsel %vm2200_vm2, %v2181_v53, 0.0  ;;  %v2186_v24 = vmul.f32 %v6626_v48, %v6626_v48  ;;  %v7791_v53 = vld [vmem:[#allocation7_spill] sm:$0xff] }
 0x18f   : > { %v2073_v29 = vpop.f32.mrf.mxu0  ;;  %2205 = vadd.xlane.f32.xlu0 %v2204_v35  ;;  %v1549_v12 = vadd.f32 %v7788_v21, %v7787_v27  ;;  %v1752_v41 = vadd.f32 %v7789_v51, %v1551_v40  ;;  %v1554_v22 = vadd.f32 %v7791_v53, %v7790_v59 }
 0x190   : > { %v6646_v11 = vadd.f32 %v6585_v2, %v2140_v37  ;;  %v2138_v60 = vadd.f32 %v2073_v29, %v1940_v10  ;;  %v2219_v38 = vsel %vm2200_vm2, %v2186_v24, 0.0  ;;  %v2184_v23 = vmul.f32 %v6636_v15, %v6636_v15  ;;  %v1920_v24 = vpop.f32.mrf.mxu1 }
 0x191   : > { %v5379_v54 = vpop.f32.mrf.mxu0  ;;  %v1947_v10 = vadd.f32 %v6613_v61, %v1749_v34  ;;  %v1750_v46 = vadd.f32 %v7792_v49, %v1549_v12  ;;  %v1950_v44 = vadd.f32 %v5362_v57, %v1752_v41 }
 0x192   : > { %v6654_v1 = vadd.f32 %v6585_v2, %v2138_v60  ;;  %v2143_v14 = vadd.f32 %v5379_v54, %v1945_v56  ;;  %v2187_v26 = vmul.f32 %v6646_v11, %v6646_v11  ;;  %v2213_v58 = vsel %vm2200_vm2, %v2184_v23, 0.0  ;;  %v7793_v56 = vld [vmem:[#allocation13_spill] sm:$0xff]  ;;  %v7794_v60 = vld [vmem:[#allocation8_spill] sm:$0xff] }
 0x193   : > { %v2086_v5 = vpop.f32.mrf.mxu0  ;;  %2220 = vadd.xlane.f32.xlu0 %v2219_v38  ;;  %v1552_v61 = vadd.f32 %v7794_v60, %v7793_v56 }
 0x194   : > { %v6665_v43 = vadd.f32 %v6585_v2, %v2143_v14  ;;  %v2141_v33 = vadd.f32 %v2086_v5, %v1943_v31  ;;  %v2222_v4 = vsel %vm2200_vm2, %v2187_v26, 0.0  ;;  %v2185_v8 = vmul.f32 %v6654_v1, %v6654_v1  ;;  %v7795_v31 = vld [vmem:[#allocation18_spill] sm:$0xff] }
 0x195   : > { %2223 = vadd.xlane.f32.xlu1 %v2222_v4  ;;  %v5380_v9 = vpop.f32.mrf.mxu0  ;;  %v1755_v0 = vadd.f32 %v7795_v31, %v1554_v22  ;;  %v1948_v5 = vadd.f32 %v1907_v32, %v1750_v46 }
 0x196   : > { %v6675_v6 = vadd.f32 %v6585_v2, %v2141_v33  ;;  %v2144_v19 = vadd.f32 %v5380_v9, %v1946_v17  ;;  %v2190_v7 = vmul.f32 %v6665_v43, %v6665_v43  ;;  %v2216_v16 = vsel %vm2200_vm2, %v2185_v8, 0.0  ;;  %v7797_v17 = vld [vmem:[#allocation9_spill] sm:$0xff]  ;;  %v7798_v33 = vld [vmem:[#allocation19_spill] sm:$0xff]  ;;  %v5366_v8 = vpop.f32.mrf.mxu1 }
 0x197   : > { %v2089_v3 = vpop.f32.mrf.mxu0  ;;  %2214 = vadd.xlane.f32.xlu0 %v2213_v58  ;;  %v1555_v20 = vadd.f32 %v7797_v17, %v7796_v47  ;;  %v1753_v4 = vadd.f32 %v7798_v33, %v1552_v61  ;;  %v7800_v58 = vld [vmem:[#allocation12_spill] sm:$0xff]  ;;  %v1953_v27 = vadd.f32 %v5365_v45, %v1755_v0  ;;  %v7802_v33 = vld [vmem:[#allocation3_spill] sm:$0xff] }
 0x198   : > { %v6685_v18 = vadd.f32 %v6585_v2, %v2144_v19  ;;  %v2142_v39 = vadd.f32 %v2089_v3, %v1944_v36  ;;  %v2231_v35 = vsel %vm2200_vm2, %v2190_v7, 0.0  ;;  %v2188_v29 = vmul.f32 %v6675_v6, %v6675_v6  ;;  %v7799_v19 = vld [vmem:[#allocation15_spill] sm:$0xff]  ;;  %v1923_v59 = vpop.f32.mrf.mxu1 }
 0x199   : > { %2217 = vadd.xlane.f32.xlu1 %v2216_v16  ;;  %v5383_v37 = vpop.f32.mrf.mxu0  ;;  %v1553_v7 = vadd.f32 %v7800_v58, %v7799_v19  ;;  %v1756_v32 = vadd.f32 %v6570_v13, %v1555_v20  ;;  %v1951_v3 = vadd.f32 %v1920_v24, %v1753_v4 }
 0x19a   : > { %v6694_v50 = vadd.f32 %v6585_v2, %v2142_v39  ;;  %v2147_v42 = vadd.f32 %v5383_v37, %v1949_v28  ;;  %v2191_v30 = vmul.f32 %v6685_v18, %v6685_v18  ;;  %v2225_v34 = vsel %vm2200_vm2, %v2188_v29, 0.0 }
 0x19b   : > { %v2102_v54 = vpop.f32.mrf.mxu0  ;;  %2232 = vadd.xlane.f32.xlu0 %v2231_v35  ;;  %v1754_v28 = vadd.f32 %v6576_v25, %v1553_v7  ;;  %v1954_v49 = vadd.f32 %v5366_v8, %v1756_v32 }
 0x19c   : > { %v6704_v38 = vadd.f32 %v6585_v2, %v2147_v42  ;;  %v2145_v14 = vadd.f32 %v2102_v54, %v1947_v10  ;;  %v2234_v26 = vsel %vm2200_vm2, %v2191_v30, 0.0  ;;  %v2189_v23 = vmul.f32 %v6694_v50, %v6694_v50 }
 0x19d   : > { %2235 = vadd.xlane.f32.xlu1 %v2234_v26  ;;  %v5384_v57 = vpop.f32.mrf.mxu0  ;;  %v1952_v35 = vadd.f32 %v1923_v59, %v1754_v28 }
 0x19e   : > { %v6713_v40 = vadd.f32 %v6585_v2, %v2145_v14  ;;  %v2148_v36 = vadd.f32 %v5384_v57, %v1950_v44  ;;  %v2194_v9 = vmul.f32 %v6704_v38, %v6704_v38  ;;  %v2228_v41 = vsel %vm2200_vm2, %v2189_v23, 0.0 }
 0x19f   : > { %v2105_v21 = vpop.f32.mrf.mxu0  ;;  %2226 = vadd.xlane.f32.xlu0 %v2225_v34  ;;  %v5893_v57 = vmov 0.0  }
 0x1a0   : > { %v6722_v12 = vadd.f32 %v6585_v2, %v2148_v36  ;;  %v2146_v51 = vadd.f32 %v2105_v21, %v1948_v5  ;;  %v2243_v16 = vsel %vm2200_vm2, %v2194_v9, 0.0  ;;  %v2192_v22 = vmul.f32 %v6713_v40, %v6713_v40  ;;  %v7801_v5 = vld [vmem:[#allocation4_spill] sm:$0xff]  ;;  %2546 = vst.msk [vmem:[#allocation2] sm:$0x1] %vm2545_vm3, %v5893_v57  ;;  %2547 = vst.msk [vmem:[#allocation2 + $0x18] sm:$0x1] %vm2545_vm3, %v5893_v57 }
 0x1a1   : > { %2229 = vadd.xlane.f32.xlu1 %v2228_v41  ;;  %v5387_v39 = vpop.f32.mrf.mxu0  ;;  %v2381_v4 = vrot.slane %v7802_v33, %v7801_v5  ;;  %2548 = vst.msk [vmem:[#allocation2 + $0x30] sm:$0x1] %vm2545_vm3, %v5893_v57  ;;  %2549 = vst.msk [vmem:[#allocation2 + $0x48] sm:$0x1] %vm2545_vm3, %v5893_v57  ;;  %v2321_v21 = vld [vmem:[%s7758_s3] sm:$0x1] }
 0x1a2   : > { %v6728_v45 = vadd.f32 %v6585_v2, %v2146_v51  ;;  %v2151_v53 = vadd.f32 %v5387_v39, %v1953_v27  ;;  %v2195_v13 = vmul.f32 %v6722_v12, %v6722_v12  ;;  %v2237_v56 = vsel %vm2200_vm2, %v2192_v22, 0.0  ;;  %2550 = vst.msk [vmem:[#allocation2 + $0x60] sm:$0x1] %vm2545_vm3, %v5893_v57  ;;  %2551 = vst.msk [vmem:[#allocation2 + $0x78] sm:$0x1] %vm2545_vm3, %v5893_v57 }
 0x1a3   : > { %v2118_v10 = vpop.f32.mrf.mxu0  ;;  %2244 = vadd.xlane.f32.xlu0 %v2243_v16  ;;  %2552 = vst.msk [vmem:[#allocation2 + $0x90] sm:$0x1] %vm2545_vm3, %v5893_v57  ;;  %2553 = vst.msk [vmem:[#allocation2 + $0xa8] sm:$0x1] %vm2545_vm3, %v5893_v57  ;;  %v2322_v51 = vmul.f32 2.828427, %v2321_v21 }
 0x1a4   : > { %v2149_v46 = vadd.f32 %v2118_v10, %v1951_v3  ;;  %v2246_v25 = vsel %vm2200_vm2, %v2195_v13, 0.0  ;;  %v2193_v37 = vmul.f32 %v6728_v45, %v6728_v45  ;;  %v6738_v42 = vadd.f32 %v6585_v2, %v2151_v53  ;;  %2554 = vst.msk [vmem:[#allocation2 + $0xc0] sm:$0x1] %vm2545_vm3, %v5893_v57  ;;  %2555 = vst.msk [vmem:[#allocation2 + $0xd8] sm:$0x1] %vm2545_vm3, %v5893_v57 }
 0x1a5   : > { %2247 = vadd.xlane.f32.xlu1 %v2246_v25  ;;  %v5388_v24 = vpop.f32.mrf.mxu0  ;;  %2556 = vst.msk [vmem:[#allocation2 + $0x11] sm:$0x1] %vm2545_vm3, %v5893_v57  ;;  %2557 = vst.msk [vmem:[#allocation2 + $0x29] sm:$0x1] %vm2545_vm3, %v5893_v57  ;;  %v6789_v16 = vrot.slane %v2322_v51, %v7801_v5 }
 0x1a6   : > { %v6741_v30 = vadd.f32 %v6585_v2, %v2149_v46  ;;  %v2152_v29 = vadd.f32 %v5388_v24, %v1954_v49  ;;  %v2240_v44 = vsel %vm2200_vm2, %v2193_v37, 0.0  ;;  %v2198_v26 = vmul.f32 %v6738_v42, %v6738_v42  ;;  %2558 = vst.msk [vmem:[#allocation2 + $0x41] sm:$0x1] %vm2545_vm3, %v5893_v57  ;;  %2559 = vst.msk [vmem:[#allocation2 + $0x59] sm:$0x1] %vm2545_vm3, %v5893_v57 }
 0x1a7   : > { %v2121_v60 = vpop.f32.mrf.mxu0  ;;  %2238 = vadd.xlane.f32.xlu0 %v2237_v56  ;;  %2560 = vst.msk [vmem:[#allocation2 + $0x71] sm:$0x1] %vm2545_vm3, %v5893_v57  ;;  %2561 = vst.msk [vmem:[#allocation2 + $0x89] sm:$0x1] %vm2545_vm3, %v5893_v57  ;;  %v7803_v56 = vld [vmem:[#allocation5_spill] sm:$0xff] }
 0x1a8   : > { %v2150_v61 = vadd.f32 %v2121_v60, %v1952_v35  ;;  %v2196_v31 = vmul.f32 %v6741_v30, %v6741_v30  ;;  %v6748_v0 = vadd.f32 %v6585_v2, %v2152_v29  ;;  %v2255_v17 = vsel %vm2200_vm2, %v2198_v26, 0.0  ;;  %2562 = vst.msk [vmem:[#allocation2 + $0xa1] sm:$0x1] %vm2545_vm3, %v5893_v57  ;;  %2563 = vst.msk [vmem:[#allocation2 + $0xb9] sm:$0x1] %vm2545_vm3, %v5893_v57 }
 0x1a9   : > { %2241 = vadd.xlane.f32.xlu1 %v2240_v44  ;;  %2564 = vst.msk [vmem:[#allocation2 + $0xd1] sm:$0x1] %vm2545_vm3, %v5893_v57  ;;  %2565 = vst.msk [vmem:[#allocation2 + $0xe9] sm:$0x1] %vm2545_vm3, %v5893_v57 }
 0x1aa   : > { %v6751_v54 = vadd.f32 %v6585_v2, %v2150_v61  ;;  %v2249_v14 = vsel %vm2200_vm2, %v2196_v31, 0.0  ;;  %v2199_v20 = vmul.f32 %v6748_v0, %v6748_v0 }
 0x1ab   : > { %2250 = vadd.xlane.f32.xlu0 %v2249_v14 }
 0x1ac   : > { %v2197_v23 = vmul.f32 %v6751_v54, %v6751_v54  ;;  %v2258_v2 = vsel %vm2200_vm2, %v2199_v20, 0.0 }
 0x1ae   : > { %v2252_v47 = vsel %vm2200_vm2, %v2197_v23, 0.0 }
 0x1af   : > { %2253 = vadd.xlane.f32.xlu1 %v2252_v47  ;;  %2256 = vadd.xlane.f32.xlu0 %v2255_v17 }
 0x1b3   : > { %2259 = vadd.xlane.f32.xlu1 %v2258_v2 }
 0x1c5   : > { %2382 = vrot.lane.b32.xlu0 %v2381_v4, %s5892_s12 }
 0x212   : > { %v2209_v8 = vpop.xlane.xlu1 %2208 }
 0x213   : > { %v2263_v36 = vmax.f32 %v2209_v8, 1e-24 }
 0x214   : > { %v2203_v34 = vpop.xlane.xlu0 %2202 }
 0x215   : > { %5636 = vrsqrt.f32 %v2263_v36  ;;  %v2261_v9 = vmax.f32 %v2203_v34, 1e-24 }
 0x216   : > { %v2212_v19 = vpop.xlane.xlu1 %2211 }
 0x217   : > { %5638 = vrsqrt.f32 %v2261_v9  ;;  %v2264_v58 = vmax.f32 %v2212_v19, 1e-24 }
 0x218   : > { %v2206_v7 = vpop.xlane.xlu0 %2205 }
 0x219   : > { %5640 = vrsqrt.f32 %v2264_v58  ;;  %v2262_v27 = vmax.f32 %v2206_v7, 1e-24 }
 0x21b   : > { %5642 = vrsqrt.f32 %v2262_v27 }
 0x21c   : > { %v2221_v32 = vpop.xlane.xlu0 %2220 }
 0x21d   : > { %v2267_v41 = vmax.f32 %v2221_v32, 1e-24 }
 0x21e   : > { %v2224_v3 = vpop.xlane.xlu1 %2223 }
 0x21f   : > { %5644 = vrsqrt.f32 %v2267_v41  ;;  %v2268_v28 = vmax.f32 %v2224_v3, 1e-24 }
 0x220   : > { %v2215_v39 = vpop.xlane.xlu0 %2214 }
 0x221   : > { %5646 = vrsqrt.f32 %v2268_v28  ;;  %v2265_v59 = vmax.f32 %v2215_v39, 1e-24 }
 0x222   : > { %v5637_v53 = vpop.eup %5636  ;;  %v2218_v13 = vpop.xlane.xlu1 %2217 }
 0x223   : > { %v2303_v22 = vmul.f32 %v5637_v53, %v6592_v55  ;;  %5648 = vrsqrt.f32 %v2265_v59  ;;  %v2266_v10 = vmax.f32 %v2218_v13, 1e-24 }
 0x224   : > { %v5639_v49 = vpop.eup %5638  ;;  %v2233_v46 = vpop.xlane.xlu0 %2232 }
 0x225   : > { %v2331_v25 = vmul.f32 %v6789_v16, %v2303_v22  ;;  %v2301_v37 = vmul.f32 %v5639_v49, %v6599_v62  ;;  %5650 = vrsqrt.f32 %v2266_v10  ;;  %v2271_v35 = vmax.f32 %v2233_v46, 1e-24 }
 0x226   : > { %v5641_v24 = vpop.eup %5640  ;;  %v2236_v29 = vpop.xlane.xlu1 %2235 }
 0x227   : > { %v6795_v60 = vmul.f32 %v7803_v56, %v2331_v25  ;;  %v2329_v61 = vmul.f32 %v6789_v16, %v2301_v37  ;;  %v2304_v44 = vmul.f32 %v5641_v24, %v6606_v52  ;;  %5652 = vrsqrt.f32 %v2271_v35 }
 0x228   : > { %v5643_v55 = vpop.eup %5642  ;;  %v2272_v31 = vmax.f32 %v2236_v29, 1e-24  ;;  %v2227_v14 = vpop.xlane.xlu0 %2226 }
 0x229   : > { %v6800_v26 = vmul.f32 %v7803_v56, %v2329_v61  ;;  %v2332_v62 = vmul.f32 %v6789_v16, %v2304_v44  ;;  %v2302_v23 = vmul.f32 %v5643_v55, %v6616_v63  ;;  %v2269_v47 = vmax.f32 %v2227_v14, 1e-24 }
 0x22a   : > { %5654 = vrsqrt.f32 %v2272_v31  ;;  %v2230_v17 = vpop.xlane.xlu1 %2229 }
 0x22b   : > { %v6805_v20 = vmul.f32 %v7803_v56, %v2332_v62  ;;  %v2330_v2 = vmul.f32 %v6789_v16, %v2302_v23  ;;  %5656 = vrsqrt.f32 %v2269_v47  ;;  %v2270_v52 = vmax.f32 %v2230_v17, 1e-24 }
 0x22c   : > { %v5645_v5 = vpop.eup %5644  ;;  %v2245_v33 = vpop.xlane.xlu0 %2244 }
 0x22d   : > { %v2358_v4 = vmul.f32 %v7803_v56, %v2330_v2  ;;  %v2307_v57 = vmul.f32 %v5645_v5, %v6626_v48  ;;  %5658 = vrsqrt.f32 %v2270_v52  ;;  %v2275_v8 = vmax.f32 %v2245_v33, 1e-24 }
 0x22e   : > { %v5647_v36 = vpop.eup %5646  ;;  %v2248_v63 = vpop.xlane.xlu1 %2247 }
 0x22f   : > { %v2335_v34 = vmul.f32 %v6789_v16, %v2307_v57  ;;  %v2308_v9 = vmul.f32 %v5647_v36, %v6646_v11  ;;  %5660 = vrsqrt.f32 %v2275_v8  ;;  %v2276_v19 = vmax.f32 %v2248_v63, 1e-24 }
 0x230   : > { %v5649_v58 = vpop.eup %5648  ;;  %v2239_v7 = vpop.xlane.xlu0 %2238 }
 0x231   : > { %v2363_v27 = vmul.f32 %v7803_v56, %v2335_v34  ;;  %v2336_v21 = vmul.f32 %v6789_v16, %v2308_v9  ;;  %v2305_v32 = vmul.f32 %v5649_v58, %v6636_v15  ;;  %5662 = vrsqrt.f32 %v2276_v19 }
 0x232   : > { %v5651_v48 = vpop.eup %5650  ;;  %v2273_v51 = vmax.f32 %v2239_v7, 1e-24  ;;  %v2242_v41 = vpop.xlane.xlu1 %2241 }
 0x233   : > { %v2364_v3 = vmul.f32 %v7803_v56, %v2336_v21  ;;  %v2333_v28 = vmul.f32 %v6789_v16, %v2305_v32  ;;  %v2306_v11 = vmul.f32 %v5651_v48, %v6654_v1  ;;  %v2274_v39 = vmax.f32 %v2242_v41, 1e-24 }
 0x234   : > { %v5653_v59 = vpop.eup %5652  ;;  %5664 = vrsqrt.f32 %v2273_v51  ;;  %v2251_v53 = vpop.xlane.xlu0 %2250 }
 0x235   : > { %v2361_v13 = vmul.f32 %v7803_v56, %v2333_v28  ;;  %v2334_v22 = vmul.f32 %v6789_v16, %v2306_v11  ;;  %v2311_v15 = vmul.f32 %v5653_v59, %v6665_v43  ;;  %5666 = vrsqrt.f32 %v2274_v39 }
 0x236   : > { %v2277_v10 = vmax.f32 %v2251_v53, 1e-24 }
 0x237   : > { %v5655_v49 = vpop.eup %5654  ;;  %v2362_v46 = vmul.f32 %v7803_v56, %v2334_v22  ;;  %v2339_v25 = vmul.f32 %v6789_v16, %v2311_v15 }
 0x238   : > { %v5657_v37 = vpop.eup %5656  ;;  %v2312_v1 = vmul.f32 %v5655_v49, %v6685_v18  ;;  %5668 = vrsqrt.f32 %v2277_v10  ;;  %v2254_v35 = vpop.xlane.xlu1 %2253 }
 0x239   : > { %v2257_v24 = vpop.xlane.xlu0 %2256  ;;  %v2367_v29 = vmul.f32 %v7803_v56, %v2339_v25  ;;  %v2309_v61 = vmul.f32 %v5657_v37, %v6675_v6  ;;  %v2278_v44 = vmax.f32 %v2254_v35, 1e-24 }
 0x23a   : > { %v2279_v55 = vmax.f32 %v2257_v24, 1e-24  ;;  %v5659_v43 = vpop.eup %5658  ;;  %v2340_v31 = vmul.f32 %v6789_v16, %v2312_v1 }
 0x23b   : > { %v2337_v14 = vmul.f32 %v6789_v16, %v2309_v61  ;;  %v2310_v62 = vmul.f32 %v5659_v43, %v6694_v50  ;;  %5670 = vrsqrt.f32 %v2278_v44 }
 0x23c   : > { %v5661_v23 = vpop.eup %5660  ;;  %v2368_v18 = vmul.f32 %v7803_v56, %v2340_v31  ;;  %5672 = vrsqrt.f32 %v2279_v55  ;;  %v2260_v47 = vpop.xlane.xlu1 %2259 }
 0x23d   : > { %v6830_v17 = vpop.permute.xlu0 %2382  ;;  %v2365_v2 = vmul.f32 %v7803_v56, %v2337_v14  ;;  %v2338_v6 = vmul.f32 %v6789_v16, %v2310_v62  ;;  %v2315_v52 = vmul.f32 %v5661_v23, %v6704_v38  ;;  %v2280_v5 = vmax.f32 %v2260_v47, 1e-24 }
 0x23e   : > { %v5663_v33 = vpop.eup %5662  ;;  %v6837_v57 = vadd.f32 %v6830_v17, %v6800_v26  ;;  %v6840_v50 = vadd.f32 %v6830_v17, %v2358_v4  ;;  %v6844_v8 = vadd.f32 %v6830_v17, %v6795_v60  ;;  %v6851_v38 = vadd.f32 %v6830_v17, %v6805_v20 }
 0x23f   : > { %v2366_v36 = vmul.f32 %v7803_v56, %v2338_v6  ;;  %v2343_v63 = vmul.f32 %v6789_v16, %v2315_v52  ;;  %v2316_v34 = vmul.f32 %v5663_v33, %v6722_v12  ;;  %5674 = vrsqrt.f32 %v2280_v5 }
 0x240   : > { %v6854_v26 = vadd.f32 %v6830_v17, %v2361_v13  ;;  %v6857_v4 = vadd.f32 %v6830_v17, %v2362_v46  ;;  %v6860_v60 = vadd.f32 %v6830_v17, %v2363_v27  ;;  %v6865_v12 = vadd.f32 %v6830_v17, %v2364_v3 }
 0x241   : > { %v5665_v9 = vpop.eup %5664  ;;  %v2371_v19 = vmul.f32 %v7803_v56, %v2343_v63  ;;  %v2344_v58 = vmul.f32 %v6789_v16, %v2316_v34  ;;  %v6868_v20 = vadd.f32 %v6830_v17, %v2365_v2  ;;  %v6872_v32 = vadd.f32 %v6830_v17, %v2366_v36 }
 0x242   : > { %v5667_v7 = vpop.eup %5666  ;;  %v2313_v21 = vmul.f32 %v5665_v9, %v6713_v40  ;;  %v6875_v27 = vadd.f32 %v6830_v17, %v2367_v29  ;;  %v4864_v48 = vmul.f32 -1.442695, %v6837_v57  ;;  %v6881_v3 = vadd.f32 %v6830_v17, %v2368_v18 }
 0x243   : > { %v2372_v51 = vmul.f32 %v7803_v56, %v2344_v58  ;;  %v2314_v41 = vmul.f32 %v5667_v7, %v6728_v45  ;;  %v4865_v28 = vmul.f32 -1.442695, %v6840_v50  ;;  %v4866_v40 = vmul.f32 -1.442695, %v6844_v8 }
 0x244   : > { %v2341_v11 = vmul.f32 %v6789_v16, %v2313_v21  ;;  %5676 = vpow2.f32 %v4864_v48  ;;  %v4867_v39 = vmul.f32 -1.442695, %v6851_v38  ;;  %v6889_v13 = vadd.f32 %v6830_v17, %v2371_v19 }
 0x245   : > { %v5669_v59 = vpop.eup %5668  ;;  %v2342_v53 = vmul.f32 %v6789_v16, %v2314_v41  ;;  %5678 = vpow2.f32 %v4865_v28  ;;  %v4868_v45 = vmul.f32 -1.442695, %v6854_v26  ;;  %v4869_v10 = vmul.f32 -1.442695, %v6857_v4 }
 0x246   : > { %v2369_v22 = vmul.f32 %v7803_v56, %v2341_v11  ;;  %v2317_v15 = vmul.f32 %v5669_v59, %v6741_v30  ;;  %5680 = vpow2.f32 %v4866_v40  ;;  %v4870_v46 = vmul.f32 -1.442695, %v6860_v60 }
 0x247   : > { %v2370_v49 = vmul.f32 %v7803_v56, %v2342_v53  ;;  %5682 = vpow2.f32 %v4867_v39  ;;  %v4871_v25 = vmul.f32 -1.442695, %v6865_v12  ;;  %v4872_v24 = vmul.f32 -1.442695, %v6868_v20 }
 0x248   : > { %v5671_v37 = vpop.eup %5670  ;;  %v2345_v1 = vmul.f32 %v6789_v16, %v2317_v15  ;;  %v6900_v35 = vadd.f32 %v6830_v17, %v2369_v22  ;;  %5684 = vpow2.f32 %v4868_v45  ;;  %v4873_v44 = vmul.f32 -1.442695, %v6872_v32 }
 0x249   : > { %v5673_v30 = vpop.eup %5672  ;;  %v2318_v29 = vmul.f32 %v5671_v37, %v6751_v54  ;;  %v6905_v61 = vadd.f32 %v6830_v17, %v2370_v49  ;;  %5686 = vpow2.f32 %v4869_v10  ;;  %v4874_v31 = vmul.f32 -1.442695, %v6875_v27 }
 0x24a   : > { %v2373_v55 = vmul.f32 %v7803_v56, %v2345_v1  ;;  %v2319_v43 = vmul.f32 %v5673_v30, %v6738_v42  ;;  %5688 = vpow2.f32 %v4870_v46  ;;  %v6913_v62 = vadd.f32 %v6830_v17, %v2372_v51 }
 0x24b   : > { %v2346_v14 = vmul.f32 %v6789_v16, %v2318_v29  ;;  %5690 = vpow2.f32 %v4871_v25  ;;  %v4875_v54 = vmul.f32 -1.442695, %v6881_v3  ;;  %v4876_v42 = vmul.f32 -1.442695, %v6900_v35 }
 0x24c   : > { %v5675_v23 = vpop.eup %5674  ;;  %v2347_v18 = vmul.f32 %v6789_v16, %v2319_v43  ;;  %v6918_v47 = vadd.f32 %v6830_v17, %v2373_v55  ;;  %5692 = vpow2.f32 %v4872_v24  ;;  %v4877_v52 = vmul.f32 -1.442695, %v6905_v61 }
 0x24d   : > { %v2374_v2 = vmul.f32 %v7803_v56, %v2346_v14  ;;  %v2320_v6 = vmul.f32 %v5675_v23, %v6748_v0  ;;  %5694 = vpow2.f32 %v4873_v44  ;;  %v4878_v33 = vmul.f32 -1.442695, %v6889_v13 }
 0x24e   : > { %v2375_v5 = vmul.f32 %v7803_v56, %v2347_v18  ;;  %5696 = vpow2.f32 %v4874_v31  ;;  %v4879_v34 = vmul.f32 -1.442695, %v6913_v62  ;;  %v4880_v0 = vmul.f32 -1.442695, %v6918_v47 }
 0x24f   : > { %v2348_v36 = vmul.f32 %v6789_v16, %v2320_v6  ;;  %v6928_v63 = vadd.f32 %v6830_v17, %v2374_v2  ;;  %5698 = vpow2.f32 %v4875_v54 }
 0x250   : > { %v6932_v9 = vadd.f32 %v6830_v17, %v2375_v5  ;;  %5700 = vpow2.f32 %v4876_v42 }
 0x251   : > { %v5677_v19 = vpop.eup %5676  ;;  %v2376_v58 = vmul.f32 %v7803_v56, %v2348_v36  ;;  %5702 = vpow2.f32 %v4877_v52  ;;  %v4881_v7 = vmul.f32 -1.442695, %v6928_v63 }
 0x252   : > { %v5679_v21 = vpop.eup %5678  ;;  %5704 = vpow2.f32 %v4878_v33  ;;  %v4882_v16 = vmul.f32 -1.442695, %v6932_v9  ;;  %v2465_v28 = vadd.f32 1.0, %v5677_v19 }
 0x253   : > { %v5681_v48 = vpop.eup %5680  ;;  %v6939_v51 = vadd.f32 %v6830_v17, %v2376_v58  ;;  %5706 = vpow2.f32 %v4879_v34  ;;  %v2466_v56 = vadd.f32 1.0, %v5679_v21 }
 0x254   : > { %v5683_v41 = vpop.eup %5682  ;;  %5708 = vpow2.f32 %v4880_v0  ;;  %v2467_v59 = vadd.f32 1.0, %v5681_v48 }
 0x255   : > { %v5685_v11 = vpop.eup %5684  ;;  %5710 = vpow2.f32 %v4881_v7  ;;  %v4883_v40 = vmul.f32 -1.442695, %v6939_v51  ;;  %v2468_v45 = vadd.f32 1.0, %v5683_v41 }
 0x256   : > { %v5687_v39 = vpop.eup %5686  ;;  %5712 = vpow2.f32 %v4882_v16  ;;  %v2469_v15 = vadd.f32 1.0, %v5685_v11 }
 0x257   : > { %v5689_v53 = vpop.eup %5688  ;;  %5714 = vpow2.f32 %v4883_v40  ;;  %v2470_v10 = vadd.f32 1.0, %v5687_v39 }
 0x258   : > { %v5691_v22 = vpop.eup %5690  ;;  %5716 = vrcp.f32 %v2465_v28  ;;  %v2471_v46 = vadd.f32 1.0, %v5689_v53 }
 0x259   : > { %v5693_v17 = vpop.eup %5692  ;;  %5718 = vrcp.f32 %v2466_v56  ;;  %v2472_v37 = vadd.f32 1.0, %v5691_v22 }
 0x25a   : > { %v5695_v49 = vpop.eup %5694  ;;  %5720 = vrcp.f32 %v2467_v59  ;;  %v2473_v24 = vadd.f32 1.0, %v5693_v17 }
 0x25b   : > { %v5697_v25 = vpop.eup %5696  ;;  %5722 = vrcp.f32 %v2468_v45  ;;  %v2474_v29 = vadd.f32 1.0, %v5695_v49 }
 0x25c   : > { %v5699_v1 = vpop.eup %5698  ;;  %5724 = vrcp.f32 %v2469_v15  ;;  %v2475_v55 = vadd.f32 1.0, %v5697_v25 }
 0x25d   : > { %v5701_v30 = vpop.eup %5700  ;;  %5726 = vrcp.f32 %v2470_v10  ;;  %v2476_v31 = vadd.f32 1.0, %v5699_v1 }
 0x25e   : > { %v5703_v44 = vpop.eup %5702  ;;  %5728 = vrcp.f32 %v2471_v46  ;;  %v2477_v54 = vadd.f32 1.0, %v5701_v30 }
 0x25f   : > { %v5705_v43 = vpop.eup %5704  ;;  %5730 = vrcp.f32 %v2472_v37  ;;  %v2478_v18 = vadd.f32 1.0, %v5703_v44 }
 0x260   : > { %v5707_v14 = vpop.eup %5706  ;;  %5732 = vrcp.f32 %v2473_v24  ;;  %v2479_v2 = vadd.f32 1.0, %v5705_v43 }
 0x261   : > { %v5709_v23 = vpop.eup %5708  ;;  %5734 = vrcp.f32 %v2474_v29  ;;  %v2480_v52 = vadd.f32 1.0, %v5707_v14 }
 0x262   : > { %v5711_v42 = vpop.eup %5710  ;;  %5736 = vrcp.f32 %v2475_v55  ;;  %v2481_v33 = vadd.f32 1.0, %v5709_v23 }
 0x263   : > { %v5713_v6 = vpop.eup %5712  ;;  %5738 = vrcp.f32 %v2476_v31  ;;  %v2482_v34 = vadd.f32 1.0, %v5711_v42 }
 0x264   : > { %v5715_v5 = vpop.eup %5714  ;;  %5740 = vrcp.f32 %v2477_v54  ;;  %v2483_v19 = vadd.f32 1.0, %v5713_v6 }
 0x265   : > { %v5717_v36 = vpop.eup %5716  ;;  %5742 = vrcp.f32 %v2478_v18  ;;  %v2484_v21 = vadd.f32 1.0, %v5715_v5 }
 0x266   : > { %v5719_v0 = vpop.eup %5718  ;;  %5744 = vrcp.f32 %v2479_v2  ;;  %v2525_v58 = vmul.f32 %v5717_v36, %v6837_v57 }
 0x267   : > { %v5721_v7 = vpop.eup %5720  ;;  %5746 = vrcp.f32 %v2480_v52  ;;  %v2526_v16 = vmul.f32 %v5719_v0, %v6840_v50 }
 0x268   : > { %v5723_v48 = vpop.eup %5722  ;;  %5748 = vrcp.f32 %v2481_v33  ;;  %v2527_v41 = vmul.f32 %v5721_v7, %v6844_v8  ;;  %2566 = vst.msk [vmem:[#allocation2 + $0x1] sm:$0xff] %vm2200_vm2, %v2525_v58 }
 0x269   : > { %v5725_v28 = vpop.eup %5724  ;;  %5750 = vrcp.f32 %v2482_v34  ;;  %v2528_v11 = vmul.f32 %v5723_v48, %v6851_v38  ;;  %2567 = vst.msk [vmem:[#allocation2 + $0x9] sm:$0xff] %vm2200_vm2, %v2526_v16 }
 0x26a   : > { %v5727_v40 = vpop.eup %5726  ;;  %5752 = vrcp.f32 %v2483_v19  ;;  %v2529_v57 = vmul.f32 %v5725_v28, %v6854_v26  ;;  %2568 = vst.msk [vmem:[#allocation2 + $0x19] sm:$0xff] %vm2200_vm2, %v2527_v41 }
 0x26b   : > { %v5729_v56 = vpop.eup %5728  ;;  %5754 = vrcp.f32 %v2484_v21  ;;  %v2530_v50 = vmul.f32 %v5727_v40, %v6857_v4  ;;  %2569 = vst.msk [vmem:[#allocation2 + $0x21] sm:$0xff] %vm2200_vm2, %v2528_v11 }
 0x26c   : > { %v5731_v8 = vpop.eup %5730  ;;  %v2531_v39 = vmul.f32 %v5729_v56, %v6860_v60  ;;  %2570 = vst.msk [vmem:[#allocation2 + $0x31] sm:$0xff] %vm2200_vm2, %v2529_v57 }
 0x26d   : > { %v5733_v38 = vpop.eup %5732  ;;  %v2532_v59 = vmul.f32 %v5731_v8, %v6865_v12  ;;  %2571 = vst.msk [vmem:[#allocation2 + $0x39] sm:$0xff] %vm2200_vm2, %v2530_v50 }
 0x26e   : > { %v5735_v53 = vpop.eup %5734  ;;  %v2533_v26 = vmul.f32 %v5733_v38, %v6868_v20  ;;  %2572 = vst.msk [vmem:[#allocation2 + $0x49] sm:$0xff] %vm2200_vm2, %v2531_v39 }
 0x26f   : > { %v5737_v45 = vpop.eup %5736  ;;  %v2534_v4 = vmul.f32 %v5735_v53, %v6872_v32  ;;  %2573 = vst.msk [vmem:[#allocation2 + $0x51] sm:$0xff] %vm2200_vm2, %v2532_v59 }
 0x270   : > { %v5739_v22 = vpop.eup %5738  ;;  %v2535_v60 = vmul.f32 %v5737_v45, %v6875_v27  ;;  %2574 = vst.msk [vmem:[#allocation2 + $0x61] sm:$0xff] %vm2200_vm2, %v2533_v26 }
 0x271   : > { %v5741_v15 = vpop.eup %5740  ;;  %v2536_v12 = vmul.f32 %v5739_v22, %v6881_v3  ;;  %2575 = vst.msk [vmem:[#allocation2 + $0x69] sm:$0xff] %vm2200_vm2, %v2534_v4 }
 0x272   : > { %v5743_v17 = vpop.eup %5742  ;;  %v2537_v20 = vmul.f32 %v5741_v15, %v6900_v35  ;;  %2576 = vst.msk [vmem:[#allocation2 + $0x79] sm:$0xff] %vm2200_vm2, %v2535_v60 }
 0x273   : > { %v5745_v10 = vpop.eup %5744  ;;  %v2538_v32 = vmul.f32 %v5743_v17, %v6905_v61  ;;  %2577 = vst.msk [vmem:[#allocation2 + $0x81] sm:$0xff] %vm2200_vm2, %v2536_v12 }
 0x274   : > { %v5747_v49 = vpop.eup %5746  ;;  %v2539_v27 = vmul.f32 %v5745_v10, %v6889_v13  ;;  %2578 = vst.msk [vmem:[#allocation2 + $0x91] sm:$0xff] %vm2200_vm2, %v2537_v20 }
 0x275   : > { %v5749_v46 = vpop.eup %5748  ;;  %v2540_v3 = vmul.f32 %v5747_v49, %v6913_v62  ;;  %2579 = vst.msk [vmem:[#allocation2 + $0x99] sm:$0xff] %vm2200_vm2, %v2538_v32 }
 0x276   : > { %v5751_v25 = vpop.eup %5750  ;;  %v2541_v35 = vmul.f32 %v5749_v46, %v6918_v47  ;;  %2580 = vst.msk [vmem:[#allocation2 + $0xa9] sm:$0xff] %vm2200_vm2, %v2539_v27 }
 0x277   : > { %v5753_v37 = vpop.eup %5752  ;;  %v2542_v61 = vmul.f32 %v5751_v25, %v6928_v63  ;;  %2581 = vst.msk [vmem:[#allocation2 + $0xb1] sm:$0xff] %vm2200_vm2, %v2540_v3  ;;  %2589 = sbr.rel (%p4884_p7) target bundleno = 639 (0x27f), region = 64 }
 0x278   : > { %v5755_v1 = vpop.eup %5754  ;;  %v2543_v13 = vmul.f32 %v5753_v37, %v6932_v9  ;;  %2582 = vst.msk [vmem:[#allocation2 + $0xc1] sm:$0xff] %vm2200_vm2, %v2541_v35 }
 0x279   : > { %v2544_v24 = vmul.f32 %v5755_v1, %v6939_v51  ;;  %2583 = vst.msk [vmem:[#allocation2 + $0xc9] sm:$0xff] %vm2200_vm2, %v2542_v61 }
 0x27a   : > { %2584 = vst.msk [vmem:[#allocation2 + $0xd9] sm:$0xff] %vm2200_vm2, %v2543_v13 }
 0x27b   : > { %2585 = vst.msk [vmem:[#allocation2 + $0xe1] sm:$0xff] %vm2200_vm2, %v2544_v24 }
 0x27c   : > { %vm2592_vm4 = vcmask 58368   ;;  %v5894_v62 = vmov 0.0  }
 0x27d   : > { %2590 = vst.msk [vmem:[#allocation2] sm:$0xff] %vm2200_vm2, %v5894_v62  ;;  %2591 = vst.msk [vmem:[#allocation2 + $0x8] sm:$0xff] %vm2200_vm2, %v5894_v62 }
 0x27e   : > { %2593 = vst.msk [vmem:[#allocation2 + $0x10] sm:$0x3] %vm2592_vm4, %v5894_v62 }
 0x27f PF: > { %p4885_p8 = scmp.ne.s32.totalorder %s5874_s13, 1 }
 0x281   : > { %2597 = sbr.rel (%p4885_p8) target bundleno = 649 (0x289), region = 68 }
 0x286   : > { %vm2601_vm5 = vcmask 58368   ;;  %v5895_v47 = vmov 0.0  }
 0x287   : > { %2599 = vst.msk [vmem:[#allocation2 + $0xd8] sm:$0xff] %vm2200_vm2, %v5895_v47  ;;  %2600 = vst.msk [vmem:[#allocation2 + $0xe0] sm:$0xff] %vm2200_vm2, %v5895_v47 }
 0x288   : > { %2602 = vst.msk [vmem:[#allocation2 + $0xe8] sm:$0x3] %vm2601_vm5, %v5895_v47 }
 0x289 PF: > { %v2653_v63 = vld [vmem:[%s7760_s5 + $0x8] sm:$0xff]  ;;  %vm2679_vm6 = vcmask 1043456   ;;  %v2631_v44 = vld [vmem:[#allocation2 + $0x19] sm:$0xff]  ;;  %v2633_v14 = vld [vmem:[#allocation2 + $0x31] sm:$0xff] }
 0x28a   : > { %v2629_v9 = vld [vmem:[#allocation2 + $0x1] sm:$0xff]  ;;  %v2630_v51 = vld [vmem:[#allocation2 + $0x9] sm:$0xff]  ;;  %v2654_v30 = vpack.c.bf16 %v2653_v63, %v2653_v63  ;;  %v2634_v54 = vld [vmem:[#allocation2 + $0x39] sm:$0xff] }
 0x28b   : > { %v2645_v29 = vpack.c.bf16 %v2630_v51, %v2629_v9  ;;  %v2632_v55 = vld [vmem:[#allocation2 + $0x21] sm:$0xff]  ;;  %v6999_v42 = vpack.c.bf16 %v2634_v54, %v2633_v14  ;;  %v2928_v6 = vld [vmem:[%s7760_s5 + $0x10] sm:$0xff]  ;;  %v3095_v41 = vld [vmem:[%s7760_s5 + $0x18] sm:$0xff] }
 0x28c   : > { %v2627_v43 = vld [vmem:[%s7760_s5] sm:$0xff]  ;;  %5581 = vmatprep.subr.msk.bf16.mxu1 %vm2679_vm6, %v2654_v30  ;;  %v2681_v23 = vsel %vm2679_vm6, %v2654_v30, 0  ;;  %v6997_v18 = vpack.c.bf16 %v2632_v55, %v2631_v44  ;;  %v2905_v5 = vld [vmem:[#allocation2 + $0xa] sm:$0xff]  ;;  %v2929_v36 = vpack.c.bf16 %v2928_v6, %v2928_v6  ;;  %v2908_v11 = vld [vmem:[#allocation2 + $0x32] sm:$0xff]  ;;  %v3096_v40 = vpack.c.bf16 %v3095_v41, %v3095_v41 }
 0x28d   : > { %v2628_v31 = vpack.c.bf16 %v2627_v43, %v2627_v43  ;;  %5391 = vmatprep.mubr.msk.bf16.mxu1 %vm2200_vm2, %v2645_v29  ;;  %5390 = vmatpush3.bf16.msra.mxu1 %v2681_v23  ;;  %v2904_v52 = vld [vmem:[#allocation2 + $0x2] sm:$0xff]  ;;  %v2906_v0 = vld [vmem:[#allocation2 + $0x1a] sm:$0xff]  ;;  %v2636_v58 = vld [vmem:[#allocation2 + $0x51] sm:$0xff] }
 0x28e   : > { %v2635_v33 = vld [vmem:[#allocation2 + $0x49] sm:$0xff]  ;;  %v2920_v34 = vpack.c.bf16 %v2905_v5, %v2904_v52  ;;  %v2637_v7 = vld [vmem:[#allocation2 + $0x61] sm:$0xff]  ;;  %5583 = vmatprep.subr.msk.bf16.mxu0 %vm2679_vm6, %v2929_v36  ;;  %v2955_v16 = vsel %vm2679_vm6, %v2929_v36, 0  ;;  %v2911_v53 = vld [vmem:[#allocation2 + $0x52] sm:$0xff]  ;;  %v3122_v54 = vsel %vm2679_vm6, %v3096_v40, 0 }
 0x28f   : > { %5582 = vmatprep.subr.msk.bf16.mxu1 %vm2679_vm6, %v2628_v31  ;;  %v2805_v2 = vsel %vm2679_vm6, %v2628_v31, 0  ;;  %v2907_v19 = vld [vmem:[#allocation2 + $0x22] sm:$0xff]  ;;  %5426 = vmatpush3.bf16.msra.mxu0 %v2955_v16  ;;  %v2909_v56 = vld [vmem:[#allocation2 + $0x3a] sm:$0xff]  ;;  %v7021_v50 = vpack.c.bf16 %v2636_v58, %v2635_v33  ;;  %v2910_v59 = vld [vmem:[#allocation2 + $0x4a] sm:$0xff] }
 0x290   : > { %5392 = vmatmul.mubr.msk.bf16.vlgmr.msra.gmra.mxu1 %vm2200_vm2, %v6997_v18  ;;  %v2638_v21 = vld [vmem:[#allocation2 + $0x69] sm:$0xff]  ;;  %5427 = vmatprep.mubr.msk.bf16.mxu0 %vm2200_vm2, %v2920_v34  ;;  %v7013_v48 = vpack.c.bf16 %v2907_v19, %v2906_v0  ;;  %v3261_v28 = vld [vmem:[%s7760_s5 + $0x20] sm:$0xff]  ;;  %v7023_v8 = vpack.c.bf16 %v2909_v56, %v2908_v11  ;;  %v2641_v60 = vld [vmem:[#allocation2 + $0x91] sm:$0xff]  ;;  %v7038_v12 = vpack.c.bf16 %v2911_v53, %v2910_v59 }
 0x291   : > { %5408 = vmatpush3.bf16.msra.mxu1 %v2805_v2  ;;  %5395 = vmatprep.mubr.msk.bf16.mxu1 %vm2200_vm2, %v6999_v42  ;;  %v3262_v57 = vpack.c.bf16 %v3261_v28, %v3261_v28  ;;  %v7025_v39 = vpack.c.bf16 %v2638_v21, %v2637_v7  ;;  %v2912_v26 = vld [vmem:[#allocation2 + $0x62] sm:$0xff]  ;;  %v2913_v45 = vld [vmem:[#allocation2 + $0x6a] sm:$0xff]  ;;  %v2639_v4 = vld [vmem:[#allocation2 + $0x79] sm:$0xff] }
 0x292   : > { %5584 = vmatprep.subr.msk.bf16.mxu1 %vm2679_vm6, %v3096_v40  ;;  %5428 = vmatmul.mubr.msk.bf16.vlgmr.msra.gmra.mxu0 %vm2200_vm2, %v7013_v48  ;;  %v2640_v22 = vld [vmem:[#allocation2 + $0x81] sm:$0xff]  ;;  %v2642_v15 = vld [vmem:[#allocation2 + $0x99] sm:$0xff]  ;;  %v7040_v17 = vpack.c.bf16 %v2913_v45, %v2912_v26  ;;  %v3594_v20 = vld [vmem:[%s7760_s5 + $0x30] sm:$0xff] }
 0x293   : > { %5585 = vmatprep.subr.msk.bf16.mxu0 %vm2679_vm6, %v3262_v57  ;;  %v3288_v38 = vsel %vm2679_vm6, %v3262_v57, 0  ;;  %5431 = vmatprep.mubr.msk.bf16.mxu0 %vm2200_vm2, %v7023_v8  ;;  %v7045_v10 = vpack.c.bf16 %v2640_v22, %v2639_v4  ;;  %v3595_v32 = vpack.c.bf16 %v3594_v20, %v3594_v20  ;;  %v7047_v49 = vpack.c.bf16 %v2642_v15, %v2641_v60  ;;  %v2914_v27 = vld [vmem:[#allocation2 + $0x7a] sm:$0xff]  ;;  %v2915_v46 = vld [vmem:[#allocation2 + $0x82] sm:$0xff]  ;;  %v2916_v3 = vld [vmem:[#allocation2 + $0x92] sm:$0xff] }
 0x294   : > { %5462 = vmatpush3.bf16.msra.mxu0 %v3288_v38  ;;  %v2917_v25 = vld [vmem:[#allocation2 + $0x9a] sm:$0xff]  ;;  %v2643_v35 = vld [vmem:[#allocation2 + $0xa9] sm:$0xff]  ;;  %v2644_v37 = vld [vmem:[#allocation2 + $0xb1] sm:$0xff]  ;;  %v7058_v13 = vpack.c.bf16 %v2915_v46, %v2914_v27 }
 0x295   : > { %5587 = vmatprep.subr.msk.bf16.mxu0 %vm2679_vm6, %v3595_v32  ;;  %v2603_v61 = vld [vmem:[#allocation2] sm:$0xff]  ;;  %v2604_v1 = vld [vmem:[#allocation2 + $0x8] sm:$0xff]  ;;  %v7060_v24 = vpack.c.bf16 %v2917_v25, %v2916_v3  ;;  %v7062_v62 = vpack.c.bf16 %v2644_v37, %v2643_v35  ;;  %v2919_v9 = vld [vmem:[#allocation2 + $0xb2] sm:$0xff]  ;;  %v3621_v34 = vsel %vm2679_vm6, %v3595_v32, 0 }
 0x296   : > { %v2619_v47 = vpack.c.bf16 %v2604_v1, %v2603_v61  ;;  %v2918_v63 = vld [vmem:[#allocation2 + $0xaa] sm:$0xff]  ;;  %v2605_v51 = vld [vmem:[#allocation2 + $0x18] sm:$0xff]  ;;  %v2606_v30 = vld [vmem:[#allocation2 + $0x20] sm:$0xff] }
 0x297   : > { %v2607_v29 = vld [vmem:[#allocation2 + $0x30] sm:$0xff]  ;;  %v2608_v44 = vld [vmem:[#allocation2 + $0x38] sm:$0xff]  ;;  %v7071_v55 = vpack.c.bf16 %v2919_v9, %v2918_v63  ;;  %v3427_v43 = vld [vmem:[%s7760_s5 + $0x28] sm:$0xff]  ;;  %v2620_v31 = vpack.c.bf16 %v2606_v30, %v2605_v51 }
 0x298   : > { %5396 = vmatmul.mubr.msk.bf16.gmra.mxu1 %vm2200_vm2, %v7021_v50  ;;  %v2621_v14 = vpack.c.bf16 %v2608_v44, %v2607_v29  ;;  %v3428_v23 = vpack.c.bf16 %v3427_v43, %v3427_v43  ;;  %v2609_v2 = vld [vmem:[#allocation2 + $0x48] sm:$0xff]  ;;  %v2610_v6 = vld [vmem:[#allocation2 + $0x50] sm:$0xff]  ;;  %v3926_v52 = vld [vmem:[%s7760_s5 + $0x40] sm:$0xff] }
 0x299   : > { %5399 = vmatprep.mubr.msk.bf16.mxu1 %vm2200_vm2, %v7025_v39  ;;  %v2611_v5 = vld [vmem:[#allocation2 + $0x60] sm:$0xff]  ;;  %v2612_v33 = vld [vmem:[#allocation2 + $0x68] sm:$0xff]  ;;  %v2622_v36 = vpack.c.bf16 %v2610_v6, %v2609_v2  ;;  %v3927_v0 = vpack.c.bf16 %v3926_v52, %v3926_v52  ;;  %v2613_v19 = vld [vmem:[#allocation2 + $0x78] sm:$0xff] }
 0x29a   : > { %5432 = vmatmul.mubr.msk.bf16.gmra.mxu0 %vm2200_vm2, %v7038_v12  ;;  %v2614_v58 = vld [vmem:[#allocation2 + $0x80] sm:$0xff]  ;;  %v2615_v7 = vld [vmem:[#allocation2 + $0x90] sm:$0xff]  ;;  %v2616_v21 = vld [vmem:[#allocation2 + $0x98] sm:$0xff]  ;;  %v3454_v53 = vsel %vm2679_vm6, %v3428_v23, 0 }
 0x29b   : > { %5435 = vmatprep.mubr.msk.bf16.mxu0 %vm2200_vm2, %v7040_v17  ;;  %v2624_v16 = vpack.c.bf16 %v2614_v58, %v2613_v19  ;;  %v2625_v41 = vpack.c.bf16 %v2616_v21, %v2615_v7  ;;  %v2617_v28 = vld [vmem:[#allocation2 + $0xa8] sm:$0xff]  ;;  %v2618_v11 = vld [vmem:[#allocation2 + $0xb0] sm:$0xff]  ;;  %v3760_v59 = vld [vmem:[%s7760_s5 + $0x38] sm:$0xff]  ;;  %v3953_v45 = vsel %vm2679_vm6, %v3927_v0, 0 }
 0x29c   : > { %v2626_v40 = vpack.c.bf16 %v2618_v11, %v2617_v28  ;;  %v3251_v57 = vld [vmem:[#allocation2 + $0xc1] sm:$0xff]  ;;  %v3252_v56 = vld [vmem:[#allocation2 + $0xc9] sm:$0xff]  ;;  %v3761_v26 = vpack.c.bf16 %v3760_v59, %v3760_v59  ;;  %v3584_v15 = vld [vmem:[#allocation2 + $0xd8] sm:$0xff] }
 0x29d   : > { %v3260_v38 = vpack.c.bf16 %v3252_v56, %v3251_v57  ;;  %v3085_v4 = vld [vmem:[#allocation2 + $0xc0] sm:$0xff]  ;;  %v3086_v22 = vld [vmem:[#allocation2 + $0xc8] sm:$0xff]  ;;  %v4975_v37 = vld [vmem:[%s6007_s25 + $0x31] sm:$0xff] }
 0x29e   : > { %v3094_v60 = vpack.c.bf16 %v3086_v22, %v3085_v4  ;;  %v3585_v20 = vld [vmem:[#allocation2 + $0xe0] sm:$0xff]  ;;  %v3787_v27 = vsel %vm2679_vm6, %v3761_v26, 0  ;;  %v4983_v19 = vld [vmem:[%s6007_s25 + $0x91] sm:$0xff]  ;;  %v4985_v21 = vld [vmem:[%s6007_s25 + $0xa9] sm:$0xff] }
 0x29f   : > { %v3593_v32 = vpack.c.bf16 %v3585_v20, %v3584_v15  ;;  %v3917_v46 = vld [vmem:[#allocation2 + $0xe2] sm:$0xff]  ;;  %v4976_v61 = vld [vmem:[%s6007_s25 + $0x39] sm:$0xff] }
 0x2a0   : > { %5400 = vmatmul.mubr.msk.bf16.gmra.mxu1 %vm2200_vm2, %v7045_v10  ;;  %v4979_v44 = vld [vmem:[%s6007_s25 + $0x61] sm:$0xff]  ;;  %v4984_v58 = vld [vmem:[%s6007_s25 + $0x99] sm:$0xff] }
 0x2a1   : > { %5403 = vmatprep.mubr.msk.bf16.mxu1 %vm2200_vm2, %v7047_v49  ;;  %v4359_v7 = vpack.c.bf16 %v4984_v58, %v4983_v19  ;;  %v4989_v22 = vld [vmem:[%s6007_s25 + $0xd9] sm:$0xff] }
 0x2a2   : > { %5436 = vmatmul.mubr.msk.bf16.gmra.mxu0 %vm2200_vm2, %v7058_v13 }
 0x2a3   : > { %5439 = vmatprep.mubr.msk.bf16.mxu0 %vm2200_vm2, %v7060_v24 }
 0x2a8   : > { %5404 = vmatmul.mubr.msk.bf16.gmra.mxu1 %vm2200_vm2, %v7062_v62 }
 0x2a9   : > { %5409 = vmatprep.mubr.msk.bf16.mxu1 %vm2200_vm2, %v2619_v47 }
 0x2aa   : > { %5440 = vmatmul.mubr.msk.bf16.gmra.mxu0 %vm2200_vm2, %v7071_v55 }
 0x2ab   : > { %5463 = vmatprep.mubr.msk.bf16.mxu0 %vm2200_vm2, %v6997_v18  ;;  %v2623_v18 = vpack.c.bf16 %v2612_v33, %v2611_v5 }
 0x2b0   : > { %5410 = vmatmul.mubr.msk.bf16.vlgmr.msra.gmra.mxu1 %vm2200_vm2, %v2620_v31 }
 0x2b1   : > { %5444 = vmatpush3.bf16.msra.mxu1 %v3122_v54  ;;  %5413 = vmatprep.mubr.msk.bf16.mxu1 %vm2200_vm2, %v2621_v14  ;;  %v4981_v54 = vld [vmem:[%s6007_s25 + $0x79] sm:$0xff] }
 0x2b2   : > { %5586 = vmatprep.subr.msk.bf16.mxu1 %vm2679_vm6, %v3428_v23  ;;  %5464 = vmatmul.mubr.msk.bf16.vlgmr.msra.gmra.mxu0 %vm2200_vm2, %v6999_v42  ;;  %v4982_v23 = vld [vmem:[%s6007_s25 + $0x81] sm:$0xff] }
 0x2b3   : > { %5498 = vmatpush3.bf16.msra.mxu0 %v3621_v34  ;;  %5467 = vmatprep.mubr.msk.bf16.mxu0 %vm2200_vm2, %v7021_v50  ;;  %v4358_v2 = vpack.c.bf16 %v4982_v23, %v4981_v54 }
 0x2b4   : > { %5589 = vmatprep.subr.msk.bf16.mxu0 %vm2679_vm6, %v3927_v0 }
 0x2b8   : > { %5414 = vmatmul.mubr.msk.bf16.gmra.mxu1 %vm2200_vm2, %v2622_v36 }
 0x2b9   : > { %5417 = vmatprep.mubr.msk.bf16.mxu1 %vm2200_vm2, %v2623_v18 }
 0x2ba   : > { %5468 = vmatmul.mubr.msk.bf16.gmra.mxu0 %vm2200_vm2, %v7025_v39 }
 0x2bb   : > { %5471 = vmatprep.mubr.msk.bf16.mxu0 %vm2200_vm2, %v7045_v10 }
 0x2c0   : > { %5418 = vmatmul.mubr.msk.bf16.gmra.mxu1 %vm2200_vm2, %v2624_v16 }
 0x2c1   : > { %5421 = vmatprep.mubr.msk.bf16.mxu1 %vm2200_vm2, %v2625_v41 }
 0x2c2   : > { %5472 = vmatmul.mubr.msk.bf16.gmra.mxu0 %vm2200_vm2, %v7047_v49 }
 0x2c3   : > { %5475 = vmatprep.mubr.msk.bf16.mxu0 %vm2200_vm2, %v7062_v62 }
 0x2c8   : > { %5422 = vmatmul.mubr.msk.bf16.gmra.mxu1 %vm2200_vm2, %v2626_v40 }
 0x2c9   : > { %5445 = vmatprep.mubr.msk.bf16.mxu1 %vm2200_vm2, %v2620_v31 }
 0x2ca   : > { %5476 = vmatmul.mubr.msk.bf16.gmra.mxu0 %vm2200_vm2, %v3260_v38 }
 0x2cb   : > { %5499 = vmatprep.mubr.msk.bf16.mxu0 %vm2200_vm2, %v2621_v14 }
 0x2d0   : > { %5446 = vmatmul.mubr.msk.bf16.vlgmr.msra.gmra.mxu1 %vm2200_vm2, %v2621_v14 }
 0x2d1   : > { %5480 = vmatpush3.bf16.msra.mxu1 %v3454_v53  ;;  %5449 = vmatprep.mubr.msk.bf16.mxu1 %vm2200_vm2, %v2622_v36 }
 0x2d2   : > { %5588 = vmatprep.subr.msk.bf16.mxu1 %vm2679_vm6, %v3761_v26  ;;  %5500 = vmatmul.mubr.msk.bf16.vlgmr.msra.gmra.mxu0 %vm2200_vm2, %v2622_v36  ;;  %v4987_v26 = vld [vmem:[%s6007_s25 + $0xc1] sm:$0xff] }
 0x2d3   : > { %5534 = vmatpush3.bf16.msra.mxu0 %v3953_v45  ;;  %5503 = vmatprep.mubr.msk.bf16.mxu0 %vm2200_vm2, %v2623_v18  ;;  %v4988_v45 = vld [vmem:[%s6007_s25 + $0xc9] sm:$0xff] }
 0x2d4   : > { %v4361_v4 = vpack.c.bf16 %v4988_v45, %v4987_v26 }
 0x2d8   : > { %5450 = vmatmul.mubr.msk.bf16.gmra.mxu1 %vm2200_vm2, %v2623_v18 }
 0x2d9   : > { %5453 = vmatprep.mubr.msk.bf16.mxu1 %vm2200_vm2, %v2624_v16 }
 0x2da   : > { %5504 = vmatmul.mubr.msk.bf16.gmra.mxu0 %vm2200_vm2, %v2624_v16  ;;  %v4986_v16 = vld [vmem:[%s6007_s25 + $0xb1] sm:$0xff] }
 0x2db   : > { %5507 = vmatprep.mubr.msk.bf16.mxu0 %vm2200_vm2, %v2625_v41  ;;  %v4360_v11 = vpack.c.bf16 %v4986_v16, %v4985_v21 }
 0x2e0   : > { %5454 = vmatmul.mubr.msk.bf16.gmra.mxu1 %vm2200_vm2, %v2625_v41 }
 0x2e1   : > { %5457 = vmatprep.mubr.msk.bf16.mxu1 %vm2200_vm2, %v2626_v40 }
 0x2e2   : > { %5508 = vmatmul.mubr.msk.bf16.gmra.mxu0 %vm2200_vm2, %v2626_v40 }
 0x2e3   : > { %5511 = vmatprep.mubr.msk.bf16.mxu0 %vm2200_vm2, %v3094_v60 }
 0x2e8   : > { %5458 = vmatmul.mubr.msk.bf16.gmra.mxu1 %vm2200_vm2, %v3094_v60  ;;  %v4990_v60 = vld [vmem:[%s6007_s25 + $0xe1] sm:$0xff] }
 0x2e9   : > { %5481 = vmatprep.mubr.msk.bf16.mxu1 %vm2200_vm2, %v7013_v48  ;;  %v3417_v48 = vld [vmem:[#allocation2 + $0xc2] sm:$0xff] }
 0x2ea   : > { %5512 = vmatmul.mubr.msk.bf16.gmra.mxu0 %vm2200_vm2, %v3593_v32  ;;  %v4362_v32 = vpack.c.bf16 %v4990_v60, %v4989_v22 }
 0x2eb   : > { %5535 = vmatprep.mubr.msk.bf16.mxu0 %vm2200_vm2, %v7023_v8 }
 0x2f0   : > { %5482 = vmatmul.mubr.msk.bf16.vlgmr.msra.gmra.mxu1 %vm2200_vm2, %v7023_v8  ;;  %v3418_v8 = vld [vmem:[#allocation2 + $0xca] sm:$0xff] }
 0x2f1   : > { %5516 = vmatpush3.bf16.msra.mxu1 %v3787_v27  ;;  %5485 = vmatprep.mubr.msk.bf16.mxu1 %vm2200_vm2, %v7038_v12 }
 0x2f2   : > { %5536 = vmatmul.mubr.msk.bf16.vlgmr.msra.gmra.mxu0 %vm2200_vm2, %v7038_v12  ;;  %v3426_v12 = vpack.c.bf16 %v3418_v8, %v3417_v48 }
 0x2f3   : > { %5539 = vmatprep.mubr.msk.bf16.mxu0 %vm2200_vm2, %v7040_v17 }
 0x2f8   : > { %5486 = vmatmul.mubr.msk.bf16.gmra.mxu1 %vm2200_vm2, %v7040_v17  ;;  %v3916_v17 = vld [vmem:[#allocation2 + $0xda] sm:$0xff] }
 0x2f9   : > { %5489 = vmatprep.mubr.msk.bf16.mxu1 %vm2200_vm2, %v7058_v13  ;;  %v3925_v3 = vpack.c.bf16 %v3917_v46, %v3916_v17 }
 0x2fa   : > { %5540 = vmatmul.mubr.msk.bf16.gmra.mxu0 %vm2200_vm2, %v7058_v13  ;;  %v4355_v13 = vpack.c.bf16 %v4976_v61, %v4975_v37 }
 0x2fb   : > { %5543 = vmatprep.mubr.msk.bf16.mxu0 %vm2200_vm2, %v7060_v24 }
 0x300   : > { %5490 = vmatmul.mubr.msk.bf16.gmra.mxu1 %vm2200_vm2, %v7060_v24  ;;  %v4977_v24 = vld [vmem:[%s6007_s25 + $0x49] sm:$0xff] }
 0x301   : > { %5493 = vmatprep.mubr.msk.bf16.mxu1 %vm2200_vm2, %v7071_v55 }
 0x302   : > { %5544 = vmatmul.mubr.msk.bf16.gmra.mxu0 %vm2200_vm2, %v7071_v55  ;;  %v4980_v55 = vld [vmem:[%s6007_s25 + $0x69] sm:$0xff] }
 0x303   : > { %5547 = vmatprep.mubr.msk.bf16.mxu0 %vm2200_vm2, %v3426_v12  ;;  %v4357_v14 = vpack.c.bf16 %v4980_v55, %v4979_v44 }
 0x308   : > { %5494 = vmatmul.mubr.msk.bf16.gmra.mxu1 %vm2200_vm2, %v3426_v12 }
 0x309   : > { %5517 = vmatprep.mubr.msk.bf16.mxu1 %vm2200_vm2, %v6999_v42  ;;  %v3750_v42 = vld [vmem:[#allocation2 + $0xd9] sm:$0xff] }
 0x30a   : > { %5548 = vmatmul.mubr.msk.bf16.gmra.mxu0 %vm2200_vm2, %v3925_v3 }
 0x310   : > { %5518 = vmatmul.mubr.msk.bf16.vlgmr.msra.gmra.mxu1 %vm2200_vm2, %v7021_v50  ;;  %v3751_v50 = vld [vmem:[#allocation2 + $0xe1] sm:$0xff] }
 0x311   : > { %5521 = vmatprep.mubr.msk.bf16.mxu1 %vm2200_vm2, %v7025_v39  ;;  %v3759_v25 = vpack.c.bf16 %v3751_v50, %v3750_v42  ;;  %v4363_v39 = vld [vmem:[%s7763_s8] sm:$0xf] }
 0x318   : > { %5522 = vmatmul.mubr.msk.bf16.gmra.mxu1 %vm2200_vm2, %v7045_v10  ;;  %v4364_v10 = vpack.c.bf16 %v4363_v39, %v4363_v39 }
 0x319   : > { %5525 = vmatprep.mubr.msk.bf16.mxu1 %vm2200_vm2, %v7047_v49 }
 0x31a   : > { %5590 = vmatprep.subr.msk.bf16.mxu1 %vm498_vm0, %v4364_v10  ;;  %v4397_v49 = vsel %vm498_vm0, %v4364_v10, 0 }
 0x31b   : > { %5552 = vmatpush3.bf16.msra.mxu1 %v4397_v49 }
 0x320   : > { %5526 = vmatmul.mubr.msk.bf16.gmra.mxu1 %vm2200_vm2, %v7062_v62  ;;  %v4978_v62 = vld [vmem:[%s6007_s25 + $0x51] sm:$0xff] }
 0x321   : > { %5529 = vmatprep.mubr.msk.bf16.mxu1 %vm2200_vm2, %v3260_v38  ;;  %v4356_v47 = vpack.c.bf16 %v4978_v62, %v4977_v24 }
 0x328   : > { %5530 = vmatmul.mubr.msk.bf16.gmra.mxu1 %vm2200_vm2, %v3759_v25 }
 0x329   : > { %5553 = vmatprep.mubr.msk.bf16.mxu1 %vm467_vm1, %v4355_v13 }
 0x330   : > { %5554 = vmatmul.mubr.msk.bf16.vlgmr.msra.gmra.mxu1 %vm467_vm1, %v4356_v47 }
 0x331   : > { %5557 = vmatprep.mubr.msk.bf16.mxu1 %vm467_vm1, %v4357_v14 }
 0x338   : > { %5558 = vmatmul.mubr.msk.bf16.gmra.mxu1 %vm467_vm1, %v4358_v2 }
 0x339   : > { %5561 = vmatprep.mubr.msk.bf16.mxu1 %vm467_vm1, %v4359_v7 }
 0x340   : > { %5562 = vmatmul.mubr.msk.bf16.gmra.mxu1 %vm467_vm1, %v4360_v11 }
 0x341   : > { %5565 = vmatprep.mubr.msk.bf16.mxu1 %vm467_vm1, %v4361_v4 }
 0x348   : > { %5566 = vmatmul.mubr.msk.bf16.gmra.mxu1 %vm467_vm1, %v4362_v32 }
 0x350   : > { %v7178_v35 = vpop.f32.mrf.mxu1 }
 0x352   : > { %v7182_v1 = vpop.f32.mrf.mxu1  ;;  %v5429_v51 = vpop.f32.mrf.mxu0 }
 0x354   : > { %v5394_v63 = vpop.f32.mrf.mxu1  ;;  %v2991_v29 = vpop.f32.mrf.mxu0 }
 0x356   : > { %v7188_v9 = vpop.f32.mrf.mxu1  ;;  %v5430_v31 = vpop.f32.mrf.mxu0 }
 0x358   : > { %v7190_v30 = vpop.f32.mrf.mxu1  ;;  %v2994_v52 = vpop.f32.mrf.mxu0 }
 0x35a   : > { %v7194_v43 = vpop.f32.mrf.mxu1  ;;  %v5433_v33 = vpop.f32.mrf.mxu0 }
 0x35c   : > { %v7198_v6 = vpop.f32.mrf.mxu1  ;;  %v3007_v34 = vpop.f32.mrf.mxu0 }
 0x35e   : > { %v7202_v5 = vpop.f32.mrf.mxu1  ;;  %v5434_v18 = vpop.f32.mrf.mxu0 }
 0x360   : > { %v7204_v36 = vpop.f32.mrf.mxu1  ;;  %v3010_v28 = vpop.f32.mrf.mxu0 }
 0x362   : > { %v7206_v0 = vpop.f32.mrf.mxu1  ;;  %v5437_v57 = vpop.f32.mrf.mxu0 }
 0x364   : > { %v7212_v41 = vpop.f32.mrf.mxu1  ;;  %v3023_v38 = vpop.f32.mrf.mxu0 }
 0x366   : > { %v7215_v40 = vpop.f32.mrf.mxu1  ;;  %v5438_v53 = vpop.f32.mrf.mxu0 }
 0x368   : > { %v7218_v56 = vpop.f32.mrf.mxu1  ;;  %v3026_v20 = vpop.f32.mrf.mxu0 }
 0x36a   : > { %v7220_v59 = vpop.f32.mrf.mxu1  ;;  %v5441_v48 = vpop.f32.mrf.mxu0 }
 0x36c   : > { %v7226_v15 = vpop.f32.mrf.mxu1  ;;  %v3039_v12 = vpop.f32.mrf.mxu0 }
 0x36e   : > { %v7229_v27 = vpop.f32.mrf.mxu1  ;;  %v5442_v3 = vpop.f32.mrf.mxu0 }
 0x370   : > { %v5411_v8 = vpop.f32.mrf.mxu1  ;;  %v3042_v39 = vpop.f32.mrf.mxu0 }
 0x371   : > { %v2850_v17 = vadd.f32 %v5411_v8, %v7178_v35 }
 0x372   : > { %v2841_v46 = vpop.f32.mrf.mxu1  ;;  %v7238_v61 = vpop.f32.mrf.mxu0 }
 0x373   : > { %v2842_v42 = vadd.f32 %v2841_v46, %v7182_v1  ;;  %v7234_v50 = vadd.f32 %v5429_v51, %v2850_v17 }
 0x374   : > { %v5412_v25 = vpop.f32.mrf.mxu1  ;;  %v7243_v35 = vpop.f32.mrf.mxu0 }
 0x375   : > { %v2853_v10 = vadd.f32 %v5412_v25, %v5394_v63  ;;  %v7236_v49 = vadd.f32 %v2991_v29, %v2842_v42 }
 0x376   : > { %v2844_v37 = vpop.f32.mrf.mxu1  ;;  %v7248_v44 = vpop.f32.mrf.mxu0 }
 0x377   : > { %v2845_v13 = vadd.f32 %v2844_v37, %v7188_v9  ;;  %v7241_v24 = vadd.f32 %v5430_v31, %v2853_v10 }
 0x378   : > { %v5415_v62 = vpop.f32.mrf.mxu1  ;;  %v7253_v14 = vpop.f32.mrf.mxu0 }
 0x379   : > { %v2866_v47 = vadd.f32 %v5415_v62, %v7190_v30  ;;  %v7246_v1 = vadd.f32 %v2994_v52, %v2845_v13 }
 0x37a   : > { %v2857_v51 = vpop.f32.mrf.mxu1  ;;  %v7258_v23 = vpop.f32.mrf.mxu0 }
 0x37b   : > { %v2858_v63 = vadd.f32 %v2857_v51, %v7194_v43  ;;  %v7251_v29 = vadd.f32 %v5433_v33, %v2866_v47 }
 0x37c   : > { %v5416_v55 = vpop.f32.mrf.mxu1  ;;  %v7263_v19 = vpop.f32.mrf.mxu0 }
 0x37d   : > { %v2869_v9 = vadd.f32 %v5416_v55, %v7198_v6  ;;  %v7256_v31 = vadd.f32 %v3007_v34, %v2858_v63 }
 0x37e   : > { %v2860_v54 = vpop.f32.mrf.mxu1  ;;  %v7268_v7 = vpop.f32.mrf.mxu0 }
 0x37f   : > { %v2861_v30 = vadd.f32 %v2860_v54, %v7202_v5  ;;  %v7261_v2 = vadd.f32 %v5434_v18, %v2869_v9 }
 0x380   : > { %v5419_v52 = vpop.f32.mrf.mxu1  ;;  %v7273_v16 = vpop.f32.mrf.mxu0 }
 0x381   : > { %v2882_v43 = vadd.f32 %v5419_v52, %v7204_v36  ;;  %v7266_v33 = vadd.f32 %v3010_v28, %v2861_v30 }
 0x382   : > { %v2873_v58 = vpop.f32.mrf.mxu1  ;;  %v7278_v26 = vpop.f32.mrf.mxu0 }
 0x383   : > { %v2874_v6 = vadd.f32 %v2873_v58, %v7206_v0  ;;  %v7271_v34 = vadd.f32 %v5437_v57, %v2882_v43 }
 0x384   : > { %v5420_v21 = vpop.f32.mrf.mxu1  ;;  %v7283_v4 = vpop.f32.mrf.mxu0 }
 0x385   : > { %v2885_v5 = vadd.f32 %v5420_v21, %v7212_v41  ;;  %v7276_v18 = vadd.f32 %v3023_v38, %v2874_v6 }
 0x386   : > { %v2876_v11 = vpop.f32.mrf.mxu1  ;;  %v7288_v60 = vpop.f32.mrf.mxu0 }
 0x387   : > { %v2877_v36 = vadd.f32 %v2876_v11, %v7215_v40  ;;  %v7281_v28 = vadd.f32 %v5438_v53, %v2885_v5 }
 0x388   : > { %v5423_v45 = vpop.f32.mrf.mxu1  ;;  %v7293_v8 = vpop.f32.mrf.mxu0 }
 0x389   : > { %v2898_v0 = vadd.f32 %v5423_v45, %v7218_v56  ;;  %v7286_v57 = vadd.f32 %v3026_v20, %v2877_v36  ;;  %7804 = vst [vmem:[#allocation10_spill] sm:$0xff] %v7293_v8 }
 0x38a   : > { %v2889_v22 = vpop.f32.mrf.mxu1  ;;  %v7298_v46 = vpop.f32.mrf.mxu0 }
 0x38b   : > { %v2890_v41 = vadd.f32 %v2889_v22, %v7220_v59  ;;  %v7291_v38 = vadd.f32 %v5441_v48, %v2898_v0  ;;  %7806 = vst [vmem:[#allocation16_spill] sm:$0xff] %v7298_v46 }
 0x38c   : > { %v5424_v32 = vpop.f32.mrf.mxu1  ;;  %v7303_v25 = vpop.f32.mrf.mxu0 }
 0x38d   : > { %v2901_v40 = vadd.f32 %v5424_v32, %v7226_v15  ;;  %v7296_v53 = vadd.f32 %v3039_v12, %v2890_v41  ;;  %7808 = vst [vmem:[#allocation7_spill] sm:$0xff] %v7303_v25 }
 0x38e   : > { %v2892_v17 = vpop.f32.mrf.mxu1  ;;  %v7307_v10 = vpop.f32.mrf.mxu0 }
 0x38f   : > { %7805 = vst [vmem:[#allocation6_spill] sm:$0xff] %v7296_v53  ;;  %v2893_v56 = vadd.f32 %v2892_v17, %v7229_v27  ;;  %v7301_v20 = vadd.f32 %v5442_v3, %v2901_v40  ;;  %7810 = vst [vmem:[#allocation13_spill] sm:$0xff] %v7307_v10 }
 0x390   : > { %v5447_v42 = vpop.f32.mrf.mxu1  ;;  %v7309_v13 = vpop.f32.mrf.mxu0 }
 0x391   : > { %7807 = vst [vmem:[#allocation11_spill] sm:$0xff] %v7301_v20  ;;  %v7305_v59 = vadd.f32 %v3042_v39, %v2893_v56  ;;  %7811 = vst [vmem:[#allocation8_spill] sm:$0xff] %v7309_v13 }
 0x392   : > { %v3158_v48 = vpop.f32.mrf.mxu1  ;;  %v7311_v12 = vpop.f32.mrf.mxu0 }
 0x393   : > { %7809 = vst [vmem:[#allocation17_spill] sm:$0xff] %v7305_v59 }
 0x394   : > { %v5448_v37 = vpop.f32.mrf.mxu1  ;;  %v7313_v47 = vpop.f32.mrf.mxu0 }
 0x396   : > { %v3161_v15 = vpop.f32.mrf.mxu1  ;;  %v7315_v3 = vpop.f32.mrf.mxu0 }
 0x398   : > { %v5451_v62 = vpop.f32.mrf.mxu1  ;;  %v7317_v63 = vpop.f32.mrf.mxu0 }
 0x39a   : > { %v3174_v27 = vpop.f32.mrf.mxu1  ;;  %v7319_v55 = vpop.f32.mrf.mxu0 }
 0x39c   : > { %v5452_v51 = vpop.f32.mrf.mxu1  ;;  %v7321_v54 = vpop.f32.mrf.mxu0 }
 0x39d   : > { %7812 = vst [vmem:[#allocation18_spill] sm:$0xff] %v7321_v54 }
 0x39e   : > { %v3177_v39 = vpop.f32.mrf.mxu1  ;;  %v7325_v52 = vpop.f32.mrf.mxu0 }
 0x39f   : > { %7813 = vst [vmem:[#allocation14_spill] sm:$0xff] %v7325_v52 }
 0x3a0   : > { %v5455_v9 = vpop.f32.mrf.mxu1  ;;  %v7327_v58 = vpop.f32.mrf.mxu0 }
 0x3a1   : > { %7814 = vst [vmem:[#allocation9_spill] sm:$0xff] %v7327_v58 }
 0x3a2   : > { %v7323_v30 = vpop.f32.mrf.mxu1  ;;  %v7331_v21 = vpop.f32.mrf.mxu0 }
 0x3a3   : > { %7815 = vst [vmem:[#allocation19_spill] sm:$0xff] %v7331_v21 }
 0x3a4   : > { %v5456_v43 = vpop.f32.mrf.mxu1  ;;  %v7335_v11 = vpop.f32.mrf.mxu0 }
 0x3a5   : > { %7816 = vst [vmem:[#allocation15_spill] sm:$0xff] %v7335_v11 }
 0x3a6   : > { %v7329_v6 = vpop.f32.mrf.mxu1  ;;  %v7339_v45 = vpop.f32.mrf.mxu0 }
 0x3a7   : > { %7818 = vst [vmem:[#allocation3_spill] sm:$0xff] %v7339_v45 }
 0x3a8   : > { %v7333_v5 = vpop.f32.mrf.mxu1  ;;  %v7343_v22 = vpop.f32.mrf.mxu0 }
 0x3a9   : > { %7820 = vst [vmem:[#allocation20_spill] sm:$0xff] %v7343_v22 }
 0x3aa   : > { %v7337_v36 = vpop.f32.mrf.mxu1  ;;  %v7347_v32 = vpop.f32.mrf.mxu0 }
 0x3ab   : > { %7817 = vst [vmem:[#allocation12_spill] sm:$0xff] %v7337_v36  ;;  %7822 = vst [vmem:[#allocation22_spill] sm:$0xff] %v7347_v32  ;;  %v3221_v36 = vadd.f32 %v3158_v48, %v7236_v49 }
 0x3ac   : > { %v7341_v0 = vpop.f32.mrf.mxu1  ;;  %v7349_v17 = vpop.f32.mrf.mxu0 }
 0x3ad   : > { %7819 = vst [vmem:[#allocation5_spill] sm:$0xff] %v7341_v0  ;;  %7823 = vst [vmem:[#allocation23_spill] sm:$0xff] %v7349_v17 }
 0x3ae   : > { %v7345_v41 = vpop.f32.mrf.mxu1  ;;  %v7351_v13 = vpop.f32.mrf.mxu0 }
 0x3af   : > { %7821 = vst [vmem:[#allocation21_spill] sm:$0xff] %v7345_v41  ;;  %7824 = vst [vmem:[#allocation24_spill] sm:$0xff] %v7351_v13 }
 0x3b0   : > { %v5483_v40 = vpop.f32.mrf.mxu1  ;;  %v7353_v11 = vpop.f32.mrf.mxu0 }
 0x3b1   : > { %7825 = vst [vmem:[#allocation25_spill] sm:$0xff] %v7353_v11  ;;  %v3223_v11 = vadd.f32 %v5447_v42, %v7234_v50  ;;  %v3227_v50 = vadd.f32 %v5451_v62, %v7251_v29  ;;  %v3226_v29 = vadd.f32 %v3177_v39, %v7266_v33 }
 0x3b2   : > { %v3490_v56 = vpop.f32.mrf.mxu1  ;;  %v5537_v59 = vpop.f32.mrf.mxu0 }
 0x3b3   : > { %v3393_v62 = vadd.f32 %v7258_v23, %v3227_v50  ;;  %v7406_v23 = vld [vmem:[%s7761_s6] ss:$0 sm:$0xff] }
 0x3b4   : > { %v5484_v10 = vpop.f32.mrf.mxu1  ;;  %v3989_v21 = vpop.f32.mrf.mxu0 }
 0x3b6   : > { %v3493_v25 = vpop.f32.mrf.mxu1  ;;  %v5538_v22 = vpop.f32.mrf.mxu0 }
 0x3b8   : > { %v5487_v45 = vpop.f32.mrf.mxu1  ;;  %v7359_v32 = vpop.f32.mrf.mxu0 }
 0x3b9   : > { %7827 = vst [vmem:[#allocation27_spill] sm:$0xff] %v7359_v32  ;;  %v3389_v32 = vadd.f32 %v7238_v61, %v3223_v11  ;;  %v3228_v61 = vadd.f32 %v5452_v51, %v7261_v2  ;;  %v3229_v2 = vadd.f32 %v7323_v30, %v7276_v18  ;;  %v3230_v18 = vadd.f32 %v7329_v6, %v7286_v57 }
 0x3ba   : > { %v3506_v0 = vpop.f32.mrf.mxu1  ;;  %v7365_v13 = vpop.f32.mrf.mxu0 }
 0x3bb   : > { %7830 = vst [vmem:[#allocation30_spill] sm:$0xff] %v7365_v13  ;;  %v3387_v13 = vadd.f32 %v7243_v35, %v3221_v36 }
 0x3bc   : > { %v5488_v20 = vpop.f32.mrf.mxu1  ;;  %v7373_v54 = vpop.f32.mrf.mxu0 }
 0x3bd   : > { %v3553_v48 = vadd.f32 %v3490_v56, %v3387_v13 }
 0x3be   : > { %v7355_v58 = vpop.f32.mrf.mxu1  ;;  %v7384_v49 = vpop.f32.mrf.mxu0 }
 0x3c0   : > { %v7357_v41 = vpop.f32.mrf.mxu1  ;;  %v7396_v36 = vpop.f32.mrf.mxu0 }
 0x3c1   : > { %7826 = vst [vmem:[#allocation26_spill] sm:$0xff] %v7357_v41  ;;  %v3224_v41 = vadd.f32 %v5448_v37, %v7241_v24  ;;  %v3225_v24 = vadd.f32 %v3174_v27, %v7256_v31  ;;  %v3720_v27 = vadd.f32 %v7313_v47, %v3553_v48 }
 0x3c2   : > { %v7361_v17 = vpop.f32.mrf.mxu1  ;;  %v7414_v39 = vpop.f32.mrf.mxu0 }
 0x3c3   : > { %7828 = vst [vmem:[#allocation28_spill] sm:$0xff] %v7361_v17  ;;  %v3555_v17 = vadd.f32 %v5483_v40, %v3389_v32 }
 0x3c4   : > { %v7363_v46 = vpop.f32.mrf.mxu1 }
 0x3c5   : > { %7829 = vst [vmem:[#allocation29_spill] sm:$0xff] %v7363_v46  ;;  %v3222_v46 = vadd.f32 %v3161_v15, %v7246_v1  ;;  %v3722_v35 = vadd.f32 %v7311_v12, %v3555_v17  ;;  %v3231_v15 = vadd.f32 %v5455_v9, %v7271_v34  ;;  %v3394_v34 = vadd.f32 %v7268_v7, %v3228_v61  ;;  %v4021_v17 = vpop.f32.mrf.mxu0  ;;  %v7836_v61 = vld [vmem:[#allocation12_spill] sm:$0xff] }
 0x3c6   : > { %v7368_v52 = vpop.f32.mrf.mxu1 }
 0x3c7   : > { %v3388_v1 = vadd.f32 %v7253_v14, %v3222_v46  ;;  %v3232_v14 = vadd.f32 %v5456_v43, %v7281_v28  ;;  %v3391_v46 = vadd.f32 %v7263_v19, %v3225_v24  ;;  %v3392_v28 = vadd.f32 %v7273_v16, %v3226_v29  ;;  %v7835_v24 = vld [vmem:[#allocation6_spill] sm:$0xff] }
 0x3c8   : > { %v7371_v53 = vpop.f32.mrf.mxu1  ;;  %v3397_v19 = vadd.f32 %v7278_v26, %v3231_v15  ;;  %v7839_v15 = vld [vmem:[#allocation30_spill] sm:$0xff] }
 0x3c9   : > { %7831 = vst [vmem:[#allocation31_spill] sm:$0xff] %v7371_v53  ;;  %v3390_v53 = vadd.f32 %v7248_v44, %v3224_v41  ;;  %v3554_v44 = vadd.f32 %v3493_v25, %v3388_v1  ;;  %v3557_v47 = vadd.f32 %v3506_v0, %v3391_v46  ;;  %v3398_v57 = vadd.f32 %v7288_v60, %v3232_v14  ;;  %v7832_v41 = vld [vmem:[#allocation10_spill] sm:$0xff]  ;;  %v7841_v14 = vld [vmem:[#allocation16_spill] sm:$0xff] }
 0x3ca   : > { %v7377_v8 = vpop.f32.mrf.mxu1  ;;  %v7833_v60 = vld [vmem:[#allocation18_spill] sm:$0xff] }
 0x3cb   : > { %v3556_v11 = vadd.f32 %v5484_v10, %v3390_v53  ;;  %v3559_v53 = vadd.f32 %v5487_v45, %v3393_v62  ;;  %v3721_v43 = vadd.f32 %v7317_v63, %v3554_v44  ;;  %v3235_v63 = vadd.f32 %v7333_v5, %v7291_v38  ;;  %v7837_v38 = vld [vmem:[#allocation26_spill] sm:$0xff] }
 0x3cc   : > { %v7382_v42 = vpop.f32.mrf.mxu1  ;;  %v3724_v40 = vadd.f32 %v7833_v60, %v3557_v47  ;;  %v3563_v5 = vadd.f32 %v7837_v38, %v3397_v19  ;;  %v7838_v1 = vld [vmem:[#allocation14_spill] sm:$0xff]  ;;  %v7843_v19 = vld [vmem:[#allocation11_spill] sm:$0xff] }
 0x3cd   : > { %v3723_v12 = vadd.f32 %v7315_v3, %v3556_v11  ;;  %v3395_v3 = vadd.f32 %v7283_v4, %v3229_v2  ;;  %v3726_v16 = vadd.f32 %v7319_v55, %v3559_v53  ;;  %v3396_v4 = vadd.f32 %v7832_v41, %v3230_v18  ;;  %v7834_v55 = vld [vmem:[#allocation27_spill] sm:$0xff] }
 0x3ce   : > { %v7388_v37 = vpop.f32.mrf.mxu1  ;;  %v3233_v11 = vadd.f32 %v7836_v61, %v7835_v24  ;;  %v3401_v53 = vadd.f32 %v7841_v14, %v3235_v63  ;;  %v7847_v63 = vld [vmem:[#allocation17_spill] sm:$0xff]  ;;  %v7854_v14 = vld [vmem:[#allocation20_spill] sm:$0xff] }
 0x3d0   : > { %v5519_v13 = vpop.f32.mrf.mxu1  ;;  %v7851_v61 = vld [vmem:[#allocation31_spill] sm:$0xff] }
 0x3d1   : > { %v3888_v31 = vadd.f32 %v5519_v13, %v3722_v35  ;;  %v3567_v38 = vadd.f32 %v7851_v61, %v3401_v53  ;;  %v7859_v61 = vld [vmem:[#allocation25_spill] sm:$0xff] }
 0x3d2   : > { %v3823_v33 = vpop.f32.mrf.mxu1 }
 0x3d3   : > { %v4054_v25 = vadd.f32 %v5537_v59, %v3888_v31  ;;  %v3886_v10 = vadd.f32 %v3823_v33, %v3720_v27  ;;  %v3560_v59 = vadd.f32 %v5488_v20, %v3394_v34  ;;  %v3558_v20 = vadd.f32 %v7355_v58, %v3392_v28  ;;  %v7840_v27 = vld [vmem:[#allocation28_spill] sm:$0xff]  ;;  %v7842_v34 = vld [vmem:[#allocation9_spill] sm:$0xff] }
 0x3d4   : > { %v5520_v51 = vpop.f32.mrf.mxu1  ;;  %v3561_v2 = vadd.f32 %v7840_v27, %v3395_v3 }
 0x3d5   : > { %v4052_v9 = vadd.f32 %v3989_v21, %v3886_v10  ;;  %v3889_v30 = vadd.f32 %v5520_v51, %v3723_v12  ;;  %v7418_v7 = vadd.f32 %v7406_v23, %v4054_v25  ;;  %v3727_v35 = vadd.f32 %v7838_v1, %v3560_v59  ;;  %v5546_v10 = vpop.f32.mrf.mxu0  ;;  %v7844_v51 = vld [vmem:[#allocation5_spill] sm:$0xff] }
 0x3d6   : > { %v3826_v6 = vpop.f32.mrf.mxu1  ;;  %v3725_v25 = vadd.f32 %v7842_v34, %v3558_v20  ;;  %v7848_v20 = vld [vmem:[#allocation21_spill] sm:$0xff] }
 0x3d7   : > { %v4055_v45 = vadd.f32 %v5538_v22, %v3889_v30  ;;  %v3887_v26 = vadd.f32 %v3826_v6, %v3721_v43  ;;  %v4093_v0 = vmul.f32 %v7418_v7, %v7418_v7  ;;  %v7426_v21 = vadd.f32 %v7406_v23, %v4052_v9  ;;  %v7845_v30 = vld [vmem:[#allocation29_spill] sm:$0xff]  ;;  %v7846_v6 = vld [vmem:[#allocation19_spill] sm:$0xff] }
 0x3d8   : > { %v5523_v32 = vpop.f32.mrf.mxu1  ;;  %v3236_v9 = vadd.f32 %v7844_v51, %v7843_v19  ;;  %v3564_v43 = vadd.f32 %v7845_v30, %v3398_v57  ;;  %v3234_v41 = vadd.f32 %v7848_v20, %v7847_v63  ;;  %v7849_v57 = vld [vmem:[#allocation7_spill] sm:$0xff]  ;;  %v7858_v20 = vld [vmem:[#allocation24_spill] sm:$0xff] }
 0x3d9   : > { %v4053_v22 = vadd.f32 %v7834_v55, %v3887_v26  ;;  %v3892_v56 = vadd.f32 %v5523_v32, %v3726_v16  ;;  %v4113_v50 = vsel %vm2200_vm2, %v4093_v0, 0.0  ;;  %v4091_v48 = vmul.f32 %v7426_v21, %v7426_v21  ;;  %v4024_v55 = vpop.f32.mrf.mxu0 }
 0x3da   : > { %4114 = vadd.xlane.f32.xlu1 %v4113_v50  ;;  %v3839_v58 = vpop.f32.mrf.mxu1  ;;  %v7442_v29 = vadd.f32 %v7406_v23, %v4055_v45  ;;  %v3730_v16 = vadd.f32 %v7846_v6, %v3563_v5  ;;  %v3562_v32 = vadd.f32 %v7368_v52, %v3396_v4  ;;  %v3399_v60 = vadd.f32 %v7849_v57, %v3233_v11  ;;  %v7850_v50 = vld [vmem:[#allocation15_spill] sm:$0xff] }
 0x3db   : > { %v4058_v62 = vadd.f32 %v7839_v15, %v3892_v56  ;;  %v3890_v13 = vadd.f32 %v3839_v58, %v3724_v40  ;;  %v4107_v44 = vsel %vm2200_vm2, %v4091_v48, 0.0  ;;  %v7447_v31 = vadd.f32 %v7406_v23, %v4053_v22  ;;  %v7852_v52 = vld [vmem:[#allocation3_spill] sm:$0xff] }
 0x3dc   : > { %v5524_v46 = vpop.f32.mrf.mxu1  ;;  %4108 = vadd.xlane.f32.xlu0 %v4107_v44  ;;  %v4094_v33 = vmul.f32 %v7442_v29, %v7442_v29  ;;  %v3728_v48 = vadd.f32 %v7850_v50, %v3561_v2  ;;  %v3731_v4 = vadd.f32 %v7852_v52, %v3564_v43  ;;  %v5549_v2 = vpop.f32.mrf.mxu0  ;;  %v3729_v53 = vadd.f32 %v7854_v14, %v3562_v32  ;;  %v7857_v6 = vld [vmem:[#allocation23_spill] sm:$0xff] }
 0x3dd   : > { %v4056_v12 = vadd.f32 %v7373_v54, %v3890_v13  ;;  %v3893_v18 = vadd.f32 %v5524_v46, %v3727_v35  ;;  %v4092_v47 = vmul.f32 %v7447_v31, %v7447_v31  ;;  %v7458_v28 = vadd.f32 %v7406_v23, %v4058_v62  ;;  %v7853_v13 = vld [vmem:[#allocation13_spill] sm:$0xff] }
 0x3de   : > { %v4116_v59 = vsel %vm2200_vm2, %v4094_v33, 0.0  ;;  %v3842_v3 = vpop.f32.mrf.mxu1  ;;  %v3565_v62 = vadd.f32 %v7377_v8, %v3399_v60  ;;  %v3402_v44 = vadd.f32 %v7853_v13, %v3236_v9 }
 0x3df   : > { %v4059_v45 = vadd.f32 %v7384_v49, %v3893_v18  ;;  %4117 = vadd.xlane.f32.xlu1 %v4116_v59  ;;  %v3891_v54 = vadd.f32 %v3842_v3, %v3725_v25  ;;  %v4110_v26 = vsel %vm2200_vm2, %v4092_v47, 0.0  ;;  %v4097_v0 = vmul.f32 %v7458_v28, %v7458_v28  ;;  %v7856_v47 = vld [vmem:[#allocation22_spill] sm:$0xff]  ;;  %v4037_v3 = vpop.f32.mrf.mxu0 }
 0x3e0   : > { %v5527_v40 = vpop.f32.mrf.mxu1  ;;  %4111 = vadd.xlane.f32.xlu0 %v4110_v26  ;;  %v7474_v22 = vadd.f32 %v7406_v23, %v4056_v12  ;;  %v3568_v25 = vadd.f32 %v7382_v42, %v3402_v44  ;;  %v7855_v12 = vld [vmem:[#allocation8_spill] sm:$0xff]  ;;  %v3734_v19 = vadd.f32 %v7856_v47, %v3567_v38 }
 0x3e1   : > { %v4057_v49 = vadd.f32 %v7396_v36, %v3891_v54  ;;  %v3896_v56 = vadd.f32 %v5527_v40, %v3730_v16  ;;  %v7479_v24 = vadd.f32 %v7406_v23, %v4059_v45  ;;  %v4125_v11 = vsel %vm2200_vm2, %v4097_v0, 0.0 }
 0x3e2   : > { %v3855_v5 = vpop.f32.mrf.mxu1  ;;  %v4095_v58 = vmul.f32 %v7474_v22, %v7474_v22  ;;  %v3400_v18 = vadd.f32 %v7855_v12, %v3234_v41  ;;  %v3732_v16 = vadd.f32 %v7857_v6, %v3565_v62  ;;  %v3735_v41 = vadd.f32 %v7858_v20, %v3568_v25 }
 0x3e3   : > { %v4062_v1 = vadd.f32 %v7414_v39, %v3896_v56  ;;  %v3894_v35 = vadd.f32 %v3855_v5, %v3728_v48  ;;  %v4098_v36 = vmul.f32 %v7479_v24, %v7479_v24  ;;  %v7490_v15 = vadd.f32 %v7406_v23, %v4057_v49 }
 0x3e4   : > { %v5528_v27 = vpop.f32.mrf.mxu1  ;;  %4126 = vadd.xlane.f32.xlu0 %v4125_v11  ;;  %v3566_v59 = vadd.f32 %v7388_v37, %v3400_v18 }
 0x3e5   : > { %v4060_v46 = vadd.f32 %v4021_v17, %v3894_v35  ;;  %v3897_v33 = vadd.f32 %v5528_v27, %v3731_v4  ;;  %v4128_v39 = vsel %vm2200_vm2, %v4098_v36, 0.0  ;;  %v4096_v34 = vmul.f32 %v7490_v15, %v7490_v15 }
 0x3e6   : > { %4129 = vadd.xlane.f32.xlu1 %v4128_v39  ;;  %v3858_v8 = vpop.f32.mrf.mxu1  ;;  %v7502_v51 = vadd.f32 %v7406_v23, %v4062_v1  ;;  %v4119_v17 = vsel %vm2200_vm2, %v4095_v58, 0.0  ;;  %v3733_v38 = vadd.f32 %v7859_v61, %v3566_v59  ;;  %v4203_v59 = vld [vmem:[%s7762_s7] sm:$0x1] }
 0x3e7   : > { %v4063_v9 = vadd.f32 %v5546_v10, %v3897_v33  ;;  %v3895_v30 = vadd.f32 %v3858_v8, %v3729_v53  ;;  %v7506_v43 = vadd.f32 %v7406_v23, %v4060_v46  ;;  %v4122_v10 = vsel %vm2200_vm2, %v4096_v34, 0.0 }
 0x3e8   : > { %v5531_v42 = vpop.f32.mrf.mxu1  ;;  %4120 = vadd.xlane.f32.xlu0 %v4119_v17  ;;  %v4101_v45 = vmul.f32 %v7502_v51, %v7502_v51  ;;  %v4204_v6 = vmul.f32 2.828427, %v4203_v59 }
 0x3e9   : > { %v4061_v54 = vadd.f32 %v4024_v55, %v3895_v30  ;;  %v3900_v26 = vadd.f32 %v5531_v42, %v3734_v19  ;;  %v7514_v0 = vadd.f32 %v7406_v23, %v4063_v9  ;;  %v4099_v37 = vmul.f32 %v7506_v43, %v7506_v43  ;;  %v5550_v55 = vpop.f32.mrf.mxu0 }
 0x3ea   : > { %v3871_v63 = vpop.f32.mrf.mxu1  ;;  %4123 = vadd.xlane.f32.xlu1 %v4122_v10  ;;  %v4137_v60 = vsel %vm2200_vm2, %v4101_v45, 0.0  ;;  %v7860_v10 = vld [vmem:[#allocation4_spill] sm:$0xff] }
 0x3eb   : > { %v4066_v32 = vadd.f32 %v5549_v2, %v3900_v26  ;;  %v3898_v57 = vadd.f32 %v3871_v63, %v3732_v16  ;;  %v4102_v40 = vmul.f32 %v7514_v0, %v7514_v0  ;;  %v7523_v56 = vadd.f32 %v7406_v23, %v4061_v54  ;;  %v4040_v62 = vpop.f32.mrf.mxu0 }
 0x3ec   : > { %v5532_v49 = vpop.f32.mrf.mxu1  ;;  %4138 = vadd.xlane.f32.xlu0 %v4137_v60  ;;  %v4131_v4 = vsel %vm2200_vm2, %v4099_v37, 0.0  ;;  %v7559_v63 = vrot.slane %v4204_v6, %v7860_v10 }
 0x3ed   : > { %v4064_v50 = vadd.f32 %v4037_v3, %v3898_v57  ;;  %v3901_v48 = vadd.f32 %v5532_v49, %v3735_v41  ;;  %v4140_v5 = vsel %vm2200_vm2, %v4102_v40, 0.0  ;;  %v4100_v11 = vmul.f32 %v7523_v56, %v7523_v56 }
 0x3ee   : > { %v3874_v52 = vpop.f32.mrf.mxu1  ;;  %4141 = vadd.xlane.f32.xlu1 %v4140_v5  ;;  %v7534_v36 = vadd.f32 %v7406_v23, %v4066_v32 }
 0x3ef   : > { %v4067_v58 = vadd.f32 %v5550_v55, %v3901_v48  ;;  %v3899_v1 = vadd.f32 %v3874_v52, %v3733_v38  ;;  %v7531_v35 = vadd.f32 %v7406_v23, %v4064_v50  ;;  %v4134_v44 = vsel %vm2200_vm2, %v4100_v11, 0.0 }
 0x3f0   : > { %4132 = vadd.xlane.f32.xlu0 %v4131_v4  ;;  %v4105_v53 = vmul.f32 %v7534_v36, %v7534_v36  ;;  %v7566_v48 = vpop.f32.mrf.mxu1 }
 0x3f1   : > { %v4065_v13 = vadd.f32 %v4040_v62, %v3899_v1  ;;  %v4103_v27 = vmul.f32 %v7531_v35, %v7531_v35  ;;  %v7546_v46 = vadd.f32 %v7406_v23, %v4067_v58 }
 0x3f2   : > { %4135 = vadd.xlane.f32.xlu1 %v4134_v44  ;;  %v4149_v34 = vsel %vm2200_vm2, %v4105_v53, 0.0 }
 0x3f3   : > { %v4143_v2 = vsel %vm2200_vm2, %v4103_v27, 0.0  ;;  %v7541_v14 = vadd.f32 %v7406_v23, %v4065_v13  ;;  %v4106_v25 = vmul.f32 %v7546_v46, %v7546_v46  ;;  %v7575_v13 = vpop.f32.mrf.mxu1 }
 0x3f4   : > { %4144 = vadd.xlane.f32.xlu0 %v4143_v2 }
 0x3f5   : > { %v4104_v33 = vmul.f32 %v7541_v14, %v7541_v14  ;;  %v4152_v12 = vsel %vm2200_vm2, %v4106_v25, 0.0 }
 0x3f7   : > { %v4146_v39 = vsel %vm2200_vm2, %v4104_v33, 0.0 }
 0x3f8   : > { %4147 = vadd.xlane.f32.xlu1 %v4146_v39  ;;  %4150 = vadd.xlane.f32.xlu0 %v4149_v34 }
 0x3fc   : > { %4153 = vadd.xlane.f32.xlu1 %v4152_v12  ;;  %v7586_v12 = vpop.f32.mrf.mxu1 }
 0x463   : > { %v4115_v18 = vpop.xlane.xlu1 %4114 }
 0x464   : > { %v4157_v8 = vmax.f32 %v4115_v18, 1e-24 }
 0x465   : > { %v4109_v23 = vpop.xlane.xlu0 %4108 }
 0x466   : > { %5756 = vrsqrt.f32 %v4157_v8  ;;  %v4155_v47 = vmax.f32 %v4109_v23, 1e-24 }
 0x468   : > { %5758 = vrsqrt.f32 %v4155_v47  ;;  %v4118_v19 = vpop.xlane.xlu1 %4117 }
 0x469   : > { %v4158_v9 = vmax.f32 %v4118_v19, 1e-24  ;;  %v4112_v30 = vpop.xlane.xlu0 %4111 }
 0x46a   : > { %v4156_v17 = vmax.f32 %v4112_v30, 1e-24 }
 0x46b   : > { %5760 = vrsqrt.f32 %v4158_v9 }
 0x46c   : > { %5762 = vrsqrt.f32 %v4156_v17 }
 0x46d   : > { %v4127_v3 = vpop.xlane.xlu0 %4126 }
 0x46e   : > { %v4161_v42 = vmax.f32 %v4127_v3, 1e-24  ;;  %v7594_v3 = vpop.f32.mrf.mxu1 }
 0x46f   : > { %v4130_v16 = vpop.xlane.xlu1 %4129 }
 0x470   : > { %5764 = vrsqrt.f32 %v4161_v42  ;;  %v4162_v45 = vmax.f32 %v4130_v16, 1e-24 }
 0x471   : > { %v4121_v54 = vpop.xlane.xlu0 %4120 }
 0x472   : > { %5766 = vrsqrt.f32 %v4162_v45  ;;  %v4159_v26 = vmax.f32 %v4121_v54, 1e-24 }
 0x473   : > { %v5757_v20 = vpop.eup %5756  ;;  %v4124_v41 = vpop.xlane.xlu1 %4123 }
 0x474   : > { %5768 = vrsqrt.f32 %v4159_v26  ;;  %v4160_v37 = vmax.f32 %v4124_v41, 1e-24  ;;  %v4189_v32 = vmul.f32 %v5757_v20, %v7418_v7  ;;  %v7608_v41 = vpop.f32.mrf.mxu1 }
 0x475   : > { %v5759_v57 = vpop.eup %5758  ;;  %v4139_v60 = vpop.xlane.xlu0 %4138 }
 0x476   : > { %5770 = vrsqrt.f32 %v4160_v37  ;;  %v4165_v40 = vmax.f32 %v4139_v60, 1e-24  ;;  %v7563_v55 = vmul.f32 %v7559_v63, %v4189_v32  ;;  %v4187_v49 = vmul.f32 %v5759_v57, %v7426_v21 }
 0x477   : > { %v4142_v50 = vpop.xlane.xlu1 %4141 }
 0x478   : > { %v5761_v61 = vpop.eup %5760  ;;  %5772 = vrsqrt.f32 %v4165_v40  ;;  %v4166_v38 = vmax.f32 %v4142_v50, 1e-24  ;;  %v4961_v5 = vmul.f32 -1.442695, %v7563_v55  ;;  %v7570_v52 = vmul.f32 %v7559_v63, %v4187_v49 }
 0x479   : > { %v5763_v7 = vpop.eup %5762  ;;  %v4133_v4 = vpop.xlane.xlu0 %4132  ;;  %v4190_v11 = vmul.f32 %v5761_v61, %v7442_v29 }
 0x47a   : > { %5774 = vrsqrt.f32 %v4166_v38  ;;  %v4163_v58 = vmax.f32 %v4133_v4, 1e-24  ;;  %v4959_v1 = vmul.f32 -1.442695, %v7570_v52  ;;  %v4188_v21 = vmul.f32 %v5763_v7, %v7447_v31  ;;  %v7620_v7 = vpop.f32.mrf.mxu1 }
 0x47b   : > { %v4136_v62 = vpop.xlane.xlu1 %4135  ;;  %5776 = vpow2.f32 %v4961_v5  ;;  %v7578_v44 = vmul.f32 %v7559_v63, %v4190_v11 }
 0x47c   : > { %5778 = vrsqrt.f32 %v4163_v58  ;;  %v4164_v27 = vmax.f32 %v4136_v62, 1e-24  ;;  %v7581_v2 = vmul.f32 %v7559_v63, %v4188_v21 }
 0x47d   : > { %v5765_v53 = vpop.eup %5764  ;;  %v4145_v29 = vpop.xlane.xlu0 %4144  ;;  %5780 = vpow2.f32 %v4959_v1  ;;  %v4962_v33 = vmul.f32 -1.442695, %v7578_v44 }
 0x47e   : > { %5782 = vrsqrt.f32 %v4164_v27  ;;  %v4167_v39 = vmax.f32 %v4145_v29, 1e-24  ;;  %v4960_v31 = vmul.f32 -1.442695, %v7581_v2  ;;  %v4193_v34 = vmul.f32 %v5765_v53, %v7458_v28 }
 0x47f   : > { %v5767_v25 = vpop.eup %5766  ;;  %5784 = vpow2.f32 %v4962_v33 }
 0x480   : > { %5786 = vrsqrt.f32 %v4167_v39  ;;  %v7589_v18 = vmul.f32 %v7559_v63, %v4193_v34  ;;  %v4194_v8 = vmul.f32 %v5767_v25, %v7479_v24  ;;  %v7633_v39 = vpop.f32.mrf.mxu1 }
 0x481   : > { %v5769_v23 = vpop.eup %5768  ;;  %v4148_v47 = vpop.xlane.xlu1 %4147  ;;  %5788 = vpow2.f32 %v4960_v31 }
 0x482   : > { %v4151_v19 = vpop.xlane.xlu0 %4150  ;;  %v4168_v9 = vmax.f32 %v4148_v47, 1e-24  ;;  %v4965_v17 = vmul.f32 -1.442695, %v7589_v18  ;;  %v4191_v28 = vmul.f32 %v5769_v23, %v7474_v22  ;;  %v7597_v42 = vmul.f32 %v7559_v63, %v4194_v8 }
 0x483   : > { %v4169_v30 = vmax.f32 %v4151_v19, 1e-24  ;;  %v5771_v59 = vpop.eup %5770 }
 0x484   : > { %5790 = vrsqrt.f32 %v4168_v9  ;;  %v7600_v6 = vmul.f32 %v7559_v63, %v4191_v28  ;;  %v4192_v24 = vmul.f32 %v5771_v59, %v7490_v15  ;;  %v4966_v54 = vmul.f32 -1.442695, %v7597_v42 }
 0x485   : > { %v5773_v16 = vpop.eup %5772  ;;  %5792 = vrsqrt.f32 %v4169_v30  ;;  %v4154_v45 = vpop.xlane.xlu1 %4153  ;;  %v7647_v30 = vld [vmem:[%s7764_s9] ss:$0 sm:$0xff] }
 0x486   : > { %v4170_v26 = vmax.f32 %v4154_v45, 1e-24  ;;  %5794 = vpow2.f32 %v4965_v17  ;;  %v4963_v22 = vmul.f32 -1.442695, %v7600_v6  ;;  %v7606_v10 = vmul.f32 %v7559_v63, %v4192_v24 }
 0x487   : > { %v5775_v20 = vpop.eup %5774  ;;  %5796 = vpow2.f32 %v4966_v54  ;;  %v4197_v37 = vmul.f32 %v5773_v16, %v7502_v51 }
 0x488   : > { %v5777_v32 = vpop.eup %5776  ;;  %5798 = vrsqrt.f32 %v4170_v26  ;;  %v4964_v15 = vmul.f32 -1.442695, %v7606_v10  ;;  %v4198_v57 = vmul.f32 %v5775_v20, %v7514_v0  ;;  %v4442_v26 = vadd.f32 %v7566_v48, %v7647_v30 }
 0x489   : > { %v5779_v60 = vpop.eup %5778  ;;  %v4277_v40 = vadd.f32 1.0, %v5777_v32  ;;  %5800 = vpow2.f32 %v4963_v22  ;;  %v7614_v49 = vmul.f32 %v7559_v63, %v4197_v37 }
 0x48a   : > { %v5781_v50 = vpop.eup %5780  ;;  %5802 = vpow2.f32 %v4964_v15  ;;  %v4195_v61 = vmul.f32 %v5779_v60, %v7506_v43  ;;  %v7618_v38 = vmul.f32 %v7559_v63, %v4198_v57  ;;  %v4434_v60 = vadd.f32 %v7647_v30, %v7575_v13 }
 0x48b   : > { %v5783_v51 = vpop.eup %5782  ;;  %5804 = vrcp.f32 %v4277_v40  ;;  %v4275_v5 = vadd.f32 1.0, %v5781_v50  ;;  %v4969_v0 = vmul.f32 -1.442695, %v7614_v49 }
 0x48c   : > { %v5785_v4 = vpop.eup %5784  ;;  %v7624_v11 = vmul.f32 %v7559_v63, %v4195_v61  ;;  %v4196_v58 = vmul.f32 %v5783_v51, %v7523_v56  ;;  %v4970_v43 = vmul.f32 -1.442695, %v7618_v38 }
 0x48d   : > { %v5787_v1 = vpop.eup %5786  ;;  %5806 = vrcp.f32 %v4275_v5  ;;  %v4278_v21 = vadd.f32 1.0, %v5785_v4 }
 0x48e   : > { %v5789_v62 = vpop.eup %5788  ;;  %5808 = vpow2.f32 %v4969_v0  ;;  %v4967_v27 = vmul.f32 -1.442695, %v7624_v11  ;;  %v7630_v53 = vmul.f32 %v7559_v63, %v4196_v58  ;;  %v4199_v29 = vmul.f32 %v5787_v1, %v7531_v35  ;;  %v7641_v35 = vpop.f32.mrf.mxu1 }
 0x48f   : > { %5810 = vrcp.f32 %v4278_v21  ;;  %v4276_v33 = vadd.f32 1.0, %v5789_v62  ;;  %v4437_v62 = vadd.f32 %v7647_v30, %v7594_v3 }
 0x490   : > { %5812 = vpow2.f32 %v4967_v27  ;;  %v4968_v56 = vmul.f32 -1.442695, %v7630_v53  ;;  %v7637_v31 = vmul.f32 %v7559_v63, %v4199_v29  ;;  %v7659_v20 = vpop.f32.mrf.mxu1 }
 0x491   : > { %v5791_v34 = vpop.eup %5790  ;;  %5814 = vrcp.f32 %v4276_v33 }
 0x492   : > { %v5793_v25 = vpop.eup %5792  ;;  %5816 = vpow2.f32 %v4970_v43  ;;  %v4971_v8 = vmul.f32 -1.442695, %v7637_v31  ;;  %v4200_v23 = vmul.f32 %v5791_v34, %v7541_v14  ;;  %v7672_v5 = vpop.f32.mrf.mxu1 }
 0x493   : > { %v5795_v47 = vpop.eup %5794  ;;  %5818 = vpow2.f32 %v4968_v56  ;;  %v4201_v19 = vmul.f32 %v5793_v25, %v7534_v36  ;;  %v4458_v25 = vadd.f32 %v7608_v41, %v7647_v30 }
 0x494   : > { %v5797_v9 = vpop.eup %5796  ;;  %v4281_v17 = vadd.f32 1.0, %v5795_v47  ;;  %5820 = vpow2.f32 %v4971_v8  ;;  %v7650_v28 = vmul.f32 %v7559_v63, %v4200_v23  ;;  %v5564_v27 = vpop.f32.mrf.mxu1 }
 0x495   : > { %v5799_v59 = vpop.eup %5798  ;;  %v4282_v24 = vadd.f32 1.0, %v5797_v9  ;;  %v7653_v14 = vmul.f32 %v7559_v63, %v4201_v19 }
 0x496   : > { %v5801_v16 = vpop.eup %5800  ;;  %5822 = vrcp.f32 %v4281_v17  ;;  %v4202_v36 = vmul.f32 %v5799_v59, %v7546_v46  ;;  %v4972_v45 = vmul.f32 -1.442695, %v7650_v28  ;;  %v4468_v3 = vpop.f32.mrf.mxu1 }
 0x497   : > { %v5803_v54 = vpop.eup %5802  ;;  %v4279_v22 = vadd.f32 1.0, %v5801_v16  ;;  %5824 = vrcp.f32 %v4282_v24  ;;  %v4973_v37 = vmul.f32 -1.442695, %v7653_v14 }
 0x498   : > { %v5805_v32 = vpop.eup %5804  ;;  %v4280_v15 = vadd.f32 1.0, %v5803_v54  ;;  %v7663_v57 = vmul.f32 %v7559_v63, %v4202_v36  ;;  %5826 = vpow2.f32 %v4972_v45  ;;  %v4445_v63 = vadd.f32 %v7586_v12, %v7647_v30  ;;  %v5567_v54 = vpop.f32.mrf.mxu1 }
 0x499   : > { %v4325_v46 = vmul.f32 %v5805_v32, %v7563_v55  ;;  %5828 = vrcp.f32 %v4279_v22 }
 0x49a   : > { %v5807_v48 = vpop.eup %5806  ;;  %5830 = vrcp.f32 %v4280_v15  ;;  %v4974_v40 = vmul.f32 -1.442695, %v7663_v57 }
 0x49b   : > { %v5809_v50 = vpop.eup %5808  ;;  %v4498_v61 = vadd.f32 %v4442_v26, %v4325_v46  ;;  %v4323_v51 = vmul.f32 %v5807_v48, %v7570_v52  ;;  %5832 = vpow2.f32 %v4973_v37 }
 0x49c   : > { %v5811_v55 = vpop.eup %5810  ;;  %v4285_v0 = vadd.f32 1.0, %v5809_v50  ;;  %5834 = vpow2.f32 %v4974_v40  ;;  %v4477_v50 = vadd.f32 %v5564_v27, %v7647_v30 }
 0x49d   : > { %v5813_v13 = vpop.eup %5812  ;;  %4514 = vst.msk [vmem:[%s6015_s29 + $0x10] sm:$0xff] %vm2200_vm2, %v4498_v61  ;;  %v4496_v4 = vadd.f32 %v4434_v60, %v4323_v51  ;;  %v4326_v58 = vmul.f32 %v5811_v55, %v7578_v44 }
 0x49e   : > { %v5815_v1 = vpop.eup %5814  ;;  %5836 = vrcp.f32 %v4285_v0  ;;  %v4283_v21 = vadd.f32 1.0, %v5813_v13 }
 0x49f   : > { %v5817_v52 = vpop.eup %5816  ;;  %4512 = vst.msk [vmem:[%s6015_s29] sm:$0xff] %vm2200_vm2, %v4496_v4  ;;  %v4499_v12 = vadd.f32 %v4445_v63, %v4326_v58  ;;  %v4324_v43 = vmul.f32 %v5815_v1, %v7581_v2  ;;  %v4461_v2 = vadd.f32 %v7633_v39, %v7647_v30  ;;  %v4450_v39 = vadd.f32 %v7647_v30, %v7620_v7 }
 0x4a0   : > { %v5819_v29 = vpop.eup %5818  ;;  %5838 = vrcp.f32 %v4283_v21  ;;  %v4286_v33 = vadd.f32 1.0, %v5817_v52  ;;  %v4474_v7 = vadd.f32 %v7659_v20, %v7647_v30  ;;  %v4466_v20 = vadd.f32 %v7647_v30, %v7672_v5 }
 0x4a1   : > { %v5821_v56 = vpop.eup %5820  ;;  %4515 = vst.msk [vmem:[%s6015_s29 + $0x18] sm:$0xff] %vm2200_vm2, %v4499_v12  ;;  %v4497_v44 = vadd.f32 %v4437_v62, %v4324_v43  ;;  %v4284_v34 = vadd.f32 1.0, %v5819_v29  ;;  %v4469_v5 = vadd.f32 %v7647_v30, %v4468_v3  ;;  %v4490_v29 = vadd.f32 %v5567_v54, %v7647_v30 }
 0x4a2   : > { %5840 = vrcp.f32 %v4286_v33  ;;  %v4287_v8 = vadd.f32 1.0, %v5821_v56 }
 0x4a3   : > { %v5823_v23 = vpop.eup %5822  ;;  %4513 = vst.msk [vmem:[%s6015_s29 + $0x8] sm:$0xff] %vm2200_vm2, %v4497_v44  ;;  %5842 = vrcp.f32 %v4284_v34 }
 0x4a4   : > { %v5825_v47 = vpop.eup %5824  ;;  %v4329_v19 = vmul.f32 %v5823_v23, %v7589_v18  ;;  %5844 = vrcp.f32 %v4287_v8 }
 0x4a5   : > { %v5827_v9 = vpop.eup %5826  ;;  %v4330_v17 = vmul.f32 %v5825_v47, %v7597_v42  ;;  %v4453_v42 = vadd.f32 %v7647_v30, %v7641_v35 }
 0x4a6   : > { %v5829_v41 = vpop.eup %5828  ;;  %v4502_v59 = vadd.f32 %v4458_v25, %v4329_v19  ;;  %v4288_v24 = vadd.f32 1.0, %v5827_v9 }
 0x4a7   : > { %v5831_v16 = vpop.eup %5830  ;;  %v4327_v36 = vmul.f32 %v5829_v41, %v7600_v6  ;;  %v4503_v45 = vadd.f32 %v4461_v2, %v4330_v17 }
 0x4a8   : > { %v5833_v26 = vpop.eup %5832  ;;  %4518 = vst.msk [vmem:[%s6015_s29 + $0x30] sm:$0xff] %vm2200_vm2, %v4502_v59  ;;  %v4328_v18 = vmul.f32 %v5831_v16, %v7606_v10  ;;  %5846 = vrcp.f32 %v4288_v24  ;;  %v4481_v10 = vpop.f32.mrf.mxu1 }
 0x4a9   : > { %v5835_v22 = vpop.eup %5834  ;;  %v4500_v37 = vadd.f32 %v4450_v39, %v4327_v36  ;;  %4519 = vst.msk [vmem:[%s6015_s29 + $0x38] sm:$0xff] %vm2200_vm2, %v4503_v45  ;;  %v4289_v6 = vadd.f32 1.0, %v5833_v26  ;;  %v4482_v0 = vadd.f32 %v7647_v30, %v4481_v10 }
 0x4aa   : > { %v4501_v32 = vadd.f32 %v4453_v42, %v4328_v18  ;;  %v4290_v15 = vadd.f32 1.0, %v5835_v22  ;;  %v5568_v51 = vpop.f32.mrf.mxu1 }
 0x4ab   : > { %v5837_v46 = vpop.eup %5836  ;;  %4516 = vst.msk [vmem:[%s6015_s29 + $0x20] sm:$0xff] %vm2200_vm2, %v4500_v37  ;;  %5848 = vrcp.f32 %v4289_v6  ;;  %v4493_v56 = vadd.f32 %v5568_v51, %v7647_v30 }
 0x4ac   : > { %4517 = vst.msk [vmem:[%s6015_s29 + $0x28] sm:$0xff] %vm2200_vm2, %v4501_v32  ;;  %v4333_v35 = vmul.f32 %v5837_v46, %v7614_v49  ;;  %5850 = vrcp.f32 %v4290_v15  ;;  %v4484_v21 = vpop.f32.mrf.mxu1 }
 0x4ad   : > { %v5839_v60 = vpop.eup %5838  ;;  %v4485_v12 = vadd.f32 %v7647_v30, %v4484_v21 }
 0x4ae   : > { %v4506_v48 = vadd.f32 %v4474_v7, %v4333_v35  ;;  %v4331_v40 = vmul.f32 %v5839_v60, %v7624_v11 }
 0x4af   : > { %v5841_v61 = vpop.eup %5840 }
 0x4b0   : > { %v5843_v63 = vpop.eup %5842  ;;  %4522 = vst.msk [vmem:[%s6015_s29 + $0x50] sm:$0xff] %vm2200_vm2, %v4506_v48  ;;  %v4504_v49 = vadd.f32 %v4466_v20, %v4331_v40  ;;  %v4334_v55 = vmul.f32 %v5841_v61, %v7618_v38 }
 0x4b1   : > { %v5845_v13 = vpop.eup %5844  ;;  %v4332_v11 = vmul.f32 %v5843_v63, %v7630_v53 }
 0x4b2   : > { %4520 = vst.msk [vmem:[%s6015_s29 + $0x40] sm:$0xff] %vm2200_vm2, %v4504_v49  ;;  %v4507_v4 = vadd.f32 %v4477_v50, %v4334_v55  ;;  %v4335_v58 = vmul.f32 %v5845_v13, %v7637_v31 }
 0x4b3   : > { %v4505_v1 = vadd.f32 %v4469_v5, %v4332_v11 }
 0x4b4   : > { %4523 = vst.msk [vmem:[%s6015_s29 + $0x58] sm:$0xff] %vm2200_vm2, %v4507_v4  ;;  %v4508_v52 = vadd.f32 %v4482_v0, %v4335_v58 }
 0x4b5   : > { %v5847_v38 = vpop.eup %5846  ;;  %4521 = vst.msk [vmem:[%s6015_s29 + $0x48] sm:$0xff] %vm2200_vm2, %v4505_v1 }
 0x4b6   : > { %4524 = vst.msk [vmem:[%s6015_s29 + $0x60] sm:$0xff] %vm2200_vm2, %v4508_v52  ;;  %v4336_v53 = vmul.f32 %v5847_v38, %v7650_v28 }
 0x4b8   : > { %v5849_v43 = vpop.eup %5848  ;;  %v4509_v62 = vadd.f32 %v4485_v12, %v4336_v53 }
 0x4b9   : > { %v5851_v31 = vpop.eup %5850  ;;  %v4337_v27 = vmul.f32 %v5849_v43, %v7653_v14 }
 0x4ba   : > { %v4338_v33 = vmul.f32 %v5851_v31, %v7663_v57  ;;  %4525 = vst.msk [vmem:[%s6015_s29 + $0x68] sm:$0xff] %vm2200_vm2, %v4509_v62 }
 0x4bb   : > { %v4510_v44 = vadd.f32 %v4490_v29, %v4337_v27 }
 0x4bc   : > { %v4511_v34 = vadd.f32 %v4493_v56, %v4338_v33 }
 0x4bd   : > { %4526 = vst.msk [vmem:[%s6015_s29 + $0x70] sm:$0xff] %vm2200_vm2, %v4510_v44 }
 0x4be   : > { %4527 = vst.msk [vmem:[%s6015_s29 + $0x78] sm:$0xff] %vm2200_vm2, %v4511_v34 }
 0x4bf PF: > { %s20_s17 = sadd.s32 1, %s5890_s17   ;;  %s7861_s13 = smov %s5882_s15 }
 0x4c0   : > { %p17_p9 = scmp.ge.s32.totalorder %s20_s17, 6   ;;  %s7862_s14 = smov %s5886_s16 }
 0x4c1   : > { %s7863_s15 = smov %s7866_s18  ;;  %s7864_s16 = smov %s7870_s19 }
 0x4c2   :  { %19 = sbr.rel (!%p17_p9) target bundleno = 3 (0x3), region = 107 }

</bundles_post_ra>
